<compile_context>
chip_gen: v7x
topology: tpu7x:2x2x1
jax: 0.10.0
libtpu: 0.0.40
codegen_flags: <defaults>
</compile_context>

<pallas_src>
import functools
import math

import jax
import jax.numpy as jnp
from jax.experimental import pallas as pl
from jax.experimental.pallas import tpu as pltpu


def _rup(x, m):
    return ((x + m - 1) // m) * m


# ----------------------------------------------------------------------------
# Fused TimestepEmbedding kernel
# ----------------------------------------------------------------------------
def _temb_fused_kernel(x_ref, w1_ref, b1_ref, w2_ref, b2_ref, o_ref):
    """out[:, tile_j] = silu(x @ w1 + b1) @ w2[:, tile_j] + b2[tile_j].

    Grid: (N // tn,) over output-channel tiles, marked "parallel".
    The hidden activation is recomputed per tile (it is a few MFLOP on a
    <=16-row batch and x/w1 stay VMEM-resident), which keeps every grid step
    independent so v7x can shard tiles across both TensorCores.
    """
    h = jnp.dot(x_ref[...], w1_ref[...], preferred_element_type=jnp.float32)
    h = h + b1_ref[...]                      # bias in f32
    h = h * jax.nn.sigmoid(h)                # fused SiLU epilogue (f32 math)
    h = h.astype(w2_ref.dtype)               # feed the MXU in compute dtype
    o = jnp.dot(h, w2_ref[...], preferred_element_type=jnp.float32)
    o_ref[...] = (o + b2_ref[...]).astype(o_ref.dtype)


def _pick_tile(n):
    # Fewest / largest lane-dense tiles. grid=2 lets v7x split the w2 stream
    # across its two TensorCores; on v5e/v6e the extra step costs ~0.35 us.
    if n % 256 == 0:
        return n // 2          # two tiles, each a multiple of 128 lanes
    return n                   # single full-width tile (always legal)


# ----------------------------------------------------------------------------
# Params: one-time preparation (hoists transpose + cast out of the hot path)
# ----------------------------------------------------------------------------
def prepare_params(params, compute_dtype=jnp.bfloat16):
    """Pre-transpose to (in, out) and pre-cast weights ONCE (init-time)."""
    w1, b1 = params["linear_1"]["w"], params["linear_1"]["b"]
    w2, b2 = params["linear_2"]["w"], params["linear_2"]["b"]
    return {
        "w1t": jnp.asarray(w1.T, compute_dtype),          # (C_in, H)
        "b1": jnp.asarray(b1, jnp.float32).reshape(1, -1),
        "w2t": jnp.asarray(w2.T, compute_dtype),          # (H, N)
        "b2": jnp.asarray(b2, jnp.float32).reshape(1, -1),
    }


def timestep_embedding_fwd(prepped, sample):
    """Forward pass; `prepped` comes from prepare_params (no per-call glue)."""
    B, C_in = sample.shape
    w1t, b1 = prepped["w1t"], prepped["b1"]
    w2t, b2 = prepped["w2t"], prepped["b2"]
    compute_dtype = w1t.dtype
    H = w1t.shape[1]
    N = w2t.shape[1]

    # Only the tiny batch axis gets padded: 16 sublanes for bf16 packing,
    # 8 for f32. Large C_in / H / N axes are tiled or full-dim, unpadded.
    sub = 16 if compute_dtype == jnp.bfloat16 else 8
    Bp = _rup(max(B, 1), sub)
    x = jnp.pad(sample.astype(compute_dtype), ((0, Bp - B), (0, 0)))

    tn = _pick_tile(N)

    out = pl.pallas_call(
        _temb_fused_kernel,
        out_shape=jax.ShapeDtypeStruct((Bp, N), jnp.float32),
        grid_spec=pltpu.PrefetchScalarGridSpec(
            num_scalar_prefetch=0,
            grid=(N // tn,),
            in_specs=[
                pl.BlockSpec((Bp, C_in), lambda j: (0, 0)),   # x     (grid-invariant)
                pl.BlockSpec((C_in, H), lambda j: (0, 0)),    # w1^T  (grid-invariant)
                pl.BlockSpec((1, H), lambda j: (0, 0)),       # b1
                pl.BlockSpec((H, tn), lambda j: (0, j)),      # w2^T  (tiled over N)
                pl.BlockSpec((1, tn), lambda j: (0, j)),      # b2
            ],
            out_specs=pl.BlockSpec((Bp, tn), lambda j: (0, j)),
        ),
        compiler_params=pltpu.CompilerParams(
            # Tiles are fully independent (h recomputed per step), so the axis
            # is parallel -> v7x can run one tile per TensorCore.
            dimension_semantics=("parallel",),
        ),
    )(x, w1t, b1, w2t, b2)
    return out[:B]


# ----------------------------------------------------------------------------
# Reference, params, input construction
# ----------------------------------------------------------------------------
def reference_fwd(params, sample):
    h = sample @ params["linear_1"]["w"].T + params["linear_1"]["b"]
    h = h * jax.nn.sigmoid(h)
    return h @ params["linear_2"]["w"].T + params["linear_2"]["b"]


def _init_linear(key, c_in, c_out):
    kw, kb = jax.random.split(key)
    bound = 1.0 / math.sqrt(c_in)
    return {"w": jax.random.uniform(kw, (c_out, c_in), jnp.float32, -bound, bound),
            "b": jax.random.uniform(kb, (c_out,), jnp.float32, -bound, bound)}


def init_timestep_embedding(key, in_channels, out_channels):
    k1, k2 = jax.random.split(key)
    return {"linear_1": _init_linear(k1, in_channels, out_channels),
            "linear_2": _init_linear(k2, out_channels, out_channels)}


def sinusoidal_timesteps(t, num_channels):
    # Matches how the UNet feeds this module (cos/sin projection of timesteps).
    half = num_channels // 2
    exponent = jnp.exp(-math.log(10000.0) * jnp.arange(half, dtype=jnp.float32) / half)
    emb = t[:, None].astype(jnp.float32) * exponent[None, :]
    return jnp.concatenate([jnp.cos(emb), jnp.sin(emb)], axis=-1)


# ----------------------------------------------------------------------------
# main
# ----------------------------------------------------------------------------
if __name__ == "__main__":
    B, C_IN, C_OUT = 2, 320, 1280   # typical TimestepEmbedding(320, 1280)

    key = jax.random.PRNGKey(0)
    params = init_timestep_embedding(key, C_IN, C_OUT)

    t = jnp.array([10.0, 500.0], jnp.float32)
    sample = sinusoidal_timesteps(t, C_IN)          # (B, C_IN)

    ref = reference_fwd(params, sample)

    fwd = jax.jit(timestep_embedding_fwd)

    # f32 path: tight correctness check of the fused kernel.
    prepped_f32 = prepare_params(params, compute_dtype=jnp.float32)
    out_f32 = jax.block_until_ready(fwd(prepped_f32, sample))
    assert out_f32.shape == (B, C_OUT), out_f32.shape
    assert bool(jnp.all(jnp.isfinite(out_f32)))
    assert bool(jnp.allclose(out_f32, ref, rtol=1e-2, atol=1e-3)), \
        float(jnp.max(jnp.abs(out_f32 - ref)))

    # Default bf16-fed MXU path (f32 accumulation): looser tolerance.
    prepped_bf16 = prepare_params(params, compute_dtype=jnp.bfloat16)
    out_bf16 = jax.block_until_ready(fwd(prepped_bf16, sample))
    assert out_bf16.shape == (B, C_OUT), out_bf16.shape
    assert bool(jnp.all(jnp.isfinite(out_bf16)))
    assert bool(jnp.allclose(out_bf16, ref, rtol=5e-2, atol=2e-2)), \
        float(jnp.max(jnp.abs(out_bf16 - ref)))

    print("KERNEL_OK")
</pallas_src>

<mosaic_0001>
module attributes {stable_mosaic.version = 11 : i64} {
  func.func @_temb_fused_kernel(%arg0: i32, %arg1: memref<8x320xf32, #tpu.memory_space<vmem>>, %arg2: memref<320x1280xf32, #tpu.memory_space<vmem>>, %arg3: memref<1x1280xf32, #tpu.memory_space<vmem>>, %arg4: memref<1280x640xf32, #tpu.memory_space<vmem>>, %arg5: memref<1x640xf32, #tpu.memory_space<vmem>>, %arg6: memref<8x640xf32, #tpu.memory_space<vmem>>) attributes {dimension_semantics = [#tpu.dimension_semantics<parallel>], iteration_bounds = array<i64: 2>, scalar_prefetch = 0 : i64, scratch_operands = 0 : i64, tpu.core_type = #tpu.core_type<tc>, window_params = [{pipeline_mode = #tpu.pipeline_mode<synchronous>, transform_indices = @transform_0, window_bounds = array<i64: 8, 320>}, {pipeline_mode = #tpu.pipeline_mode<synchronous>, transform_indices = @transform_1, window_bounds = array<i64: 320, 1280>}, {pipeline_mode = #tpu.pipeline_mode<synchronous>, transform_indices = @transform_2, window_bounds = array<i64: 1, 1280>}, {transform_indices = @transform_3, window_bounds = array<i64: 1280, 640>}, {transform_indices = @transform_4, window_bounds = array<i64: 1, 640>}, {transform_indices = @transform_5, window_bounds = array<i64: 8, 640>}]} {
    %c0 = arith.constant 0 : index
    %c0_0 = arith.constant 0 : index
    %0 = vector.load %arg1[%c0, %c0_0] : memref<8x320xf32, #tpu.memory_space<vmem>>, vector<8x320xf32>
    %c0_1 = arith.constant 0 : index
    %c0_2 = arith.constant 0 : index
    %1 = vector.load %arg2[%c0_1, %c0_2] : memref<320x1280xf32, #tpu.memory_space<vmem>>, vector<320x1280xf32>
    %cst = arith.constant dense<0.000000e+00> : vector<8x1280xf32>
    %2 = tpu.matmul %0, %1, %cst {dimension_numbers = #tpu.dot_dimension_numbers<[1], [0], [0], [1], [0, 0, 1, 1], [], []>} : vector<8x320xf32>, vector<320x1280xf32>, vector<8x1280xf32> -> vector<8x1280xf32>
    %c0_3 = arith.constant 0 : index
    %c0_4 = arith.constant 0 : index
    %3 = vector.load %arg3[%c0_3, %c0_4] : memref<1x1280xf32, #tpu.memory_space<vmem>>, vector<1x1280xf32>
    %4 = vector.broadcast %3 : vector<1x1280xf32> to vector<8x1280xf32>
    %5 = arith.addf %2, %4 : vector<8x1280xf32>
    %6 = arith.negf %5 : vector<8x1280xf32>
    %7 = math.exp %6 : vector<8x1280xf32>
    %cst_5 = arith.constant 1.000000e+00 : f32
    %8 = vector.broadcast %cst_5 : f32 to vector<8x1280xf32>
    %9 = arith.addf %8, %7 : vector<8x1280xf32>
    %10 = arith.divf %8, %9 : vector<8x1280xf32>
    %11 = arith.mulf %5, %10 : vector<8x1280xf32>
    %c0_6 = arith.constant 0 : index
    %c0_7 = arith.constant 0 : index
    %12 = vector.load %arg4[%c0_6, %c0_7] : memref<1280x640xf32, #tpu.memory_space<vmem>>, vector<1280x640xf32>
    %cst_8 = arith.constant dense<0.000000e+00> : vector<8x640xf32>
    %13 = tpu.matmul %11, %12, %cst_8 {dimension_numbers = #tpu.dot_dimension_numbers<[1], [0], [0], [1], [0, 0, 1, 1], [], []>} : vector<8x1280xf32>, vector<1280x640xf32>, vector<8x640xf32> -> vector<8x640xf32>
    %c0_9 = arith.constant 0 : index
    %c0_10 = arith.constant 0 : index
    %14 = vector.load %arg5[%c0_9, %c0_10] : memref<1x640xf32, #tpu.memory_space<vmem>>, vector<1x640xf32>
    %15 = vector.broadcast %14 : vector<1x640xf32> to vector<8x640xf32>
    %16 = arith.addf %13, %15 : vector<8x640xf32>
    %c0_11 = arith.constant 0 : index
    %c0_12 = arith.constant 0 : index
    %17 = vector.load %arg6[%c0_11, %c0_12] : memref<8x640xf32, #tpu.memory_space<vmem>>, vector<8x640xf32>
    tpu.vector_store %arg6[%c0_11, %c0_12], %16 {strides = array<i32>} : memref<8x640xf32, #tpu.memory_space<vmem>>, vector<8x640xf32>,
    return
  }
  func.func @transform_0(%arg0: i32) -> (i32, i32) {
    %c0_i32 = arith.constant 0 : i32
    %c0_i32_0 = arith.constant 0 : i32
    %c0_i32_1 = arith.constant 0 : i32
    return %c0_i32, %c0_i32_0 : i32, i32
  }
  func.func @transform_1(%arg0: i32) -> (i32, i32) {
    %c0_i32 = arith.constant 0 : i32
    %c0_i32_0 = arith.constant 0 : i32
    %c0_i32_1 = arith.constant 0 : i32
    return %c0_i32, %c0_i32_0 : i32, i32
  }
  func.func @transform_2(%arg0: i32) -> (i32, i32) {
    %c0_i32 = arith.constant 0 : i32
    %c0_i32_0 = arith.constant 0 : i32
    %c0_i32_1 = arith.constant 0 : i32
    return %c0_i32, %c0_i32_0 : i32, i32
  }
  func.func @transform_3(%arg0: i32) -> (i32, i32) {
    %c0_i32 = arith.constant 0 : i32
    %c0_i32_0 = arith.constant 0 : i32
    return %c0_i32, %arg0 : i32, i32
  }
  func.func @transform_4(%arg0: i32) -> (i32, i32) {
    %c0_i32 = arith.constant 0 : i32
    %c0_i32_0 = arith.constant 0 : i32
    return %c0_i32, %arg0 : i32, i32
  }
  func.func @transform_5(%arg0: i32) -> (i32, i32) {
    %c0_i32 = arith.constant 0 : i32
    %c0_i32_0 = arith.constant 0 : i32
    return %c0_i32, %arg0 : i32, i32
  }
}

</mosaic_0001>

<bundles_post_ra>
// kernel: timestep_embedding_fwd.1
= control target key start
LH: loop header
LB: loop body
LE: loop exit
PB: predicated region body
PF: predicated region fallthrough
CT: control target
= control target key end

     0   :  { %s6524_s0 = inlined_call_operand.vmem [shape: f32[8,320], index: 0, kind: input, shape index: {}]   ;;  %s6525_s1 = inlined_call_operand.hbm [shape: f32[320,1280], index: 1, kind: input, shape index: {}]   ;;  %s6526_s2 = inlined_call_operand.hbm [shape: f32[1,1280], index: 2, kind: input, shape index: {}]   ;;  %s6527_s3 = inlined_call_operand.hbm [shape: f32[1280,1280], index: 3, kind: input, shape index: {}]   ;;  %s6528_s4 = inlined_call_operand.hbm [shape: f32[1,1280], index: 4, kind: input, shape index: {}]   ;;  %s6529_s5 = inlined_call_operand.vmem [shape: f32[8,1280], index: 5, kind: output, shape index: {}]  }
   0x1   :  { %6537 = sst [smem:[#allocation11_spill]] %s6525_s1 }
   0x2   :  { %10 = vsyncpa [#allocation3], 0 }
   0x3   :  { %11 = vsyncpa [#allocation5], 0  ;;  %s5310_s18 = smov 0   ;;  %s5312_s19 = smov 0  }
   0x4   :  { %s5314_s20 = smov 0   ;;  %s5316_s21 = smov 0  }
   0x5 LB: > { %s5329_s22 = sadd.s32 4294967295, %s5269_s21   ;;  %s5332_s23 = sadd.s32 1, %s5269_s21   ;;  %s5269_s21 = sphi %s5316_s21, %s6560_s21   ;;  %s5265_s20 = sphi %s5314_s20, %s6559_s20   ;;  %s5261_s19 = sphi %s5312_s19, %s6558_s19   ;;  %s5257_s18 = sphi %s5310_s18, %s6557_s18  }
   0x6   : > { %s84_s24 = ssub.s32 %s5269_s21, %s5332_s23  ;;  %s87_s25 = sadd.s32 1, %s5265_s20 }
   0x7   : > { %p85_p0 = scmp.eq.s32.totalorder %s84_s24, 0  ;;  %p94_p1 = scmp.ne.s32.totalorder %s5265_s20, %s5261_s19 }
   0x8   : > { %p95_p2 = scmp.eq.s32.totalorder %s5269_s21, 0  ;;  %p100_p3 = scmp.ne.s32.totalorder %s5261_s19, %s5257_s18 }
   0x9   : > { %s5342_s26 = scalar_select %p85_p0, %s5265_s20, %s87_s25  }
   0xa   : > { %p5344_p4 = por %p95_p2, %p94_p1  ;;  %p6530_p5 = scmp.eq.s32.totalorder %s5329_s22, 0 }
   0xb   : > { %p3549_p6 = scmp.ge.s32.totalorder %s5269_s21, 1  ;;  %p163_p7 = scmp.lt.s32.totalorder %s5269_s21, 3 }
   0xc   : > { %p5353_p8 = por %p6530_p5, %p100_p3  ;;  %s5271_s30 = smov [#allocation2]  }
   0xd   : > { %p5357_p9 = pnand %p3549_p6, %p163_p7  ;;  %s178_s6 = sshll.u32 %s5271_s30, 4  ;;  %s179_s6 = int_to_ptr.vmem [resolvable:$true] %s178_s6 }
   0xe   : > { %s6539_s28 = scalar_select %p5353_p8, 1, 0 }
   0xf   : > { %s6540_s29 = scalar_select %p5357_p9, 1, 0 }
  0x10   : > { %p5009_p10 = pneg %p5357_p9  ;;  %p5025_p12 = scmp.lt.s32.totalorder %s5269_s21, 2 }
  0x11   : > { %s205_s9 = sand.u32 1, %s5265_s20   ;;  %s6543_s1 = sld [smem:[#allocation11_spill]] }
  0x12   : > { %p5365_p11 = pnand %p5009_p10, %p6530_p5  ;;  %p5374_p13 = pnand %p5025_p12, %p5344_p4 }
  0x14   : > { %s6542_s10 = scalar_select %p5374_p13, 1, 0 }
  0x15   : > { %p6534_p1 = pneg %p5365_p11 }
  0x17   : > { %s5111_s13 = scalar_lea.hbm %s6543_s1, 51200 }
  0x18   : > { %p5112_p0 = scmp.ne.s32.totalorder %s6543_s1, %s5111_s13  ;;  %p5118_p4 = scmp.lt.u32.totalorder %s5111_s13, %s6543_s1 }
  0x1a   : > { %p5114_p2 = pnand %p6534_p1, %p5112_p0 }
  0x1c   : > { %p5115_p3 = pneg %p5114_p2 }
  0x1e   : > { %p5120_p6 = pnand %p5118_p4, %p5115_p3 }
  0x20   : > { %5123 = shalt.err (!%p5120_p6)
}
  0x21   : > { %s5124_s18 = scalar_lea.vmem %s179_s6, 51200  ;;  %p5132_p5 = scmp.lt.s32.totalorder %s179_s6, %s179_s6 }
  0x22   : > { %p5125_p7 = scmp.ne.s32.totalorder %s179_s6, %s5124_s18  ;;  %p5133_p8 = scmp.lt.s32.totalorder %s5124_s18, %s5124_s18 }
  0x24   : > { %p5127_p10 = pnand %p5125_p7, %p6534_p1  ;;  %p5134_p9 = por %p5133_p8, %p5132_p5 }
  0x26   : > { %p5128_p12 = pneg %p5127_p10 }
  0x28   : > { %p5135_p13 = pnand %p5134_p9, %p5128_p12 }
  0x2a   : > { %5138 = shalt.err (!%p5135_p13)
}
  0x2b   : > { %s5272_s24 = smov 1280   ;;  %s5273_s25 = smov 80  }
  0x2c   : > { %5012 = dma.hbm_to_vmem [thread:$0]  (!%p5365_p11), %s6543_s1, 51200, %s179_s6, [#allocation3], %s5272_s24, %s5272_s24, %s5273_s25  }
  0x2d   : > { %s4993_s11 = smul.u32 6400, %s205_s9  ;;  %s5274_s18 = smov [#allocation4]  }
  0x2e   : > { %s3576_s12 = smul.u32 640, %s5269_s21  ;;  %s5412_s8 = sshll.u32 %s5274_s18, 4  ;;  %s193_s8 = int_to_ptr.vmem [resolvable:$true] %s5412_s8 }
  0x2f   : > { %s207_s16 = scalar_lea.vmem [#allocation6], %s4993_s11  ;;  %s6544_s6 = sand.u32 1, %s5269_s21  }
  0x30   : > { %s5408_s15 = scalar_lea.hbm %s6527_s3, %s3576_s12  ;;  %s214_s17 = sshll.u32 %s207_s16, 4  ;;  %s5410_s17 = int_to_ptr.vmem [resolvable:$true] %s214_s17 }
  0x31   : > { %s5416_s25 = scalar_lea.sflag [#allocation3], %s6544_s6  ;;  %s5139_s27 = scalar_lea.hbm %s5408_s15, 102400 }
  0x32   : > { %p5140_p5 = scmp.ne.s32.totalorder %s5408_s15, %s5139_s27  ;;  %p6545_p8 = scmp.ne.s32.totalorder %s6542_s10, 0 }
  0x33   : > { %s5144_s11 = scalar_lea.hbm %s6527_s3, 204800  ;;  %p5145_p2 = scmp.lt.u32.totalorder %s5408_s15, %s6527_s3 }
  0x34   : > { %p6535_p9 = pneg %p6545_p8  ;;  %p5146_p3 = scmp.lt.u32.totalorder %s5144_s11, %s5139_s27 }
  0x35   : > { %p5148_p6 = scmp.lt.u32.totalorder %s5139_s27, %s5408_s15 }
  0x36   : > { %p5142_p13 = pnand %p6535_p9, %p5140_p5  ;;  %p5147_p4 = por %p5146_p3, %p5145_p2 }
  0x38   : > { %p5143_p0 = pneg %p5142_p13  ;;  %p5149_p7 = por %p5148_p6, %p5147_p4 }
  0x3a   : > { %p5150_p10 = pnand %p5149_p7, %p5143_p0 }
  0x3c   : > { %5153 = shalt.err (!%p5150_p10)
}
  0x3d   : > { %s5154_s16 = scalar_lea.vmem %s5410_s17, 102400  ;;  %s5275_s18 = smov [#allocation6]  }
  0x3e   : > { %p5155_p12 = scmp.ne.s32.totalorder %s5410_s17, %s5154_s16  ;;  %s5159_s6 = sshll.u32 %s5275_s18, 4  ;;  %s5160_s6 = int_to_ptr.vmem [resolvable:$false] %s5159_s6 }
  0x3f   : > { %s5161_s30 = scalar_lea.vmem %s5160_s6, 204800  ;;  %p5162_p1 = scmp.lt.s32.totalorder %s5410_s17, %s5160_s6 }
  0x40   : > { %p5157_p5 = pnand %p5155_p12, %p6535_p9  ;;  %p5163_p2 = scmp.lt.s32.totalorder %s5161_s30, %s5154_s16 }
  0x42   : > { %p5158_p13 = pneg %p5157_p5  ;;  %p5164_p3 = por %p5163_p2, %p5162_p1 }
  0x44   : > { %p5165_p4 = pnand %p5164_p3, %p5158_p13 }
  0x46   : > { %5168 = shalt.err (!%p5165_p4)
}
  0x47   : > { %s5276_s27 = smov 640   ;;  %s5277_s12 = smov 40  }
  0x48   : > { %5019 = dma.hbm_to_vmem [thread:$0]  (!%p6545_p8), %s5408_s15, 102400, %s5410_s17, %s5416_s25, %s5272_s24, %s5276_s27, %s5277_s12  }
  0x49   : > { %s4994_s11 = smul.u32 5, %s205_s9  ;;  %s5169_s16 = scalar_lea.hbm %s6526_s2, 160 }
  0x4a   : > { %p5170_p1 = scmp.ne.s32.totalorder %s6526_s2, %s5169_s16  ;;  %p6546_p0 = pneg %p5365_p11 }
  0x4b   : > { %p5176_p10 = scmp.lt.u32.totalorder %s5169_s16, %s6526_s2 }
  0x4c   : > { %p5172_p6 = pnand %p5170_p1, %p6546_p0 }
  0x4e   : > { %p5173_p7 = pneg %p5172_p6 }
  0x50   : > { %p5178_p12 = pnand %p5176_p10, %p5173_p7 }
  0x52   : > { %5181 = shalt.err (!%p5178_p12)
}
  0x53   : > { %s5182_s24 = scalar_lea.vmem %s193_s8, 160  ;;  %p6547_p13 = pmov %p6546_p0 }
  0x54   : > { %p5183_p5 = scmp.ne.s32.totalorder %s193_s8, %s5182_s24  ;;  %p5190_p4 = scmp.lt.s32.totalorder %s193_s8, %s193_s8 }
  0x55   : > { %p5191_p9 = scmp.lt.s32.totalorder %s5182_s24, %s5182_s24 }
  0x56   : > { %p5185_p2 = pnand %p5183_p5, %p6547_p13 }
  0x57   : > { %p5192_p8 = por %p5191_p9, %p5190_p4 }
  0x58   : > { %p5186_p3 = pneg %p5185_p2 }
  0x5a   : > { %p5193_p0 = pnand %p5192_p8, %p5186_p3 }
  0x5c   : > { %5196 = shalt.err (!%p5193_p0)
}
  0x5d   : > { %5015 = dma.hbm_to_vmem [thread:$0]  (!%p5365_p11), %s6526_s2, 160, %s193_s8, [#allocation5]  }
  0x5e   : > { %s3577_s1 = smul.u32 80, %s5269_s21  ;;  %s228_s17 = scalar_lea.vmem [#allocation7], %s4994_s11 }
  0x5f   : > { %s236_s27 = sshll.u32 %s228_s17, 4  ;;  %p6548_p8 = scmp.ne.s32.totalorder %s6542_s10, 0  ;;  %s237_s27 = int_to_ptr.vmem [resolvable:$true] %s236_s27 }
  0x60   : > { %s234_s14 = scalar_lea.hbm %s6528_s4, %s3577_s1  ;;  %s5202_s6 = scalar_lea.hbm %s6528_s4, 160 }
  0x61   : > { %s5197_s16 = scalar_lea.hbm %s234_s14, 80  ;;  %p6549_p1 = pneg %p6548_p8 }
  0x62   : > { %p5198_p9 = scmp.ne.s32.totalorder %s234_s14, %s5197_s16  ;;  %p5203_p11 = scmp.lt.u32.totalorder %s234_s14, %s6528_s4 }
  0x63   : > { %p5204_p10 = scmp.lt.u32.totalorder %s5202_s6, %s5197_s16  ;;  %p5206_p5 = scmp.lt.u32.totalorder %s5197_s16, %s234_s14 }
  0x64   : > { %p5200_p6 = pnand %p5198_p9, %p6549_p1 }
  0x65   : > { %p5205_p12 = por %p5204_p10, %p5203_p11 }
  0x66   : > { %p5201_p7 = pneg %p5200_p6 }
  0x67   : > { %p5207_p13 = por %p5206_p5, %p5205_p12 }
  0x69   : > { %p5208_p2 = pnand %p5207_p13, %p5201_p7 }
  0x6b   : > { %5211 = shalt.err (!%p5208_p2)
}
  0x6c   : > { %s5212_s21 = scalar_lea.vmem %s237_s27, 80  ;;  %p6550_p4 = pmov %p6549_p1 }
  0x6d   : > { %p5213_p3 = scmp.ne.s32.totalorder %s237_s27, %s5212_s21  ;;  %s5278_s11 = smov [#allocation7]  }
  0x6e   : > { %s5217_s24 = sshll.u32 %s5278_s11, 4  ;;  %s5218_s24 = int_to_ptr.vmem [resolvable:$false] %s5217_s24 }
  0x6f   : > { %p5215_p0 = pnand %p5213_p3, %p6550_p4  ;;  %s5219_s9 = scalar_lea.vmem %s5218_s24, 160 }
  0x70   : > { %p5220_p1 = scmp.lt.s32.totalorder %s237_s27, %s5218_s24  ;;  %p5221_p6 = scmp.lt.s32.totalorder %s5219_s9, %s5212_s21 }
  0x71   : > { %p5216_p9 = pneg %p5215_p0 }
  0x72   : > { %p5222_p10 = por %p5221_p6, %p5220_p1 }
  0x74   : > { %p5223_p11 = pnand %p5222_p10, %p5216_p9 }
  0x76   : > { %5226 = shalt.err (!%p5223_p11)
}
  0x77   : > { %5022 = dma.hbm_to_vmem [thread:$0]  (!%p6548_p8), %s234_s14, 80, %s237_s27, %s5416_s25  }
  0x78   : > { %p6551_p7 = scmp.ne.s32.totalorder %s6540_s29, 0 }
  0x79   : > { %p6552_p12 = scmp.eq.s32.totalorder (!%p6551_p7), %s5329_s22, 0 }
  0x7a   : > { %245 = sbr.rel (%p6551_p7) target bundleno = 1068 (0x42c), region = 40 }
  0x81   : > { %5244 = dma.done.wait (%p6552_p12), [#allocation3], 51200   ;;  %p6553_p5 = pmov %p6552_p12 }
  0x83   : > { %5246 = vsyncadd (%p6553_p5), [#allocation3], 4294916096  ;;  %p6554_p13 = pmov %p6553_p5 }
  0x84   : > { %p6555_p2 = pmov %p6553_p5 }
  0x85   : > { %5248 = dma.done.wait (%p6554_p13), [#allocation5], 160  }
  0x86   : > { %5250 = vsyncadd (%p6555_p2), [#allocation5], 4294967136  ;;  %s255_s10 = sand.u32 1, %s5329_s22   ;;  %s257_s25 = sand.u32 1, %s5261_s19  }
  0x87   : > { %s4995_s29 = smul.u32 6400, %s257_s25  ;;  %s256_s15 = scalar_lea.sflag [#allocation3], %s255_s10 }
  0x88   : > { %p6556_p8 = scmp.ne.s32.totalorder %s6539_s28, 0 }
  0x89   : > { %s5501_s1 = scalar_lea.vmem [#allocation6], %s4995_s29 }
  0x8a   : > { %5252 = dma.done.wait (%p6556_p8), %s256_s15, 102480  }
  0x8b   : > { %5254 = vsyncadd (%p6556_p8), %s256_s15, 4294864816  ;;  %v312_v0 = vld [vmem:[#allocation2 + $0x8] sm:$0xff]  ;;  %v322_v1 = vld [vmem:[#allocation2 + $0x58] sm:$0xff]  ;;  %vm765_vm0 = vcmask 523264   ;;  %s302_s21 = smul.u32 5, %s5329_s22 }
  0x8c   : > { %v311_v2 = vld [vmem:[#allocation2] sm:$0xff]  ;;  %v3753_v3 = vpack.c.bf16 %v322_v1, %v312_v0  ;;  %v321_v4 = vld [vmem:[#allocation2 + $0x50] sm:$0xff]  ;;  %v332_v5 = vld [vmem:[#allocation2 + $0xa8] sm:$0xff]  ;;  %s4996_s11 = smul.u32 5, %s257_s25 }
  0x8d   : > { %v342_v6 = vld [vmem:[#allocation2 + $0xf8] sm:$0xff]  ;;  %v3755_v7 = vpack.c.bf16 %v321_v4, %v311_v2  ;;  %v331_v9 = vld [vmem:[#allocation2 + $0xa0] sm:$0xff]  ;;  %v341_v10 = vld [vmem:[#allocation2 + $0xf0] sm:$0xff]  ;;  %p303_p3 = scmp.lt.s32.totalorder %s302_s21, 9 }
  0x8e   : > { %v3757_v8 = vpack.c.bf16 %v342_v6, %v332_v5  ;;  %v352_v11 = vld [vmem:[#allocation2 + $0x148] sm:$0xff]  ;;  %3754 = vmatprep.subr.bf16.mxu0 %v3753_v3  ;;  %v362_v12 = vld [vmem:[#allocation2 + $0x198] sm:$0xff]  ;;  %v3759_v13 = vpack.c.bf16 %v341_v10, %v331_v9  ;;  %v351_v15 = vld [vmem:[#allocation2 + $0x140] sm:$0xff]  ;;  %s268_s24 = scalar_lea.vmem [#allocation7], %s4996_s11 }
  0x8f   : > { %3756 = vmatpush1.bf16.msra.mxu0 %v3755_v7  ;;  %v3761_v14 = vpack.c.bf16 %v362_v12, %v352_v11  ;;  %v361_v16 = vld [vmem:[#allocation2 + $0x190] sm:$0xff]  ;;  %v372_v17 = vld [vmem:[#allocation2 + $0x1e8] sm:$0xff]  ;;  %v382_v18 = vld [vmem:[#allocation2 + $0x238] sm:$0xff]  ;;  %s6562_s21 = smov (!%p303_p3, %s302_s21), 9 }
  0x90   : > { %3758 = vmatprep.subr.bf16.mxu0 %v3757_v8  ;;  %v3763_v19 = vpack.c.bf16 %v361_v16, %v351_v15  ;;  %v314_v20 = vld [vmem:[#allocation2 + $0x18] sm:$0xff]  ;;  %v324_v21 = vld [vmem:[#allocation2 + $0x68] sm:$0xff]  ;;  %v313_v22 = vld [vmem:[#allocation2 + $0x10] sm:$0xff]  ;;  %v3765_v23 = vpack.c.bf16 %v382_v18, %v372_v17  ;;  %s3558_s9 = sshll.u32 %s6562_s21, 3 }
  0x91   : > { %v371_v24 = vld [vmem:[#allocation2 + $0x1e0] sm:$0xff]  ;;  %v381_v25 = vld [vmem:[#allocation2 + $0x230] sm:$0xff]  ;;  %v3833_v26 = vpack.c.bf16 %v324_v21, %v314_v20  ;;  %v392_v28 = vld [vmem:[#allocation2 + $0x288] sm:$0xff]  ;;  %s6502_s22 = scalar_lea.vmem %s6529_s5, %s3558_s9 }
  0x92   : > { %v323_v27 = vld [vmem:[#allocation2 + $0x60] sm:$0xff]  ;;  %v402_v29 = vld [vmem:[#allocation2 + $0x2d8] sm:$0xff]  ;;  %v344_v32 = vld [vmem:[#allocation2 + $0x108] sm:$0xff]  ;;  %v3767_v35 = vpack.c.bf16 %v381_v25, %v371_v24 }
  0x93   : > { %3760 = vmatpush1.bf16.msra.mxu0 %v3759_v13  ;;  %v3835_v30 = vpack.c.bf16 %v323_v27, %v313_v22  ;;  %v334_v31 = vld [vmem:[#allocation2 + $0xb8] sm:$0xff]  ;;  %3834 = vmatprep.subr.bf16.mxu1 %v3833_v26  ;;  %v333_v33 = vld [vmem:[#allocation2 + $0xb0] sm:$0xff]  ;;  %v343_v34 = vld [vmem:[#allocation2 + $0x100] sm:$0xff]  ;;  %v3769_v40 = vpack.c.bf16 %v402_v29, %v392_v28 }
  0x94   : > { %3762 = vmatprep.subr.bf16.mxu0 %v3761_v14  ;;  %v391_v36 = vld [vmem:[#allocation2 + $0x280] sm:$0xff]  ;;  %v401_v37 = vld [vmem:[#allocation2 + $0x2d0] sm:$0xff]  ;;  %v3837_v38 = vpack.c.bf16 %v344_v32, %v334_v31  ;;  %v3839_v39 = vpack.c.bf16 %v343_v34, %v333_v33  ;;  %v412_v41 = vld [vmem:[#allocation2 + $0x328] sm:$0xff] }
  0x95   : > { %3836 = vmatpush1.bf16.msra.mxu1 %v3835_v30  ;;  %v354_v42 = vld [vmem:[#allocation2 + $0x158] sm:$0xff]  ;;  %v364_v43 = vld [vmem:[#allocation2 + $0x1a8] sm:$0xff]  ;;  %v353_v46 = vld [vmem:[#allocation2 + $0x150] sm:$0xff]  ;;  %v3771_v48 = vpack.c.bf16 %v401_v37, %v391_v36 }
  0x96   : > { %v422_v44 = vld [vmem:[#allocation2 + $0x378] sm:$0xff]  ;;  %3838 = vmatprep.subr.bf16.mxu1 %v3837_v38  ;;  %v3841_v45 = vpack.c.bf16 %v364_v43, %v354_v42  ;;  %v363_v47 = vld [vmem:[#allocation2 + $0x1a0] sm:$0xff]  ;;  %v384_v52 = vld [vmem:[#allocation2 + $0x248] sm:$0xff] }
  0x97   : > { %3764 = vmatpush1.bf16.msra.mxu0 %v3763_v19  ;;  %v411_v49 = vld [vmem:[#allocation2 + $0x320] sm:$0xff]  ;;  %v3843_v50 = vpack.c.bf16 %v363_v47, %v353_v46  ;;  %v374_v51 = vld [vmem:[#allocation2 + $0x1f8] sm:$0xff]  ;;  %v3773_v53 = vpack.c.bf16 %v422_v44, %v412_v41  ;;  %v421_v54 = vld [vmem:[#allocation2 + $0x370] sm:$0xff] }
  0x98   : > { %3766 = vmatprep.subr.bf16.mxu0 %v3765_v23  ;;  %v3845_v55 = vpack.c.bf16 %v384_v52, %v374_v51  ;;  %v373_v56 = vld [vmem:[#allocation2 + $0x1f0] sm:$0xff]  ;;  %v383_v57 = vld [vmem:[#allocation2 + $0x240] sm:$0xff]  ;;  %v432_v58 = vld [vmem:[#allocation2 + $0x3c8] sm:$0xff]  ;;  %v3775_v62 = vpack.c.bf16 %v421_v54, %v411_v49 }
  0x99   : > { %3840 = vmatpush1.bf16.msra.mxu1 %v3839_v39  ;;  %v442_v59 = vld [vmem:[#allocation2 + $0x418] sm:$0xff]  ;;  %v404_v61 = vld [vmem:[#allocation2 + $0x2e8] sm:$0xff]  ;;  %v431_v63 = vld [vmem:[#allocation2 + $0x3c0] sm:$0xff]  ;;  %v3847_v1 = vpack.c.bf16 %v383_v57, %v373_v56 }
  0x9a   : > { %3842 = vmatprep.subr.bf16.mxu1 %v3841_v45  ;;  %v394_v60 = vld [vmem:[#allocation2 + $0x298] sm:$0xff]  ;;  %v441_v0 = vld [vmem:[#allocation2 + $0x410] sm:$0xff]  ;;  %v3777_v2 = vpack.c.bf16 %v442_v59, %v432_v58  ;;  %v452_v3 = vld [vmem:[#allocation2 + $0x468] sm:$0xff] }
  0x9b   : > { %3768 = vmatpush1.bf16.msra.mxu0 %v3767_v35  ;;  %v3849_v4 = vpack.c.bf16 %v404_v61, %v394_v60  ;;  %v393_v5 = vld [vmem:[#allocation2 + $0x290] sm:$0xff]  ;;  %v403_v6 = vld [vmem:[#allocation2 + $0x2e0] sm:$0xff]  ;;  %v462_v7 = vld [vmem:[#allocation2 + $0x4b8] sm:$0xff]  ;;  %v3779_v10 = vpack.c.bf16 %v441_v0, %v431_v63 }
  0x9c   : > { %3770 = vmatprep.subr.bf16.mxu0 %v3769_v40  ;;  %v414_v8 = vld [vmem:[#allocation2 + $0x338] sm:$0xff]  ;;  %v424_v9 = vld [vmem:[#allocation2 + $0x388] sm:$0xff]  ;;  %v451_v11 = vld [vmem:[#allocation2 + $0x460] sm:$0xff]  ;;  %v3851_v13 = vpack.c.bf16 %v403_v6, %v393_v5  ;;  %v3781_v14 = vpack.c.bf16 %v462_v7, %v452_v3 }
  0x9d   : > { %3844 = vmatpush1.bf16.msra.mxu1 %v3843_v50  ;;  %v461_v12 = vld [vmem:[#allocation2 + $0x4b0] sm:$0xff]  ;;  %v472_v15 = vld [vmem:[#allocation2 + $0x508] sm:$0xff]  ;;  %v3853_v16 = vpack.c.bf16 %v424_v9, %v414_v8  ;;  %v423_v18 = vld [vmem:[#allocation2 + $0x380] sm:$0xff] }
  0x9e   : > { %3846 = vmatprep.subr.bf16.mxu1 %v3845_v55  ;;  %v413_v17 = vld [vmem:[#allocation2 + $0x330] sm:$0xff]  ;;  %v482_v19 = vld [vmem:[#allocation2 + $0x558] sm:$0xff]  ;;  %v444_v21 = vld [vmem:[#allocation2 + $0x428] sm:$0xff]  ;;  %v3783_v22 = vpack.c.bf16 %v461_v12, %v451_v11 }
  0x9f   : > { %3772 = vmatpush1.bf16.msra.mxu0 %v3771_v48  ;;  %v434_v20 = vld [vmem:[#allocation2 + $0x3d8] sm:$0xff]  ;;  %v471_v23 = vld [vmem:[#allocation2 + $0x500] sm:$0xff]  ;;  %v481_v24 = vld [vmem:[#allocation2 + $0x550] sm:$0xff]  ;;  %v3855_v25 = vpack.c.bf16 %v423_v18, %v413_v17  ;;  %v3785_v26 = vpack.c.bf16 %v482_v19, %v472_v15 }
  0xa0   : > { %3774 = vmatprep.subr.bf16.mxu0 %v3773_v53  ;;  %v492_v27 = vld [vmem:[#allocation2 + $0x5a8] sm:$0xff]  ;;  %v3857_v28 = vpack.c.bf16 %v444_v21, %v434_v20  ;;  %v433_v29 = vld [vmem:[#allocation2 + $0x3d0] sm:$0xff]  ;;  %v443_v30 = vld [vmem:[#allocation2 + $0x420] sm:$0xff]  ;;  %v3787_v34 = vpack.c.bf16 %v481_v24, %v471_v23 }
  0xa1   : > { %3848 = vmatpush1.bf16.msra.mxu1 %v3847_v1  ;;  %v502_v31 = vld [vmem:[#allocation2 + $0x5f8] sm:$0xff]  ;;  %v464_v33 = vld [vmem:[#allocation2 + $0x4c8] sm:$0xff]  ;;  %v491_v35 = vld [vmem:[#allocation2 + $0x5a0] sm:$0xff]  ;;  %v3859_v37 = vpack.c.bf16 %v443_v30, %v433_v29 }
  0xa2   : > { %3850 = vmatprep.subr.bf16.mxu1 %v3849_v4  ;;  %v454_v32 = vld [vmem:[#allocation2 + $0x478] sm:$0xff]  ;;  %v501_v36 = vld [vmem:[#allocation2 + $0x5f0] sm:$0xff]  ;;  %v3789_v38 = vpack.c.bf16 %v502_v31, %v492_v27  ;;  %v512_v39 = vld [vmem:[#allocation2 + $0x648] sm:$0xff] }
  0xa3   : > { %3776 = vmatpush1.bf16.msra.mxu0 %v3775_v62  ;;  %v3861_v40 = vpack.c.bf16 %v464_v33, %v454_v32  ;;  %v453_v41 = vld [vmem:[#allocation2 + $0x470] sm:$0xff]  ;;  %v463_v42 = vld [vmem:[#allocation2 + $0x4c0] sm:$0xff]  ;;  %v522_v43 = vld [vmem:[#allocation2 + $0x698] sm:$0xff]  ;;  %v3791_v46 = vpack.c.bf16 %v501_v36, %v491_v35 }
  0xa4   : > { %3778 = vmatprep.subr.bf16.mxu0 %v3777_v2  ;;  %v474_v44 = vld [vmem:[#allocation2 + $0x518] sm:$0xff]  ;;  %v484_v45 = vld [vmem:[#allocation2 + $0x568] sm:$0xff]  ;;  %v511_v47 = vld [vmem:[#allocation2 + $0x640] sm:$0xff]  ;;  %v3863_v49 = vpack.c.bf16 %v463_v42, %v453_v41  ;;  %v3793_v51 = vpack.c.bf16 %v522_v43, %v512_v39 }
  0xa5   : > { %3852 = vmatpush1.bf16.msra.mxu1 %v3851_v13  ;;  %v521_v48 = vld [vmem:[#allocation2 + $0x690] sm:$0xff]  ;;  %v5510_v50 = vld [vmem:[%s6524_s0 + $0x8] sm:$0xff]  ;;  %v3865_v53 = vpack.c.bf16 %v484_v45, %v474_v44  ;;  %v483_v55 = vld [vmem:[#allocation2 + $0x560] sm:$0xff] }
  0xa6   : > { %3854 = vmatprep.subr.bf16.mxu1 %v3853_v16  ;;  %v532_v52 = vld [vmem:[#allocation2 + $0x6e8] sm:$0xff]  ;;  %v473_v54 = vld [vmem:[#allocation2 + $0x510] sm:$0xff]  ;;  %v542_v56 = vld [vmem:[#allocation2 + $0x738] sm:$0xff]  ;;  %833 = vmatprep.mubr.f32.mxu0 %v5510_v50  ;;  %v3795_v59 = vpack.c.bf16 %v521_v48, %v511_v47 }
  0xa7   : > { %3780 = vmatpush1.bf16.msra.mxu0 %v3779_v10  ;;  %v494_v57 = vld [vmem:[#allocation2 + $0x5b8] sm:$0xff]  ;;  %v504_v58 = vld [vmem:[#allocation2 + $0x608] sm:$0xff]  ;;  %975 = vmatprep.mubr.f32.mxu1 %v5510_v50  ;;  %v531_v60 = vld [vmem:[#allocation2 + $0x6e0] sm:$0xff]  ;;  %v3867_v62 = vpack.c.bf16 %v483_v55, %v473_v54  ;;  %v3797_v63 = vpack.c.bf16 %v542_v56, %v532_v52 }
  0xa8   : > { %3782 = vmatprep.subr.bf16.mxu0 %v3781_v14  ;;  %v541_v61 = vld [vmem:[#allocation2 + $0x730] sm:$0xff]  ;;  %v552_v0 = vld [vmem:[#allocation2 + $0x788] sm:$0xff]  ;;  %v3869_v1 = vpack.c.bf16 %v504_v58, %v494_v57  ;;  %v503_v3 = vld [vmem:[#allocation2 + $0x600] sm:$0xff] }
  0xa9   : > { %3856 = vmatpush1.bf16.msra.mxu1 %v3855_v25  ;;  %v493_v2 = vld [vmem:[#allocation2 + $0x5b0] sm:$0xff]  ;;  %v562_v4 = vld [vmem:[#allocation2 + $0x7d8] sm:$0xff]  ;;  %v524_v6 = vld [vmem:[#allocation2 + $0x6a8] sm:$0xff]  ;;  %v3799_v7 = vpack.c.bf16 %v541_v61, %v531_v60 }
  0xaa   : > { %3858 = vmatprep.subr.bf16.mxu1 %v3857_v28  ;;  %v514_v5 = vld [vmem:[#allocation2 + $0x658] sm:$0xff]  ;;  %v551_v8 = vld [vmem:[#allocation2 + $0x780] sm:$0xff]  ;;  %v561_v9 = vld [vmem:[#allocation2 + $0x7d0] sm:$0xff]  ;;  %v3871_v10 = vpack.c.bf16 %v503_v3, %v493_v2  ;;  %v3801_v11 = vpack.c.bf16 %v562_v4, %v552_v0 }
  0xab   : > { %3784 = vmatpush1.bf16.msra.mxu0 %v3783_v22  ;;  %v572_v12 = vld [vmem:[#allocation2 + $0x828] sm:$0xff]  ;;  %v3873_v13 = vpack.c.bf16 %v524_v6, %v514_v5  ;;  %v513_v14 = vld [vmem:[#allocation2 + $0x650] sm:$0xff]  ;;  %v523_v15 = vld [vmem:[#allocation2 + $0x6a0] sm:$0xff]  ;;  %v3803_v19 = vpack.c.bf16 %v561_v9, %v551_v8 }
  0xac   : > { %3786 = vmatprep.subr.bf16.mxu0 %v3785_v26  ;;  %v582_v16 = vld [vmem:[#allocation2 + $0x878] sm:$0xff]  ;;  %v544_v18 = vld [vmem:[#allocation2 + $0x748] sm:$0xff]  ;;  %v571_v20 = vld [vmem:[#allocation2 + $0x820] sm:$0xff]  ;;  %v3875_v22 = vpack.c.bf16 %v523_v15, %v513_v14 }
  0xad   : > { %3860 = vmatpush1.bf16.msra.mxu1 %v3859_v37  ;;  %v534_v17 = vld [vmem:[#allocation2 + $0x6f8] sm:$0xff]  ;;  %v581_v21 = vld [vmem:[#allocation2 + $0x870] sm:$0xff]  ;;  %v3805_v23 = vpack.c.bf16 %v582_v16, %v572_v12  ;;  %v592_v24 = vld [vmem:[#allocation2 + $0x8c8] sm:$0xff] }
  0xae   : > { %3862 = vmatprep.subr.bf16.mxu1 %v3861_v40  ;;  %v3877_v25 = vpack.c.bf16 %v544_v18, %v534_v17  ;;  %v533_v26 = vld [vmem:[#allocation2 + $0x6f0] sm:$0xff]  ;;  %v543_v27 = vld [vmem:[#allocation2 + $0x740] sm:$0xff]  ;;  %v602_v28 = vld [vmem:[#allocation2 + $0x918] sm:$0xff]  ;;  %v3807_v31 = vpack.c.bf16 %v581_v21, %v571_v20  ;;  %v5279_v18 = vmov 0.0  }
  0xaf   : > { %3788 = vmatpush1.bf16.msra.mxu0 %v3787_v34  ;;  %v554_v29 = vld [vmem:[#allocation2 + $0x798] sm:$0xff]  ;;  %v564_v30 = vld [vmem:[#allocation2 + $0x7e8] sm:$0xff]  ;;  %v591_v32 = vld [vmem:[#allocation2 + $0x8c0] sm:$0xff]  ;;  %v3879_v34 = vpack.c.bf16 %v543_v27, %v533_v26  ;;  %v3809_v35 = vpack.c.bf16 %v602_v28, %v592_v24 }
  0xb0   : > { %3790 = vmatprep.subr.bf16.mxu0 %v3789_v38  ;;  %v601_v33 = vld [vmem:[#allocation2 + $0x910] sm:$0xff]  ;;  %v612_v36 = vld [vmem:[#allocation2 + $0x968] sm:$0xff]  ;;  %v3881_v37 = vpack.c.bf16 %v564_v30, %v554_v29  ;;  %v563_v39 = vld [vmem:[#allocation2 + $0x7e0] sm:$0xff] }
  0xb1   : > { %3864 = vmatpush1.bf16.msra.mxu1 %v3863_v49  ;;  %v553_v38 = vld [vmem:[#allocation2 + $0x790] sm:$0xff]  ;;  %v622_v40 = vld [vmem:[#allocation2 + $0x9b8] sm:$0xff]  ;;  %v584_v42 = vld [vmem:[#allocation2 + $0x888] sm:$0xff]  ;;  %v3811_v43 = vpack.c.bf16 %v601_v33, %v591_v32 }
  0xb2   : > { %3866 = vmatprep.subr.bf16.mxu1 %v3865_v53  ;;  %v574_v41 = vld [vmem:[#allocation2 + $0x838] sm:$0xff]  ;;  %v611_v44 = vld [vmem:[#allocation2 + $0x960] sm:$0xff]  ;;  %v621_v45 = vld [vmem:[#allocation2 + $0x9b0] sm:$0xff]  ;;  %v3813_v47 = vpack.c.bf16 %v622_v40, %v612_v36 }
  0xb3   : > { %3792 = vmatpush1.bf16.msra.mxu0 %v3791_v46  ;;  %v3883_v46 = vpack.c.bf16 %v563_v39, %v553_v38  ;;  %v632_v48 = vld [vmem:[#allocation2 + $0xa08] sm:$0xff]  ;;  %v3885_v49 = vpack.c.bf16 %v584_v42, %v574_v41  ;;  %v583_v52 = vld [vmem:[#allocation2 + $0x880] sm:$0xff]  ;;  %v642_v53 = vld [vmem:[#allocation2 + $0xa58] sm:$0xff]  ;;  %v3815_v56 = vpack.c.bf16 %v621_v45, %v611_v44 }
  0xb4   : > { %3794 = vmatprep.subr.bf16.mxu0 %v3793_v51  ;;  %v573_v51 = vld [vmem:[#allocation2 + $0x830] sm:$0xff]  ;;  %v594_v54 = vld [vmem:[#allocation2 + $0x8d8] sm:$0xff]  ;;  %v604_v55 = vld [vmem:[#allocation2 + $0x928] sm:$0xff]  ;;  %v3817_v58 = vpack.c.bf16 %v642_v53, %v632_v48 }
  0xb5   : > { %3868 = vmatpush1.bf16.msra.mxu1 %v3867_v62  ;;  %v3887_v57 = vpack.c.bf16 %v583_v52, %v573_v51  ;;  %v641_v60 = vld [vmem:[#allocation2 + $0xa50] sm:$0xff]  ;;  %v652_v61 = vld [vmem:[#allocation2 + $0xaa8] sm:$0xff]  ;;  %v3889_v62 = vpack.c.bf16 %v604_v55, %v594_v54  ;;  %v614_v2 = vld [vmem:[#allocation2 + $0x978] sm:$0xff] }
  0xb6   : > { %3870 = vmatprep.subr.bf16.mxu1 %v3869_v1  ;;  %v593_v0 = vld [vmem:[#allocation2 + $0x8d0] sm:$0xff]  ;;  %v603_v1 = vld [vmem:[#allocation2 + $0x920] sm:$0xff]  ;;  %v624_v3 = vld [vmem:[#allocation2 + $0x9c8] sm:$0xff] }
  0xb7   : > { %3796 = vmatpush1.bf16.msra.mxu0 %v3795_v59  ;;  %v631_v59 = vld [vmem:[#allocation2 + $0xa00] sm:$0xff]  ;;  %v661_v8 = vld [vmem:[#allocation2 + $0xaf0] sm:$0xff]  ;;  %v672_v9 = vld [vmem:[#allocation2 + $0xb48] sm:$0xff]  ;;  %v3893_v12 = vpack.c.bf16 %v624_v3, %v614_v2 }
  0xb8   : > { %3798 = vmatprep.subr.bf16.mxu0 %v3797_v63  ;;  %v662_v63 = vld [vmem:[#allocation2 + $0xaf8] sm:$0xff]  ;;  %v5517_v4 = vld [vmem:[%s6524_s0] sm:$0xff]  ;;  %v3819_v5 = vpack.c.bf16 %v641_v60, %v631_v59  ;;  %v644_v16 = vld [vmem:[#allocation2 + $0xa68] sm:$0xff] }
  0xb9   : > { %3872 = vmatpush1.bf16.msra.mxu1 %v3871_v10  ;;  %v3821_v6 = vpack.c.bf16 %v662_v63, %v652_v61  ;;  %v3891_v10 = vpack.c.bf16 %v603_v1, %v593_v0  ;;  %v623_v14 = vld [vmem:[#allocation2 + $0x9c0] sm:$0xff]  ;;  %v634_v15 = vld [vmem:[#allocation2 + $0xa18] sm:$0xff]  ;;  %v681_v21 = vld [vmem:[#allocation2 + $0xb90] sm:$0xff] }
  0xba   : > { %3874 = vmatprep.subr.bf16.mxu1 %v3873_v13  ;;  %v613_v13 = vld [vmem:[#allocation2 + $0x970] sm:$0xff]  ;;  %v671_v20 = vld [vmem:[#allocation2 + $0xb40] sm:$0xff]  ;;  %v702_v24 = vld [vmem:[#allocation2 + $0xc38] sm:$0xff] }
  0xbb   : > { %3800 = vmatpush1.bf16.msra.mxu0 %v3799_v7  ;;  %v651_v7 = vld [vmem:[#allocation2 + $0xaa0] sm:$0xff]  ;;  %v633_v26 = vld [vmem:[#allocation2 + $0xa10] sm:$0xff]  ;;  %v654_v28 = vld [vmem:[#allocation2 + $0xab8] sm:$0xff]  ;;  %v3827_v30 = vpack.c.bf16 %v681_v21, %v671_v20 }
  0xbc   : > { %3802 = vmatprep.subr.bf16.mxu0 %v3801_v11  ;;  %v682_v11 = vld [vmem:[#allocation2 + $0xb98] sm:$0xff]  ;;  %v3823_v17 = vpack.c.bf16 %v661_v8, %v651_v7  ;;  %v643_v27 = vld [vmem:[#allocation2 + $0xa60] sm:$0xff]  ;;  %v664_v29 = vld [vmem:[#allocation2 + $0xb08] sm:$0xff] }
  0xbd   : > { %3876 = vmatpush1.bf16.msra.mxu1 %v3875_v22  ;;  %v692_v22 = vld [vmem:[#allocation2 + $0xbe8] sm:$0xff]  ;;  %v691_v32 = vld [vmem:[#allocation2 + $0xbe0] sm:$0xff]  ;;  %v701_v33 = vld [vmem:[#allocation2 + $0xc30] sm:$0xff] }
  0xbe   : > { %3878 = vmatprep.subr.bf16.mxu1 %v3877_v25  ;;  %v3897_v25 = vpack.c.bf16 %v644_v16, %v634_v15  ;;  %v326_v36 = vld [vmem:[#allocation2 + $0x78] sm:$0xff]  ;;  %v653_v38 = vld [vmem:[#allocation2 + $0xab0] sm:$0xff]  ;;  %v663_v39 = vld [vmem:[#allocation2 + $0xb00] sm:$0xff]  ;;  %v3831_v42 = vpack.c.bf16 %v701_v33, %v691_v32 }
  0xbf   : > { %3804 = vmatpush1.bf16.msra.mxu0 %v3803_v19  ;;  %v3825_v19 = vpack.c.bf16 %v682_v11, %v672_v9  ;;  %v674_v40 = vld [vmem:[#allocation2 + $0xb58] sm:$0xff]  ;;  %v684_v41 = vld [vmem:[#allocation2 + $0xba8] sm:$0xff]  ;;  %v315_v44 = vld [vmem:[#allocation2 + $0x20] sm:$0xff] }
  0xc0   : > { %3806 = vmatprep.subr.bf16.mxu0 %v3805_v23  ;;  %v3895_v23 = vpack.c.bf16 %v623_v14, %v613_v13  ;;  %v325_v45 = vld [vmem:[#allocation2 + $0x70] sm:$0xff]  ;;  %v346_v48 = vld [vmem:[#allocation2 + $0x118] sm:$0xff]  ;;  %v683_v52 = vld [vmem:[#allocation2 + $0xba0] sm:$0xff] }
  0xc1   : > { %3880 = vmatpush1.bf16.msra.mxu1 %v3879_v34  ;;  %v316_v34 = vld [vmem:[#allocation2 + $0x28] sm:$0xff]  ;;  %v673_v51 = vld [vmem:[#allocation2 + $0xb50] sm:$0xff]  ;;  %v694_v53 = vld [vmem:[#allocation2 + $0xbf8] sm:$0xff] }
  0xc2   : > { %3882 = vmatprep.subr.bf16.mxu1 %v3881_v37  ;;  %v3901_v37 = vpack.c.bf16 %v664_v29, %v654_v28  ;;  %v704_v54 = vld [vmem:[#allocation2 + $0xc48] sm:$0xff]  ;;  %v5526_v55 = vld [vmem:[%s6524_s0 + $0x10] sm:$0xff]  ;;  %v3907_v61 = vpack.c.bf16 %v683_v52, %v673_v51  ;;  %v703_v1 = vld [vmem:[#allocation2 + $0xc40] sm:$0xff] }
  0xc3   : > { %3808 = vmatpush1.bf16.msra.mxu0 %v3807_v31  ;;  %v3829_v31 = vpack.c.bf16 %v702_v24, %v692_v22  ;;  %v345_v59 = vld [vmem:[#allocation2 + $0x110] sm:$0xff]  ;;  %v356_v60 = vld [vmem:[#allocation2 + $0x168] sm:$0xff]  ;;  %v3909_v63 = vpack.c.bf16 %v704_v54, %v694_v53  ;;  %v318_v2 = vld [vmem:[#allocation2 + $0x38] sm:$0xff] }
  0xc4   : > { %3810 = vmatprep.subr.bf16.mxu0 %v3809_v35  ;;  %v3899_v35 = vpack.c.bf16 %v643_v27, %v633_v26  ;;  %v693_v0 = vld [vmem:[#allocation2 + $0xbf0] sm:$0xff]  ;;  %v328_v3 = vld [vmem:[#allocation2 + $0x88] sm:$0xff]  ;;  %v355_v7 = vld [vmem:[#allocation2 + $0x160] sm:$0xff] }
  0xc5   : > { %3884 = vmatpush1.bf16.msra.mxu1 %v3883_v46  ;;  %v336_v46 = vld [vmem:[#allocation2 + $0xc8] sm:$0xff]  ;;  %v365_v8 = vld [vmem:[#allocation2 + $0x1b0] sm:$0xff]  ;;  %v386_v11 = vld [vmem:[#allocation2 + $0x258] sm:$0xff] }
  0xc6   : > { %3886 = vmatprep.subr.bf16.mxu1 %v3885_v49  ;;  %v3905_v49 = vpack.c.bf16 %v684_v41, %v674_v40  ;;  %v376_v9 = vld [vmem:[#allocation2 + $0x208] sm:$0xff]  ;;  %v317_v13 = vld [vmem:[#allocation2 + $0x30] sm:$0xff]  ;;  %v327_v14 = vld [vmem:[#allocation2 + $0x80] sm:$0xff] }
  0xc7   : > { %3812 = vmatpush1.bf16.msra.mxu0 %v3811_v43  ;;  %v3913_v43 = vpack.c.bf16 %v326_v36, %v316_v34  ;;  %v338_v15 = vld [vmem:[#allocation2 + $0xd8] sm:$0xff]  ;;  %v348_v16 = vld [vmem:[#allocation2 + $0x128] sm:$0xff]  ;;  %v375_v20 = vld [vmem:[#allocation2 + $0x200] sm:$0xff] }
  0xc8   : > { %3814 = vmatprep.subr.bf16.mxu0 %v3813_v47  ;;  %v3903_v47 = vpack.c.bf16 %v663_v39, %v653_v38  ;;  %v385_v21 = vld [vmem:[#allocation2 + $0x250] sm:$0xff]  ;;  %v396_v22 = vld [vmem:[#allocation2 + $0x2a8] sm:$0xff]  ;;  %v406_v24 = vld [vmem:[#allocation2 + $0x2f8] sm:$0xff] }
  0xc9   : > { %3888 = vmatpush1.bf16.msra.mxu1 %v3887_v57  ;;  %v3917_v57 = vpack.c.bf16 %v346_v48, %v336_v46  ;;  %v337_v26 = vld [vmem:[#allocation2 + $0xd0] sm:$0xff]  ;;  %v347_v27 = vld [vmem:[#allocation2 + $0x120] sm:$0xff]  ;;  %v358_v28 = vld [vmem:[#allocation2 + $0x178] sm:$0xff] }
  0xca   : > { %3890 = vmatprep.subr.bf16.mxu1 %v3889_v62  ;;  %v366_v62 = vld [vmem:[#allocation2 + $0x1b8] sm:$0xff]  ;;  %v368_v29 = vld [vmem:[#allocation2 + $0x1c8] sm:$0xff]  ;;  %v395_v32 = vld [vmem:[#allocation2 + $0x2a0] sm:$0xff] }
  0xcb   : > { %3816 = vmatpush1.bf16.msra.mxu0 %v3815_v56  ;;  %v3915_v56 = vpack.c.bf16 %v325_v45, %v315_v44  ;;  %v405_v33 = vld [vmem:[#allocation2 + $0x2f0] sm:$0xff]  ;;  %v416_v34 = vld [vmem:[#allocation2 + $0x348] sm:$0xff]  ;;  %v426_v36 = vld [vmem:[#allocation2 + $0x398] sm:$0xff] }
  0xcc   : > { %3818 = vmatprep.subr.bf16.mxu0 %v3817_v58  ;;  %v335_v58 = vld [vmem:[#allocation2 + $0xc0] sm:$0xff]  ;;  %v357_v38 = vld [vmem:[#allocation2 + $0x170] sm:$0xff]  ;;  %v378_v40 = vld [vmem:[#allocation2 + $0x218] sm:$0xff] }
  0xcd   : > { %3892 = vmatpush1.bf16.msra.mxu1 %v3891_v10  ;;  %v3911_v10 = vpack.c.bf16 %v703_v1, %v693_v0  ;;  %v367_v39 = vld [vmem:[#allocation2 + $0x1c0] sm:$0xff]  ;;  %v388_v41 = vld [vmem:[#allocation2 + $0x268] sm:$0xff]  ;;  %v425_v45 = vld [vmem:[#allocation2 + $0x390] sm:$0xff] }
  0xce   : > { %834 = vmatmul.mubr.f32.vlgmr.msra.gmra.mrb[0].mxu0 %v5517_v4  ;;  %3894 = vmatprep.subr.bf16.mxu1 %v3893_v12  ;;  %v3993_v12 = vpack.c.bf16 %v328_v3, %v318_v2  ;;  %v415_v44 = vld [vmem:[#allocation2 + $0x340] sm:$0xff]  ;;  %v436_v46 = vld [vmem:[#allocation2 + $0x3e8] sm:$0xff]  ;;  %v446_v48 = vld [vmem:[#allocation2 + $0x438] sm:$0xff] }
  0xcf   : > { %3820 = vmatpush1.bf16.msra.mxu0 %v3819_v5  ;;  %904 = vmatprep.mubr.f32.mxu0 %v5279_v18  ;;  %v3919_v5 = vpack.c.bf16 %v345_v59, %v335_v58  ;;  %v377_v51 = vld [vmem:[#allocation2 + $0x210] sm:$0xff]  ;;  %v387_v52 = vld [vmem:[#allocation2 + $0x260] sm:$0xff]  ;;  %v398_v53 = vld [vmem:[#allocation2 + $0x2b8] sm:$0xff] }
  0xd0   : > { %3822 = vmatprep.subr.bf16.mxu0 %v3821_v6  ;;  %v3921_v6 = vpack.c.bf16 %v366_v62, %v356_v60  ;;  %v408_v54 = vld [vmem:[#allocation2 + $0x308] sm:$0xff]  ;;  %v445_v58 = vld [vmem:[#allocation2 + $0x430] sm:$0xff]  ;;  %v4007_v60 = vpack.c.bf16 %v387_v52, %v377_v51  ;;  %v407_v0 = vld [vmem:[#allocation2 + $0x300] sm:$0xff] }
  0xd1   : > { %3896 = vmatpush1.bf16.msra.mxu1 %v3895_v23  ;;  %v3995_v23 = vpack.c.bf16 %v327_v14, %v317_v13  ;;  %v456_v59 = vld [vmem:[#allocation2 + $0x488] sm:$0xff]  ;;  %v4009_v62 = vpack.c.bf16 %v408_v54, %v398_v53  ;;  %v418_v1 = vld [vmem:[#allocation2 + $0x358] sm:$0xff]  ;;  %v427_v13 = vld [vmem:[#allocation2 + $0x3a0] sm:$0xff] }
  0xd2   : > { %3898 = vmatprep.subr.bf16.mxu1 %v3897_v25  ;;  %v3997_v25 = vpack.c.bf16 %v348_v16, %v338_v15  ;;  %v428_v2 = vld [vmem:[#allocation2 + $0x3a8] sm:$0xff]  ;;  %v438_v14 = vld [vmem:[#allocation2 + $0x3f8] sm:$0xff]  ;;  %v487_v51 = vld [vmem:[#allocation2 + $0x580] sm:$0xff] }
  0xd3   : > { %3824 = vmatpush1.bf16.msra.mxu0 %v3823_v17  ;;  %v3923_v17 = vpack.c.bf16 %v365_v8, %v355_v7  ;;  %v465_v7 = vld [vmem:[#allocation2 + $0x4d0] sm:$0xff]  ;;  %v476_v8 = vld [vmem:[#allocation2 + $0x528] sm:$0xff]  ;;  %v498_v52 = vld [vmem:[#allocation2 + $0x5d8] sm:$0xff] }
  0xd4   : > { %3826 = vmatprep.subr.bf16.mxu0 %v3825_v19  ;;  %976 = vmatmul.mubr.f32.vlgmr.msra.gmra.mrb[0].mxu1 %v5517_v4  ;;  %v3925_v19 = vpack.c.bf16 %v386_v11, %v376_v9  ;;  %v4013_v11 = vpack.c.bf16 %v428_v2, %v418_v1  ;;  %v448_v15 = vld [vmem:[#allocation2 + $0x448] sm:$0xff] }
  0xd5   : > { %3900 = vmatpush1.bf16.msra.mxu1 %v3899_v35  ;;  %1046 = vmatprep.mubr.f32.mxu1 %v5279_v18  ;;  %v3999_v35 = vpack.c.bf16 %v347_v27, %v337_v26  ;;  %v447_v26 = vld [vmem:[#allocation2 + $0x440] sm:$0xff]  ;;  %v458_v27 = vld [vmem:[#allocation2 + $0x498] sm:$0xff]  ;;  %v508_v53 = vld [vmem:[#allocation2 + $0x628] sm:$0xff] }
  0xd6   : > { %3902 = vmatprep.subr.bf16.mxu1 %v3901_v37  ;;  %v4001_v37 = vpack.c.bf16 %v368_v29, %v358_v28  ;;  %v468_v28 = vld [vmem:[#allocation2 + $0x4e8] sm:$0xff] }
  0xd7   : > { %3828 = vmatpush1.bf16.msra.mxu0 %v3827_v30  ;;  %v3927_v30 = vpack.c.bf16 %v385_v21, %v375_v20  ;;  %v485_v20 = vld [vmem:[#allocation2 + $0x570] sm:$0xff]  ;;  %v496_v21 = vld [vmem:[#allocation2 + $0x5c8] sm:$0xff] }
  0xd8   : > { %3830 = vmatprep.subr.bf16.mxu0 %v3829_v31  ;;  %v3929_v31 = vpack.c.bf16 %v406_v24, %v396_v22  ;;  %v4017_v24 = vpack.c.bf16 %v448_v15, %v438_v14  ;;  %v528_v1 = vld [vmem:[#allocation2 + $0x6c8] sm:$0xff] }
  0xd9   : > { %3904 = vmatpush1.bf16.msra.mxu1 %v3903_v47  ;;  %v4003_v47 = vpack.c.bf16 %v367_v39, %v357_v38  ;;  %v467_v38 = vld [vmem:[#allocation2 + $0x4e0] sm:$0xff]  ;;  %v478_v39 = vld [vmem:[#allocation2 + $0x538] sm:$0xff]  ;;  %v548_v14 = vld [vmem:[#allocation2 + $0x768] sm:$0xff] }
  0xda   : > { %3906 = vmatprep.subr.bf16.mxu1 %v3905_v49  ;;  %v4005_v49 = vpack.c.bf16 %v388_v41, %v378_v40  ;;  %v488_v40 = vld [vmem:[#allocation2 + $0x588] sm:$0xff] }
  0xdb   : > { %3832 = vmatpush1.bf16.msra.mxu0 %v3831_v42  ;;  %v3931_v42 = vpack.c.bf16 %v405_v33, %v395_v32  ;;  %v505_v32 = vld [vmem:[#allocation2 + $0x610] sm:$0xff]  ;;  %v516_v33 = vld [vmem:[#allocation2 + $0x668] sm:$0xff] }
  0xdc   : > { %3914 = vmatprep.subr.bf16.mxu0 %v3913_v43  ;;  %v3933_v43 = vpack.c.bf16 %v426_v36, %v416_v34  ;;  %v4021_v36 = vpack.c.bf16 %v468_v28, %v458_v27  ;;  %v568_v27 = vld [vmem:[#allocation2 + $0x808] sm:$0xff] }
  0xdd   : > { %3908 = vmatpush1.bf16.msra.mxu1 %v3907_v61  ;;  %v466_v61 = vld [vmem:[#allocation2 + $0x4d8] sm:$0xff] }
  0xde   : > { %3559 = vmatmul.mubr.msk.f32.vlgmr.msra.gmra.mrb[0].mxu0 %vm765_vm0, %v5526_v55  ;;  %3910 = vmatprep.subr.bf16.mxu1 %v3909_v63  ;;  %v397_v63 = vld [vmem:[#allocation2 + $0x2b0] sm:$0xff] }
  0xdf   : > { %3916 = vmatpush1.bf16.msra.mxu0 %v3915_v56  ;;  %1117 = vmatprep.mubr.f32.mxu0 %v5510_v50  ;;  %v3937_v56 = vpack.c.bf16 %v446_v48, %v436_v46  ;;  %v4011_v9 = vpack.c.bf16 %v407_v0, %v397_v63  ;;  %v4025_v48 = vpack.c.bf16 %v488_v40, %v478_v39  ;;  %v507_v63 = vld [vmem:[#allocation2 + $0x620] sm:$0xff]  ;;  %v518_v0 = vld [vmem:[#allocation2 + $0x678] sm:$0xff]  ;;  %v588_v39 = vld [vmem:[#allocation2 + $0x8a8] sm:$0xff] }
  0xe0   : > { %3918 = vmatprep.subr.bf16.mxu0 %v3917_v57  ;;  %v435_v57 = vld [vmem:[#allocation2 + $0x3e0] sm:$0xff] }
  0xe1   : > { %3912 = vmatpush1.bf16.msra.mxu1 %v3911_v10  ;;  %v3939_v3 = vpack.c.bf16 %v445_v58, %v435_v57  ;;  %v486_v10 = vld [vmem:[#allocation2 + $0x578] sm:$0xff]  ;;  %v545_v57 = vld [vmem:[#allocation2 + $0x750] sm:$0xff]  ;;  %v556_v58 = vld [vmem:[#allocation2 + $0x7a8] sm:$0xff] }
  0xe2   : > { %3994 = vmatprep.subr.bf16.mxu1 %v3993_v12  ;;  %v417_v12 = vld [vmem:[#allocation2 + $0x350] sm:$0xff] }
  0xe3   : > { %3920 = vmatpush1.bf16.msra.mxu0 %v3919_v5  ;;  %v3941_v5 = vpack.c.bf16 %v466_v61, %v456_v59  ;;  %v4015_v22 = vpack.c.bf16 %v427_v13, %v417_v12  ;;  %v4029_v61 = vpack.c.bf16 %v508_v53, %v498_v52  ;;  %v527_v12 = vld [vmem:[#allocation2 + $0x6c0] sm:$0xff]  ;;  %v538_v13 = vld [vmem:[#allocation2 + $0x718] sm:$0xff]  ;;  %v608_v52 = vld [vmem:[#allocation2 + $0x948] sm:$0xff] }
  0xe4   : > { %3922 = vmatprep.subr.bf16.mxu0 %v3921_v6  ;;  %3560 = vmatmul.mubr.msk.f32.vlgmr.msra.gmra.mrb[0].mxu1 %vm765_vm0, %v5526_v55  ;;  %v455_v6 = vld [vmem:[#allocation2 + $0x480] sm:$0xff] }
  0xe5   : > { %3996 = vmatpush1.bf16.msra.mxu1 %v3995_v23  ;;  %1259 = vmatprep.mubr.f32.mxu1 %v5510_v50  ;;  %v3935_v50 = vpack.c.bf16 %v425_v45, %v415_v44  ;;  %v3943_v16 = vpack.c.bf16 %v465_v7, %v455_v6  ;;  %v506_v23 = vld [vmem:[#allocation2 + $0x618] sm:$0xff]  ;;  %v525_v44 = vld [vmem:[#allocation2 + $0x6b0] sm:$0xff]  ;;  %v536_v45 = vld [vmem:[#allocation2 + $0x708] sm:$0xff] }
  0xe6   : > { %3998 = vmatprep.subr.bf16.mxu1 %v3997_v25  ;;  %v437_v25 = vld [vmem:[#allocation2 + $0x3f0] sm:$0xff]  ;;  %v576_v7 = vld [vmem:[#allocation2 + $0x848] sm:$0xff] }
  0xe7   : > { %3924 = vmatpush1.bf16.msra.mxu0 %v3923_v17  ;;  %v3945_v17 = vpack.c.bf16 %v486_v10, %v476_v8  ;;  %v4019_v34 = vpack.c.bf16 %v447_v26, %v437_v25  ;;  %v565_v6 = vld [vmem:[#allocation2 + $0x7f0] sm:$0xff]  ;;  %v4033_v10 = vpack.c.bf16 %v528_v1, %v518_v0  ;;  %v547_v25 = vld [vmem:[#allocation2 + $0x760] sm:$0xff]  ;;  %v558_v26 = vld [vmem:[#allocation2 + $0x7b8] sm:$0xff] }
  0xe8   : > { %3926 = vmatprep.subr.bf16.mxu0 %v3925_v19  ;;  %v475_v19 = vld [vmem:[#allocation2 + $0x520] sm:$0xff]  ;;  %v628_v0 = vld [vmem:[#allocation2 + $0x9e8] sm:$0xff] }
  0xe9   : > { %4000 = vmatpush1.bf16.msra.mxu1 %v3999_v35  ;;  %v3947_v29 = vpack.c.bf16 %v485_v20, %v475_v19  ;;  %v526_v35 = vld [vmem:[#allocation2 + $0x6b8] sm:$0xff]  ;;  %v585_v19 = vld [vmem:[#allocation2 + $0x890] sm:$0xff]  ;;  %v596_v20 = vld [vmem:[#allocation2 + $0x8e8] sm:$0xff] }
  0xea   : > { %4002 = vmatprep.subr.bf16.mxu1 %v4001_v37  ;;  %v457_v37 = vld [vmem:[#allocation2 + $0x490] sm:$0xff] }
  0xeb   : > { %3928 = vmatpush1.bf16.msra.mxu0 %v3927_v30  ;;  %v3949_v30 = vpack.c.bf16 %v506_v23, %v496_v21  ;;  %v4023_v46 = vpack.c.bf16 %v467_v38, %v457_v37  ;;  %v4037_v23 = vpack.c.bf16 %v548_v14, %v538_v13  ;;  %v567_v37 = vld [vmem:[#allocation2 + $0x800] sm:$0xff]  ;;  %v578_v38 = vld [vmem:[#allocation2 + $0x858] sm:$0xff]  ;;  %v648_v13 = vld [vmem:[#allocation2 + $0xa88] sm:$0xff] }
  0xec   : > { %3930 = vmatprep.subr.bf16.mxu0 %v3929_v31  ;;  %v495_v31 = vld [vmem:[#allocation2 + $0x5c0] sm:$0xff] }
  0xed   : > { %4004 = vmatpush1.bf16.msra.mxu1 %v4003_v47  ;;  %v3951_v41 = vpack.c.bf16 %v505_v32, %v495_v31  ;;  %v546_v47 = vld [vmem:[#allocation2 + $0x758] sm:$0xff]  ;;  %v605_v31 = vld [vmem:[#allocation2 + $0x930] sm:$0xff]  ;;  %v616_v32 = vld [vmem:[#allocation2 + $0x988] sm:$0xff] }
  0xee   : > { %4006 = vmatprep.subr.bf16.mxu1 %v4005_v49  ;;  %v477_v49 = vld [vmem:[#allocation2 + $0x530] sm:$0xff] }
  0xef   : > { %3932 = vmatpush1.bf16.msra.mxu0 %v3931_v42  ;;  %v3953_v42 = vpack.c.bf16 %v526_v35, %v516_v33  ;;  %v4027_v59 = vpack.c.bf16 %v487_v51, %v477_v49  ;;  %v4041_v35 = vpack.c.bf16 %v568_v27, %v558_v26  ;;  %v587_v49 = vld [vmem:[#allocation2 + $0x8a0] sm:$0xff]  ;;  %v598_v51 = vld [vmem:[#allocation2 + $0x8f8] sm:$0xff]  ;;  %v668_v26 = vld [vmem:[#allocation2 + $0xb28] sm:$0xff] }
  0xf0   : > { %3934 = vmatprep.subr.bf16.mxu0 %v3933_v43  ;;  %v515_v43 = vld [vmem:[#allocation2 + $0x660] sm:$0xff] }
  0xf1   : > { %4008 = vmatpush1.bf16.msra.mxu1 %v4007_v60  ;;  %v3955_v54 = vpack.c.bf16 %v525_v44, %v515_v43  ;;  %v566_v60 = vld [vmem:[#allocation2 + $0x7f8] sm:$0xff]  ;;  %v625_v43 = vld [vmem:[#allocation2 + $0x9d0] sm:$0xff]  ;;  %v636_v44 = vld [vmem:[#allocation2 + $0xa28] sm:$0xff] }
  0xf2   : > { %4010 = vmatprep.subr.bf16.mxu1 %v4009_v62  ;;  %v497_v62 = vld [vmem:[#allocation2 + $0x5d0] sm:$0xff] }
  0xf3   : > { %3936 = vmatpush1.bf16.msra.mxu0 %v3935_v50  ;;  %v3957_v50 = vpack.c.bf16 %v546_v47, %v536_v45  ;;  %v4031_v8 = vpack.c.bf16 %v507_v63, %v497_v62  ;;  %v4045_v47 = vpack.c.bf16 %v588_v39, %v578_v38  ;;  %v607_v62 = vld [vmem:[#allocation2 + $0x940] sm:$0xff]  ;;  %v618_v63 = vld [vmem:[#allocation2 + $0x998] sm:$0xff]  ;;  %v688_v38 = vld [vmem:[#allocation2 + $0xbc8] sm:$0xff] }
  0xf4   : > { %3938 = vmatprep.subr.bf16.mxu0 %v3937_v56  ;;  %v535_v56 = vld [vmem:[#allocation2 + $0x700] sm:$0xff] }
  0xf5   : > { %4012 = vmatpush1.bf16.msra.mxu1 %v4011_v9  ;;  %v3959_v2 = vpack.c.bf16 %v545_v57, %v535_v56  ;;  %v586_v9 = vld [vmem:[#allocation2 + $0x898] sm:$0xff]  ;;  %v645_v56 = vld [vmem:[#allocation2 + $0xa70] sm:$0xff]  ;;  %v656_v57 = vld [vmem:[#allocation2 + $0xac8] sm:$0xff] }
  0xf6   : > { %4014 = vmatprep.subr.bf16.mxu1 %v4013_v11  ;;  %v517_v11 = vld [vmem:[#allocation2 + $0x670] sm:$0xff] }
  0xf7   : > { %3940 = vmatpush1.bf16.msra.mxu0 %v3939_v3  ;;  %v3961_v3 = vpack.c.bf16 %v566_v60, %v556_v58  ;;  %v4035_v21 = vpack.c.bf16 %v527_v12, %v517_v11  ;;  %v4049_v60 = vpack.c.bf16 %v608_v52, %v598_v51  ;;  %v627_v11 = vld [vmem:[#allocation2 + $0x9e0] sm:$0xff]  ;;  %v638_v12 = vld [vmem:[#allocation2 + $0xa38] sm:$0xff]  ;;  %v708_v51 = vld [vmem:[#allocation2 + $0xc68] sm:$0xff] }
  0xf8   : > { %3942 = vmatprep.subr.bf16.mxu0 %v3941_v5  ;;  %v555_v5 = vld [vmem:[#allocation2 + $0x7a0] sm:$0xff] }
  0xf9   : > { %4016 = vmatpush1.bf16.msra.mxu1 %v4015_v22  ;;  %v3963_v15 = vpack.c.bf16 %v565_v6, %v555_v5  ;;  %v606_v22 = vld [vmem:[#allocation2 + $0x938] sm:$0xff]  ;;  %v665_v5 = vld [vmem:[#allocation2 + $0xb10] sm:$0xff]  ;;  %v676_v6 = vld [vmem:[#allocation2 + $0xb68] sm:$0xff] }
  0xfa   : > { %4018 = vmatprep.subr.bf16.mxu1 %v4017_v24  ;;  %v537_v24 = vld [vmem:[#allocation2 + $0x710] sm:$0xff] }
  0xfb   : > { %3944 = vmatpush1.bf16.msra.mxu0 %v3943_v16  ;;  %v3965_v16 = vpack.c.bf16 %v586_v9, %v576_v7  ;;  %v4039_v33 = vpack.c.bf16 %v547_v25, %v537_v24  ;;  %v4053_v9 = vpack.c.bf16 %v628_v0, %v618_v63  ;;  %v647_v24 = vld [vmem:[#allocation2 + $0xa80] sm:$0xff]  ;;  %v658_v25 = vld [vmem:[#allocation2 + $0xad8] sm:$0xff]  ;;  %v5107_v0 = vld [vmem:[%s6524_s0 + $0x8] sm:$0xff] }
  0xfc   : > { %3946 = vmatprep.subr.bf16.mxu0 %v3945_v17  ;;  %v575_v17 = vld [vmem:[#allocation2 + $0x840] sm:$0xff] }
  0xfd   : > { %4020 = vmatpush1.bf16.msra.mxu1 %v4019_v34  ;;  %v3967_v28 = vpack.c.bf16 %v585_v19, %v575_v17  ;;  %v626_v34 = vld [vmem:[#allocation2 + $0x9d8] sm:$0xff]  ;;  %v685_v17 = vld [vmem:[#allocation2 + $0xbb0] sm:$0xff]  ;;  %v696_v19 = vld [vmem:[#allocation2 + $0xc08] sm:$0xff] }
  0xfe   : > { %4022 = vmatprep.subr.bf16.mxu1 %v4021_v36  ;;  %v557_v36 = vld [vmem:[#allocation2 + $0x7b0] sm:$0xff] }
  0xff   : > { %3948 = vmatpush1.bf16.msra.mxu0 %v3947_v29  ;;  %v3969_v29 = vpack.c.bf16 %v606_v22, %v596_v20  ;;  %v4043_v45 = vpack.c.bf16 %v567_v37, %v557_v36  ;;  %v4057_v22 = vpack.c.bf16 %v648_v13, %v638_v12  ;;  %v667_v36 = vld [vmem:[#allocation2 + $0xb20] sm:$0xff]  ;;  %v678_v37 = vld [vmem:[#allocation2 + $0xb78] sm:$0xff]  ;;  %v1565_v12 = vld [vmem:[%s5501_s1 + $0x80] sm:$0xff] }
 0x100   : > { %3950 = vmatprep.subr.bf16.mxu0 %v3949_v30  ;;  %v595_v30 = vld [vmem:[#allocation2 + $0x8e0] sm:$0xff] }
 0x101   : > { %4024 = vmatpush1.bf16.msra.mxu1 %v4023_v46  ;;  %v3971_v40 = vpack.c.bf16 %v605_v31, %v595_v30  ;;  %v646_v46 = vld [vmem:[#allocation2 + $0xa78] sm:$0xff]  ;;  %v705_v30 = vld [vmem:[#allocation2 + $0xc50] sm:$0xff]  ;;  %v320_v31 = vld [vmem:[#allocation2 + $0x48] sm:$0xff] }
 0x102   : > { %4026 = vmatprep.subr.bf16.mxu1 %v4025_v48  ;;  %v577_v48 = vld [vmem:[#allocation2 + $0x850] sm:$0xff] }
 0x103   : > { %3952 = vmatpush1.bf16.msra.mxu0 %v3951_v41  ;;  %v3973_v41 = vpack.c.bf16 %v626_v34, %v616_v32  ;;  %v4047_v58 = vpack.c.bf16 %v587_v49, %v577_v48  ;;  %v4061_v34 = vpack.c.bf16 %v668_v26, %v658_v25  ;;  %v687_v48 = vld [vmem:[#allocation2 + $0xbc0] sm:$0xff]  ;;  %v698_v49 = vld [vmem:[#allocation2 + $0xc18] sm:$0xff] }
 0x104   : > { %3954 = vmatprep.subr.bf16.mxu0 %v3953_v42  ;;  %v615_v42 = vld [vmem:[#allocation2 + $0x980] sm:$0xff] }
 0x105   : > { %4028 = vmatpush1.bf16.msra.mxu1 %v4027_v59  ;;  %v3975_v53 = vpack.c.bf16 %v625_v43, %v615_v42  ;;  %v666_v59 = vld [vmem:[#allocation2 + $0xb18] sm:$0xff]  ;;  %v329_v42 = vld [vmem:[#allocation2 + $0x90] sm:$0xff]  ;;  %v340_v43 = vld [vmem:[#allocation2 + $0xe8] sm:$0xff] }
 0x106   : > { %4030 = vmatprep.subr.bf16.mxu1 %v4029_v61  ;;  %v597_v61 = vld [vmem:[#allocation2 + $0x8f0] sm:$0xff]  ;;  %v1575_v25 = vld [vmem:[%s5501_s1 + $0xd0] sm:$0xff] }
 0x107   : > { %3956 = vmatpush1.bf16.msra.mxu0 %v3955_v54  ;;  %v3977_v54 = vpack.c.bf16 %v646_v46, %v636_v44  ;;  %v4051_v7 = vpack.c.bf16 %v607_v62, %v597_v61  ;;  %v4065_v46 = vpack.c.bf16 %v688_v38, %v678_v37  ;;  %v1550_v61 = vld [vmem:[%s5501_s1 + $0x8] sm:$0xff]  ;;  %v1555_v62 = vld [vmem:[%s5501_s1 + $0x30] sm:$0xff]  ;;  %v1585_v37 = vld [vmem:[%s5501_s1 + $0x120] sm:$0xff] }
 0x108   : > { %3958 = vmatprep.subr.bf16.mxu0 %v3957_v50  ;;  %v635_v50 = vld [vmem:[#allocation2 + $0xa20] sm:$0xff] }
 0x109   : > { %4032 = vmatpush1.bf16.msra.mxu1 %v4031_v8  ;;  %v3979_v1 = vpack.c.bf16 %v645_v56, %v635_v50  ;;  %v686_v8 = vld [vmem:[#allocation2 + $0xbb8] sm:$0xff]  ;;  %v360_v50 = vld [vmem:[#allocation2 + $0x188] sm:$0xff] }
 0x10a   : > { %4034 = vmatprep.subr.bf16.mxu1 %v4033_v10  ;;  %v617_v10 = vld [vmem:[#allocation2 + $0x990] sm:$0xff] }
 0x10b   : > { %3960 = vmatpush1.bf16.msra.mxu0 %v3959_v2  ;;  %v3981_v2 = vpack.c.bf16 %v666_v59, %v656_v57  ;;  %v4055_v20 = vpack.c.bf16 %v627_v11, %v617_v10  ;;  %v370_v57 = vld [vmem:[#allocation2 + $0x1d8] sm:$0xff]  ;;  %v697_v59 = vld [vmem:[#allocation2 + $0xc10] sm:$0xff]  ;;  %v1560_v11 = vld [vmem:[%s5501_s1 + $0x58] sm:$0xff] }
 0x10c   : > { %3962 = vmatprep.subr.bf16.mxu0 %v3961_v3  ;;  %v655_v3 = vld [vmem:[#allocation2 + $0xac0] sm:$0xff]  ;;  %v1554_v10 = vld [vmem:[%s5501_s1 + $0x28] sm:$0xff] }
 0x10d   : > { %4036 = vmatpush1.bf16.msra.mxu1 %v4035_v21  ;;  %v3983_v14 = vpack.c.bf16 %v665_v5, %v655_v3  ;;  %v706_v21 = vld [vmem:[#allocation2 + $0xc58] sm:$0xff]  ;;  %v369_v3 = vld [vmem:[#allocation2 + $0x1d0] sm:$0xff]  ;;  %v380_v5 = vld [vmem:[#allocation2 + $0x228] sm:$0xff] }
 0x10e   : > { %4038 = vmatprep.subr.bf16.mxu1 %v4037_v23  ;;  %v637_v23 = vld [vmem:[#allocation2 + $0xa30] sm:$0xff] }
 0x10f   : > { %3964 = vmatpush1.bf16.msra.mxu0 %v3963_v15  ;;  %v3985_v15 = vpack.c.bf16 %v686_v8, %v676_v6  ;;  %v4059_v32 = vpack.c.bf16 %v647_v24, %v637_v23  ;;  %v4153_v8 = vpack.c.bf16 %v1555_v62, %v1550_v61  ;;  %v1564_v23 = vld [vmem:[%s5501_s1 + $0x78] sm:$0xff]  ;;  %v1570_v24 = vld [vmem:[%s5501_s1 + $0xa8] sm:$0xff] }
 0x110   : > { %3966 = vmatprep.subr.bf16.mxu0 %v3965_v16  ;;  %v675_v16 = vld [vmem:[#allocation2 + $0xb60] sm:$0xff] }
 0x111   : > { %4040 = vmatpush1.bf16.msra.mxu1 %v4039_v33  ;;  %v3987_v27 = vpack.c.bf16 %v685_v17, %v675_v16  ;;  %v330_v33 = vld [vmem:[#allocation2 + $0x98] sm:$0xff]  ;;  %v389_v16 = vld [vmem:[#allocation2 + $0x270] sm:$0xff]  ;;  %v400_v17 = vld [vmem:[#allocation2 + $0x2c8] sm:$0xff] }
 0x112   : > { %4042 = vmatprep.subr.bf16.mxu1 %v4041_v35  ;;  %v657_v35 = vld [vmem:[#allocation2 + $0xad0] sm:$0xff] }
 0x113   : > { %3968 = vmatpush1.bf16.msra.mxu0 %v3967_v28  ;;  %v3989_v28 = vpack.c.bf16 %v706_v21, %v696_v19  ;;  %v4063_v44 = vpack.c.bf16 %v667_v36, %v657_v35  ;;  %v4157_v21 = vpack.c.bf16 %v1565_v12, %v1560_v11  ;;  %v1574_v35 = vld [vmem:[%s5501_s1 + $0xc8] sm:$0xff]  ;;  %v1580_v36 = vld [vmem:[%s5501_s1 + $0xf8] sm:$0xff] }
 0x114   : > { %3970 = vmatprep.subr.bf16.mxu0 %v3969_v29  ;;  %v695_v29 = vld [vmem:[#allocation2 + $0xc00] sm:$0xff] }
 0x115   : > { %4044 = vmatpush1.bf16.msra.mxu1 %v4043_v45  ;;  %v3991_v39 = vpack.c.bf16 %v705_v30, %v695_v29  ;;  %v350_v45 = vld [vmem:[#allocation2 + $0x138] sm:$0xff]  ;;  %v409_v29 = vld [vmem:[#allocation2 + $0x310] sm:$0xff]  ;;  %v420_v30 = vld [vmem:[#allocation2 + $0x368] sm:$0xff] }
 0x116   : > { %4046 = vmatprep.subr.bf16.mxu1 %v4045_v47  ;;  %v677_v47 = vld [vmem:[#allocation2 + $0xb70] sm:$0xff]  ;;  %v4077_v52 = vpack.c.bf16 %v350_v45, %v340_v43  ;;  %v450_v43 = vld [vmem:[#allocation2 + $0x458] sm:$0xff]  ;;  %v479_v12 = vld [vmem:[#allocation2 + $0x540] sm:$0xff] }
 0x117   : > { %3972 = vmatpush1.bf16.msra.mxu0 %v3971_v40  ;;  %v4073_v40 = vpack.c.bf16 %v330_v33, %v320_v31  ;;  %v4067_v56 = vpack.c.bf16 %v687_v48, %v677_v47  ;;  %v4161_v33 = vpack.c.bf16 %v1575_v25, %v1570_v24  ;;  %v1579_v45 = vld [vmem:[%s5501_s1 + $0xf0] sm:$0xff]  ;;  %v1590_v47 = vld [vmem:[%s5501_s1 + $0x148] sm:$0xff] }
 0x118   : > { %3974 = vmatprep.subr.bf16.mxu0 %v3973_v41  ;;  %v319_v41 = vld [vmem:[#allocation2 + $0x40] sm:$0xff] }
 0x119   : > { %4048 = vmatpush1.bf16.msra.mxu1 %v4047_v58  ;;  %v4069_v58 = vpack.c.bf16 %v708_v51, %v698_v49  ;;  %v1595_v48 = vld [vmem:[%s5501_s1 + $0x170] sm:$0xff] }
 0x11a   : > { %4050 = vmatprep.subr.bf16.mxu1 %v4049_v60  ;;  %v707_v60 = vld [vmem:[#allocation2 + $0xc60] sm:$0xff] }
 0x11b   : > { %3976 = vmatpush1.bf16.msra.mxu0 %v3975_v53  ;;  %v339_v53 = vld [vmem:[#allocation2 + $0xe0] sm:$0xff]  ;;  %v4071_v6 = vpack.c.bf16 %v707_v60, %v697_v59  ;;  %v1605_v60 = vld [vmem:[%s5501_s1 + $0x1c0] sm:$0xff] }
 0x11c   : > { %3978 = vmatprep.subr.bf16.mxu0 %v3977_v54  ;;  %v349_v54 = vld [vmem:[#allocation2 + $0x130] sm:$0xff]  ;;  %v1600_v59 = vld [vmem:[%s5501_s1 + $0x198] sm:$0xff] }
 0x11d   : > { %4052 = vmatpush1.bf16.msra.mxu1 %v4051_v7  ;;  %v4079_v63 = vpack.c.bf16 %v349_v54, %v339_v53  ;;  %v390_v7 = vld [vmem:[#allocation2 + $0x278] sm:$0xff]  ;;  %v460_v53 = vld [vmem:[#allocation2 + $0x4a8] sm:$0xff]  ;;  %v499_v25 = vld [vmem:[#allocation2 + $0x5e0] sm:$0xff] }
 0x11e   : > { %1118 = vmatmul.mubr.f32.vlgmr.msra.gmra.mrb[2].mxu0 %v5517_v4  ;;  %4054 = vmatprep.subr.bf16.mxu1 %v4053_v9  ;;  %v1549_v9 = vld [vmem:[%s5501_s1] sm:$0xff] }
 0x11f   : > { %3980 = vmatpush1.bf16.msra.mxu0 %v3979_v1  ;;  %1188 = vmatprep.mubr.f32.mxu0 %v5279_v18  ;;  %v4081_v1 = vpack.c.bf16 %v370_v57, %v360_v50  ;;  %v4155_v19 = vpack.c.bf16 %v1554_v10, %v1549_v9  ;;  %v470_v50 = vld [vmem:[#allocation2 + $0x4f8] sm:$0xff]  ;;  %v1589_v57 = vld [vmem:[%s5501_s1 + $0x140] sm:$0xff] }
 0x120   : > { %3982 = vmatprep.subr.bf16.mxu0 %v3981_v2  ;;  %v359_v2 = vld [vmem:[#allocation2 + $0x180] sm:$0xff]  ;;  %v4101_v62 = vpack.c.bf16 %v470_v50, %v460_v53 }
 0x121   : > { %4056 = vmatpush1.bf16.msra.mxu1 %v4055_v20  ;;  %v4083_v13 = vpack.c.bf16 %v369_v3, %v359_v2  ;;  %v410_v20 = vld [vmem:[#allocation2 + $0x318] sm:$0xff]  ;;  %v1644_v50 = vld [vmem:[%s5501_s1 + $0x2f8] sm:$0xff] }
 0x122   : > { %4058 = vmatprep.subr.bf16.mxu1 %v4057_v22  ;;  %v1559_v22 = vld [vmem:[%s5501_s1 + $0x50] sm:$0xff] }
 0x123   : > { %3984 = vmatpush1.bf16.msra.mxu0 %v3983_v14  ;;  %v4085_v14 = vpack.c.bf16 %v390_v7, %v380_v5  ;;  %v4159_v31 = vpack.c.bf16 %v1564_v23, %v1559_v22  ;;  %v490_v3 = vld [vmem:[#allocation2 + $0x598] sm:$0xff]  ;;  %v4173_v5 = vpack.c.bf16 %v1605_v60, %v1600_v59  ;;  %v1604_v7 = vld [vmem:[%s5501_s1 + $0x1b8] sm:$0xff]  ;;  %v1625_v22 = vld [vmem:[%s5501_s1 + $0x260] sm:$0xff] }
 0x124   : > { %3986 = vmatprep.subr.bf16.mxu0 %v3985_v15  ;;  %1260 = vmatmul.mubr.f32.vlgmr.msra.gmra.mrb[2].mxu1 %v5517_v4  ;;  %v4075_v4 = vpack.c.bf16 %v329_v42, %v319_v41  ;;  %v379_v15 = vld [vmem:[#allocation2 + $0x220] sm:$0xff]  ;;  %v440_v41 = vld [vmem:[#allocation2 + $0x408] sm:$0xff] }
 0x125   : > { %4060 = vmatpush1.bf16.msra.mxu1 %v4059_v32  ;;  %1330 = vmatprep.mubr.f32.mxu1 %v5279_v18  ;;  %v4087_v26 = vpack.c.bf16 %v389_v16, %v379_v15  ;;  %v430_v32 = vld [vmem:[#allocation2 + $0x3b8] sm:$0xff]  ;;  %v4097_v51 = vpack.c.bf16 %v450_v43, %v440_v41  ;;  %v559_v60 = vld [vmem:[#allocation2 + $0x7c0] sm:$0xff] }
 0x126   : > { %4062 = vmatprep.subr.bf16.mxu1 %v4061_v34  ;;  %v1569_v34 = vld [vmem:[%s5501_s1 + $0xa0] sm:$0xff]  ;;  %v4093_v38 = vpack.c.bf16 %v430_v32, %v420_v30  ;;  %v1615_v9 = vld [vmem:[%s5501_s1 + $0x210] sm:$0xff]  ;;  %v1624_v32 = vld [vmem:[%s5501_s1 + $0x258] sm:$0xff] }
 0x127   : > { %3988 = vmatpush1.bf16.msra.mxu0 %v3987_v27  ;;  %v4089_v27 = vpack.c.bf16 %v410_v20, %v400_v17  ;;  %v4163_v42 = vpack.c.bf16 %v1574_v35, %v1569_v34  ;;  %v510_v16 = vld [vmem:[#allocation2 + $0x638] sm:$0xff] }
 0x128   : > { %3990 = vmatprep.subr.bf16.mxu0 %v3989_v28  ;;  %v399_v28 = vld [vmem:[#allocation2 + $0x2c0] sm:$0xff]  ;;  %v1614_v20 = vld [vmem:[%s5501_s1 + $0x208] sm:$0xff] }
 0x129   : > { %4064 = vmatpush1.bf16.msra.mxu1 %v4063_v44  ;;  %v4165_v44 = vpack.c.bf16 %v1585_v37, %v1580_v36  ;;  %v1635_v34 = vld [vmem:[%s5501_s1 + $0x2b0] sm:$0xff]  ;;  %v1634_v43 = vld [vmem:[%s5501_s1 + $0x2a8] sm:$0xff] }
 0x12a   : > { %4066 = vmatprep.subr.bf16.mxu1 %v4065_v46  ;;  %v1584_v46 = vld [vmem:[%s5501_s1 + $0x118] sm:$0xff] }
 0x12b   : > { %3992 = vmatpush1.bf16.msra.mxu0 %v3991_v39  ;;  %v419_v39 = vld [vmem:[#allocation2 + $0x360] sm:$0xff]  ;;  %v4167_v54 = vpack.c.bf16 %v1584_v46, %v1579_v45  ;;  %v1645_v45 = vld [vmem:[%s5501_s1 + $0x300] sm:$0xff] }
 0x12c   : > { %4074 = vmatprep.subr.bf16.mxu0 %v4073_v40  ;;  %v429_v40 = vld [vmem:[#allocation2 + $0x3b0] sm:$0xff]  ;;  %v519_v37 = vld [vmem:[#allocation2 + $0x680] sm:$0xff] }
 0x12d   : > { %4068 = vmatpush1.bf16.msra.mxu1 %v4067_v56  ;;  %v4095_v49 = vpack.c.bf16 %v429_v40, %v419_v39  ;;  %v4169_v56 = vpack.c.bf16 %v1595_v48, %v1590_v47  ;;  %v550_v40 = vld [vmem:[#allocation2 + $0x778] sm:$0xff]  ;;  %v539_v48 = vld [vmem:[#allocation2 + $0x720] sm:$0xff] }
 0x12e   : > { %3561 = vmatmul.mubr.msk.f32.vlgmr.msra.gmra.mrb[2].mxu0 %vm765_vm0, %v5526_v55  ;;  %4070 = vmatprep.subr.bf16.mxu1 %v4069_v58  ;;  %v1594_v58 = vld [vmem:[%s5501_s1 + $0x168] sm:$0xff] }
 0x12f   : > { %4076 = vmatpush1.bf16.msra.mxu0 %v4075_v4  ;;  %1401 = vmatprep.mubr.f32.mxu0 %v5107_v0  ;;  %v439_v4 = vld [vmem:[#allocation2 + $0x400] sm:$0xff]  ;;  %v469_v0 = vld [vmem:[#allocation2 + $0x4f0] sm:$0xff]  ;;  %v4171_v2 = vpack.c.bf16 %v1594_v58, %v1589_v57 }
 0x130   : > { %4078 = vmatprep.subr.bf16.mxu0 %v4077_v52  ;;  %v449_v52 = vld [vmem:[#allocation2 + $0x450] sm:$0xff]  ;;  %v1655_v57 = vld [vmem:[%s5501_s1 + $0x350] sm:$0xff] }
 0x131   : > { %4072 = vmatpush1.bf16.msra.mxu1 %v4071_v6  ;;  %v4099_v61 = vpack.c.bf16 %v449_v52, %v439_v4  ;;  %v1599_v6 = vld [vmem:[%s5501_s1 + $0x190] sm:$0xff] }
 0x132   : > { %4154 = vmatprep.subr.bf16.mxu1 %v4153_v8  ;;  %v1610_v8 = vld [vmem:[%s5501_s1 + $0x1e8] sm:$0xff]  ;;  %v4175_v15 = vpack.c.bf16 %v1604_v7, %v1599_v6  ;;  %v1665_v6 = vld [vmem:[%s5501_s1 + $0x3a0] sm:$0xff] }
 0x133   : > { %4080 = vmatpush1.bf16.msra.mxu0 %v4079_v63  ;;  %v459_v63 = vld [vmem:[#allocation2 + $0x4a0] sm:$0xff]  ;;  %v4177_v17 = vpack.c.bf16 %v1615_v9, %v1610_v8  ;;  %v570_v52 = vld [vmem:[#allocation2 + $0x818] sm:$0xff] }
 0x134   : > { %4082 = vmatprep.subr.bf16.mxu0 %v4081_v1  ;;  %3562 = vmatmul.mubr.msk.f32.vlgmr.msra.gmra.mrb[2].mxu1 %vm765_vm0, %v5526_v55  ;;  %v4091_v55 = vpack.c.bf16 %v409_v29, %v399_v28  ;;  %v480_v1 = vld [vmem:[#allocation2 + $0x548] sm:$0xff]  ;;  %v4103_v10 = vpack.c.bf16 %v469_v0, %v459_v63  ;;  %v530_v29 = vld [vmem:[#allocation2 + $0x6d8] sm:$0xff]  ;;  %v579_v9 = vld [vmem:[#allocation2 + $0x860] sm:$0xff] }
 0x135   : > { %4156 = vmatpush1.bf16.msra.mxu1 %v4155_v19  ;;  %v4105_v11 = vpack.c.bf16 %v490_v3, %v480_v1  ;;  %v1609_v19 = vld [vmem:[%s5501_s1 + $0x1e0] sm:$0xff]  ;;  %v590_v0 = vld [vmem:[#allocation2 + $0x8b8] sm:$0xff] }
 0x136   : > { %4158 = vmatprep.subr.bf16.mxu1 %v4157_v21  ;;  %v1620_v21 = vld [vmem:[%s5501_s1 + $0x238] sm:$0xff]  ;;  %v4179_v28 = vpack.c.bf16 %v1614_v20, %v1609_v19  ;;  %v1654_v3 = vld [vmem:[%s5501_s1 + $0x348] sm:$0xff]  ;;  %v1675_v19 = vld [vmem:[%s5501_s1 + $0x3f0] sm:$0xff] }
 0x137   : > { %4084 = vmatpush1.bf16.msra.mxu0 %v4083_v13  ;;  %v489_v13 = vld [vmem:[#allocation2 + $0x590] sm:$0xff]  ;;  %v4181_v30 = vpack.c.bf16 %v1625_v22, %v1620_v21  ;;  %v599_v22 = vld [vmem:[#allocation2 + $0x900] sm:$0xff] }
 0x138   : > { %4086 = vmatprep.subr.bf16.mxu0 %v4085_v14  ;;  %v500_v14 = vld [vmem:[#allocation2 + $0x5e8] sm:$0xff]  ;;  %v4107_v23 = vpack.c.bf16 %v489_v13, %v479_v12  ;;  %v610_v13 = vld [vmem:[#allocation2 + $0x958] sm:$0xff] }
 0x139   : > { %4160 = vmatpush1.bf16.msra.mxu1 %v4159_v31  ;;  %v4109_v24 = vpack.c.bf16 %v510_v16, %v500_v14  ;;  %v1619_v31 = vld [vmem:[%s5501_s1 + $0x230] sm:$0xff]  ;;  %v1664_v16 = vld [vmem:[%s5501_s1 + $0x398] sm:$0xff] }
 0x13a   : > { %4162 = vmatprep.subr.bf16.mxu1 %v4161_v33  ;;  %v1630_v33 = vld [vmem:[%s5501_s1 + $0x288] sm:$0xff]  ;;  %v4183_v39 = vpack.c.bf16 %v1624_v32, %v1619_v31  ;;  %v1685_v31 = vld [vmem:[%s5501_s1 + $0x440] sm:$0xff] }
 0x13b   : > { %4088 = vmatpush1.bf16.msra.mxu0 %v4087_v26  ;;  %v509_v26 = vld [vmem:[#allocation2 + $0x630] sm:$0xff]  ;;  %v4185_v41 = vpack.c.bf16 %v1635_v34, %v1630_v33  ;;  %v619_v34 = vld [vmem:[#allocation2 + $0x9a0] sm:$0xff] }
 0x13c   : > { %4090 = vmatprep.subr.bf16.mxu0 %v4089_v27  ;;  %v520_v27 = vld [vmem:[#allocation2 + $0x688] sm:$0xff]  ;;  %v4111_v35 = vpack.c.bf16 %v509_v26, %v499_v25  ;;  %v630_v26 = vld [vmem:[#allocation2 + $0x9f8] sm:$0xff] }
 0x13d   : > { %4164 = vmatpush1.bf16.msra.mxu1 %v4163_v42  ;;  %v4113_v36 = vpack.c.bf16 %v530_v29, %v520_v27  ;;  %v1629_v42 = vld [vmem:[%s5501_s1 + $0x280] sm:$0xff]  ;;  %v1674_v29 = vld [vmem:[%s5501_s1 + $0x3e8] sm:$0xff] }
 0x13e   : > { %4166 = vmatprep.subr.bf16.mxu1 %v4165_v44  ;;  %v1640_v44 = vld [vmem:[%s5501_s1 + $0x2d8] sm:$0xff]  ;;  %v4187_v4 = vpack.c.bf16 %v1634_v43, %v1629_v42  ;;  %v1695_v42 = vld [vmem:[%s5501_s1 + $0x490] sm:$0xff] }
 0x13f   : > { %4092 = vmatpush1.bf16.msra.mxu0 %v4091_v55  ;;  %v529_v55 = vld [vmem:[#allocation2 + $0x6d0] sm:$0xff]  ;;  %v4189_v53 = vpack.c.bf16 %v1645_v45, %v1640_v44  ;;  %v639_v45 = vld [vmem:[#allocation2 + $0xa40] sm:$0xff] }
 0x140   : > { %4094 = vmatprep.subr.bf16.mxu0 %v4093_v38  ;;  %v540_v38 = vld [vmem:[#allocation2 + $0x728] sm:$0xff]  ;;  %v4115_v46 = vpack.c.bf16 %v529_v55, %v519_v37  ;;  %v650_v55 = vld [vmem:[#allocation2 + $0xa98] sm:$0xff] }
 0x141   : > { %4168 = vmatpush1.bf16.msra.mxu1 %v4167_v54  ;;  %v4117_v47 = vpack.c.bf16 %v550_v40, %v540_v38  ;;  %v1639_v54 = vld [vmem:[%s5501_s1 + $0x2d0] sm:$0xff]  ;;  %v1684_v40 = vld [vmem:[%s5501_s1 + $0x438] sm:$0xff] }
 0x142   : > { %4170 = vmatprep.subr.bf16.mxu1 %v4169_v56  ;;  %v1650_v56 = vld [vmem:[%s5501_s1 + $0x328] sm:$0xff]  ;;  %v4191_v63 = vpack.c.bf16 %v1644_v50, %v1639_v54  ;;  %v1705_v54 = vld [vmem:[%s5501_s1 + $0x4e0] sm:$0xff] }
 0x143   : > { %4096 = vmatpush1.bf16.msra.mxu0 %v4095_v49  ;;  %v549_v49 = vld [vmem:[#allocation2 + $0x770] sm:$0xff]  ;;  %v4193_v1 = vpack.c.bf16 %v1655_v57, %v1650_v56  ;;  %v659_v57 = vld [vmem:[#allocation2 + $0xae0] sm:$0xff] }
 0x144   : > { %4098 = vmatprep.subr.bf16.mxu0 %v4097_v51  ;;  %v560_v51 = vld [vmem:[#allocation2 + $0x7c8] sm:$0xff]  ;;  %v4119_v58 = vpack.c.bf16 %v549_v49, %v539_v48  ;;  %v670_v49 = vld [vmem:[#allocation2 + $0xb38] sm:$0xff] }
 0x145   : > { %4172 = vmatpush1.bf16.msra.mxu1 %v4171_v2  ;;  %v4121_v59 = vpack.c.bf16 %v570_v52, %v560_v51  ;;  %v1649_v2 = vld [vmem:[%s5501_s1 + $0x320] sm:$0xff]  ;;  %v1694_v52 = vld [vmem:[%s5501_s1 + $0x488] sm:$0xff] }
 0x146   : > { %4174 = vmatprep.subr.bf16.mxu1 %v4173_v5  ;;  %v1660_v5 = vld [vmem:[%s5501_s1 + $0x378] sm:$0xff]  ;;  %v4195_v12 = vpack.c.bf16 %v1654_v3, %v1649_v2  ;;  %v1710_v2 = vld [vmem:[%s5501_s1 + $0x508] sm:$0xff]  ;;  %v1715_v3 = vld [vmem:[%s5501_s1 + $0x530] sm:$0xff] }
 0x147   : > { %4100 = vmatpush1.bf16.msra.mxu0 %v4099_v61  ;;  %v569_v61 = vld [vmem:[#allocation2 + $0x810] sm:$0xff]  ;;  %v4197_v14 = vpack.c.bf16 %v1665_v6, %v1660_v5 }
 0x148   : > { %4102 = vmatprep.subr.bf16.mxu0 %v4101_v62  ;;  %v580_v62 = vld [vmem:[#allocation2 + $0x868] sm:$0xff]  ;;  %v4123_v7 = vpack.c.bf16 %v569_v61, %v559_v60  ;;  %v690_v61 = vld [vmem:[#allocation2 + $0xbd8] sm:$0xff] }
 0x149   : > { %4176 = vmatpush1.bf16.msra.mxu1 %v4175_v15  ;;  %v4125_v8 = vpack.c.bf16 %v590_v0, %v580_v62  ;;  %v1659_v15 = vld [vmem:[%s5501_s1 + $0x370] sm:$0xff]  ;;  %v1704_v0 = vld [vmem:[%s5501_s1 + $0x4d8] sm:$0xff] }
 0x14a   : > { %4178 = vmatprep.subr.bf16.mxu1 %v4177_v17  ;;  %v1670_v17 = vld [vmem:[%s5501_s1 + $0x3c8] sm:$0xff]  ;;  %v4199_v25 = vpack.c.bf16 %v1664_v16, %v1659_v15  ;;  %v1552_v16 = vld [vmem:[%s5501_s1 + $0x18] sm:$0xff] }
 0x14b   : > { %4104 = vmatpush1.bf16.msra.mxu0 %v4103_v10  ;;  %v589_v10 = vld [vmem:[#allocation2 + $0x8b0] sm:$0xff]  ;;  %v4201_v27 = vpack.c.bf16 %v1675_v19, %v1670_v17 }
 0x14c   : > { %4106 = vmatprep.subr.bf16.mxu0 %v4105_v11  ;;  %v600_v11 = vld [vmem:[#allocation2 + $0x908] sm:$0xff]  ;;  %v4127_v20 = vpack.c.bf16 %v589_v10, %v579_v9  ;;  %v709_v15 = vld [vmem:[#allocation2 + $0xc70] sm:$0xff] }
 0x14d   : > { %4180 = vmatpush1.bf16.msra.mxu1 %v4179_v28  ;;  %v4129_v21 = vpack.c.bf16 %v610_v13, %v600_v11  ;;  %v1669_v28 = vld [vmem:[%s5501_s1 + $0x3c0] sm:$0xff]  ;;  %v710_v11 = vld [vmem:[#allocation2 + $0xc78] sm:$0xff] }
 0x14e   : > { %4182 = vmatprep.subr.bf16.mxu1 %v4181_v30  ;;  %v1680_v30 = vld [vmem:[%s5501_s1 + $0x418] sm:$0xff]  ;;  %v4203_v37 = vpack.c.bf16 %v1674_v29, %v1669_v28  ;;  %v1557_v17 = vld [vmem:[%s5501_s1 + $0x40] sm:$0xff]  ;;  %v1566_v28 = vld [vmem:[%s5501_s1 + $0x88] sm:$0xff] }
 0x14f   : > { %4108 = vmatpush1.bf16.msra.mxu0 %v4107_v23  ;;  %v609_v23 = vld [vmem:[#allocation2 + $0x950] sm:$0xff]  ;;  %v4205_v38 = vpack.c.bf16 %v1685_v31, %v1680_v30  ;;  %v700_v10 = vld [vmem:[#allocation2 + $0xc28] sm:$0xff] }
 0x150   : > { %4110 = vmatprep.subr.bf16.mxu0 %v4109_v24  ;;  %v620_v24 = vld [vmem:[#allocation2 + $0x9a8] sm:$0xff]  ;;  %v4131_v32 = vpack.c.bf16 %v609_v23, %v599_v22  ;;  %v1562_v23 = vld [vmem:[%s5501_s1 + $0x68] sm:$0xff] }
 0x151   : > { %4184 = vmatpush1.bf16.msra.mxu1 %v4183_v39  ;;  %v4133_v33 = vpack.c.bf16 %v630_v26, %v620_v24  ;;  %v1679_v39 = vld [vmem:[%s5501_s1 + $0x410] sm:$0xff]  ;;  %v1556_v22 = vld [vmem:[%s5501_s1 + $0x38] sm:$0xff]  ;;  %v1577_v30 = vld [vmem:[%s5501_s1 + $0xe0] sm:$0xff] }
 0x152   : > { %4186 = vmatprep.subr.bf16.mxu1 %v4185_v41  ;;  %v1690_v41 = vld [vmem:[%s5501_s1 + $0x468] sm:$0xff]  ;;  %v4207_v48 = vpack.c.bf16 %v1684_v40, %v1679_v39  ;;  %v1567_v24 = vld [vmem:[%s5501_s1 + $0x90] sm:$0xff]  ;;  %v1572_v29 = vld [vmem:[%s5501_s1 + $0xb8] sm:$0xff] }
 0x153   : > { %4112 = vmatpush1.bf16.msra.mxu0 %v4111_v35  ;;  %v629_v35 = vld [vmem:[#allocation2 + $0x9f0] sm:$0xff]  ;;  %v4209_v51 = vpack.c.bf16 %v1695_v42, %v1690_v41  ;;  %v4477_v26 = vpack.c.bf16 %v1567_v24, %v1562_v23  ;;  %v1592_v41 = vld [vmem:[%s5501_s1 + $0x158] sm:$0xff] }
 0x154   : > { %4114 = vmatprep.subr.bf16.mxu0 %v4113_v36  ;;  %v640_v36 = vld [vmem:[#allocation2 + $0xa48] sm:$0xff]  ;;  %v4135_v43 = vpack.c.bf16 %v629_v35, %v619_v34  ;;  %v5109_v31 = vld [vmem:[%s6524_s0 + $0x10] sm:$0xff]  ;;  %v1571_v34 = vld [vmem:[%s5501_s1 + $0xb0] sm:$0xff] }
 0x155   : > { %4188 = vmatpush1.bf16.msra.mxu1 %v4187_v4  ;;  %v4137_v44 = vpack.c.bf16 %v650_v55, %v640_v36  ;;  %v1689_v4 = vld [vmem:[%s5501_s1 + $0x460] sm:$0xff]  ;;  %v1576_v35 = vld [vmem:[%s5501_s1 + $0xd8] sm:$0xff]  ;;  %v1582_v36 = vld [vmem:[%s5501_s1 + $0x108] sm:$0xff] }
 0x156   : > { %4190 = vmatprep.subr.bf16.mxu1 %v4189_v53  ;;  %v1700_v53 = vld [vmem:[%s5501_s1 + $0x4b8] sm:$0xff]  ;;  %v4211_v60 = vpack.c.bf16 %v1694_v52, %v1689_v4  ;;  %v4483_v55 = vpack.c.bf16 %v1576_v35, %v1571_v34  ;;  %v1581_v39 = vld [vmem:[%s5501_s1 + $0x100] sm:$0xff]  ;;  %v1586_v40 = vld [vmem:[%s5501_s1 + $0x128] sm:$0xff] }
 0x157   : > { %4116 = vmatpush1.bf16.msra.mxu0 %v4115_v46  ;;  %v649_v46 = vld [vmem:[#allocation2 + $0xa90] sm:$0xff]  ;;  %v4213_v62 = vpack.c.bf16 %v1705_v54, %v1700_v53  ;;  %v1612_v53 = vld [vmem:[%s5501_s1 + $0x1f8] sm:$0xff]  ;;  %v1687_v35 = vld [vmem:[%s5501_s1 + $0x450] sm:$0xff] }
 0x158   : > { %4118 = vmatprep.subr.bf16.mxu0 %v4117_v47  ;;  %v660_v47 = vld [vmem:[#allocation2 + $0xae8] sm:$0xff]  ;;  %v4139_v50 = vpack.c.bf16 %v649_v46, %v639_v45  ;;  %v1591_v45 = vld [vmem:[%s5501_s1 + $0x150] sm:$0xff]  ;;  %v1606_v52 = vld [vmem:[%s5501_s1 + $0x1c8] sm:$0xff] }
 0x159   : > { %4192 = vmatpush1.bf16.msra.mxu1 %v4191_v63  ;;  %v4141_v56 = vpack.c.bf16 %v670_v49, %v660_v47  ;;  %v1699_v63 = vld [vmem:[%s5501_s1 + $0x4b0] sm:$0xff]  ;;  %v1597_v42 = vld [vmem:[%s5501_s1 + $0x180] sm:$0xff]  ;;  %v1596_v46 = vld [vmem:[%s5501_s1 + $0x178] sm:$0xff] }
 0x15a   : > { %4194 = vmatprep.subr.bf16.mxu1 %v4193_v1  ;;  %v5108_v1 = vld [vmem:[%s6524_s0] sm:$0xff]  ;;  %v4215_v9 = vpack.c.bf16 %v1704_v0, %v1699_v63  ;;  %v1602_v47 = vld [vmem:[%s5501_s1 + $0x1a8] sm:$0xff]  ;;  %v4491_v49 = vpack.c.bf16 %v1596_v46, %v1591_v45  ;;  %v1601_v4 = vld [vmem:[%s5501_s1 + $0x1a0] sm:$0xff] }
 0x15b   : > { %4120 = vmatpush1.bf16.msra.mxu0 %v4119_v58  ;;  %v669_v58 = vld [vmem:[#allocation2 + $0xb30] sm:$0xff] }
 0x15c   : > { %4122 = vmatprep.subr.bf16.mxu0 %v4121_v59  ;;  %v680_v59 = vld [vmem:[#allocation2 + $0xb88] sm:$0xff]  ;;  %v4143_v5 = vpack.c.bf16 %v669_v58, %v659_v57  ;;  %v1611_v57 = vld [vmem:[%s5501_s1 + $0x1f0] sm:$0xff]  ;;  %v1626_v0 = vld [vmem:[%s5501_s1 + $0x268] sm:$0xff] }
 0x15d   : > { %4196 = vmatpush1.bf16.msra.mxu1 %v4195_v12  ;;  %v4145_v6 = vpack.c.bf16 %v690_v61, %v680_v59  ;;  %v4217_v12 = vpack.c.bf16 %v1715_v3, %v1710_v2  ;;  %v1617_v54 = vld [vmem:[%s5501_s1 + $0x220] sm:$0xff]  ;;  %v1616_v58 = vld [vmem:[%s5501_s1 + $0x218] sm:$0xff]  ;;  %v1622_v59 = vld [vmem:[%s5501_s1 + $0x248] sm:$0xff] }
 0x15e   : > { %4198 = vmatprep.subr.bf16.mxu1 %v4197_v14  ;;  %v699_v14 = vld [vmem:[#allocation2 + $0xc20] sm:$0xff]  ;;  %v4499_v61 = vpack.c.bf16 %v1616_v58, %v1611_v57  ;;  %v1621_v63 = vld [vmem:[%s5501_s1 + $0x240] sm:$0xff]  ;;  %v1682_v34 = vld [vmem:[%s5501_s1 + $0x428] sm:$0xff] }
 0x15f   : > { %4124 = vmatpush1.bf16.msra.mxu0 %v4123_v7  ;;  %v679_v7 = vld [vmem:[#allocation2 + $0xb80] sm:$0xff]  ;;  %v4151_v19 = vpack.c.bf16 %v709_v15, %v699_v14  ;;  %v1637_v2 = vld [vmem:[%s5501_s1 + $0x2c0] sm:$0xff]  ;;  %v4503_v3 = vpack.c.bf16 %v1626_v0, %v1621_v63 }
 0x160   : > { %4126 = vmatprep.subr.bf16.mxu0 %v4125_v8  ;;  %v689_v8 = vld [vmem:[#allocation2 + $0xbd0] sm:$0xff]  ;;  %v1712_v63 = vld [vmem:[%s5501_s1 + $0x518] sm:$0xff] }
 0x161   : > { %4200 = vmatpush1.bf16.msra.mxu1 %v4199_v25  ;;  %v4147_v13 = vpack.c.bf16 %v689_v8, %v679_v7  ;;  %v1636_v7 = vld [vmem:[%s5501_s1 + $0x2b8] sm:$0xff]  ;;  %v1642_v8 = vld [vmem:[%s5501_s1 + $0x2e8] sm:$0xff]  ;;  %v1657_v14 = vld [vmem:[%s5501_s1 + $0x360] sm:$0xff] }
 0x162   : > { %4202 = vmatprep.subr.bf16.mxu1 %v4201_v27  ;;  %v1561_v27 = vld [vmem:[%s5501_s1 + $0x60] sm:$0xff] }
 0x163   : > { %4128 = vmatpush1.bf16.msra.mxu0 %v4127_v20  ;;  %v4473_v20 = vpack.c.bf16 %v1557_v17, %v1552_v16  ;;  %v1651_v17 = vld [vmem:[%s5501_s1 + $0x330] sm:$0xff]  ;;  %v1717_v0 = vld [vmem:[%s5501_s1 + $0x540] sm:$0xff] }
 0x164   : > { %4130 = vmatprep.subr.bf16.mxu0 %v4129_v21  ;;  %v1551_v21 = vld [vmem:[%s5501_s1 + $0x10] sm:$0xff] }
 0x165   : > { %4204 = vmatpush1.bf16.msra.mxu1 %v4203_v37  ;;  %v4475_v25 = vpack.c.bf16 %v1556_v22, %v1551_v21  ;;  %v1587_v37 = vld [vmem:[%s5501_s1 + $0x130] sm:$0xff]  ;;  %v715_v22 = vlaneseq }
 0x166   : > { %4206 = vmatprep.subr.bf16.mxu1 %v4205_v38  ;;  %v4485_v38 = vpack.c.bf16 %v1587_v37, %v1582_v36  ;;  %v1667_v21 = vld [vmem:[%s5501_s1 + $0x3b0] sm:$0xff] }
 0x167   : > { %4132 = vmatpush1.bf16.msra.mxu0 %v4131_v32  ;;  %v4479_v32 = vpack.c.bf16 %v1566_v28, %v1561_v27  ;;  %v1672_v27 = vld [vmem:[%s5501_s1 + $0x3d8] sm:$0xff]  ;;  %v1677_v28 = vld [vmem:[%s5501_s1 + $0x400] sm:$0xff] }
 0x168   : > { %4134 = vmatprep.subr.bf16.mxu0 %v4133_v33  ;;  %v4481_v33 = vpack.c.bf16 %v1577_v30, %v1572_v29  ;;  %v5669_v29 = vshrl.u32 %v715_v22, 7  ;;  %v5678_v37 = vld [vmem:[#allocation4] sm:$0xff]  ;;  %v1722_v22 = vld [vmem:[%s5501_s1 + $0x568] sm:$0xff] }
 0x169   : > { %4208 = vmatpush1.bf16.msra.mxu1 %v4207_v48  ;;  %v1607_v48 = vld [vmem:[%s5501_s1 + $0x1d0] sm:$0xff] }
 0x16a   : > { %4210 = vmatprep.subr.bf16.mxu1 %v4209_v51  ;;  %v4493_v51 = vpack.c.bf16 %v1607_v48, %v1602_v47  ;;  %v5676_v36 = vsub.s32 0, %v5669_v29  ;;  %v1691_v48 = vld [vmem:[%s5501_s1 + $0x470] sm:$0xff]  ;;  %v729_v58 = vsub.s32 3, %v5669_v29 }
 0x16b   : > { %4136 = vmatpush1.bf16.msra.mxu0 %v4135_v43  ;;  %v4487_v43 = vpack.c.bf16 %v1586_v40, %v1581_v39  ;;  %v4525_v39 = vpack.c.bf16 %v1687_v35, %v1682_v34  ;;  %v1681_v40 = vld [vmem:[%s5501_s1 + $0x420] sm:$0xff]  ;;  %v1726_v35 = vld [vmem:[%s5501_s1 + $0x588] sm:$0xff] }
 0x16c   : > { %4138 = vmatprep.subr.bf16.mxu0 %v4137_v44  ;;  %v4489_v44 = vpack.c.bf16 %v1597_v42, %v1592_v41  ;;  %v1686_v41 = vld [vmem:[%s5501_s1 + $0x448] sm:$0xff]  ;;  %v1692_v42 = vld [vmem:[%s5501_s1 + $0x478] sm:$0xff]  ;;  %v1721_v34 = vld [vmem:[%s5501_s1 + $0x560] sm:$0xff] }
 0x16d   : > { %4212 = vmatpush1.bf16.msra.mxu1 %v4211_v60  ;;  %v1627_v60 = vld [vmem:[%s5501_s1 + $0x270] sm:$0xff]  ;;  %v4527_v46 = vpack.c.bf16 %v1686_v41, %v1681_v40  ;;  %v1732_v40 = vld [vmem:[%s5501_s1 + $0x5b8] sm:$0xff]  ;;  %v1737_v41 = vld [vmem:[%s5501_s1 + $0x5e0] sm:$0xff] }
 0x16e   : > { %1402 = vmatmul.mubr.f32.vlgmr.msra.gmra.mrb[4].mxu0 %v5108_v1  ;;  %4214 = vmatprep.subr.bf16.mxu1 %v4213_v62  ;;  %v4501_v62 = vpack.c.bf16 %v1627_v60, %v1622_v59  ;;  %v1632_v1 = vld [vmem:[%s5501_s1 + $0x298] sm:$0xff]  ;;  %v1701_v60 = vld [vmem:[%s5501_s1 + $0x4c0] sm:$0xff] }
 0x16f   : > { %4140 = vmatpush1.bf16.msra.mxu0 %v4139_v50  ;;  %1472 = vmatprep.mubr.f32.mxu0 %v5279_v18  ;;  %v4149_v18 = vpack.c.bf16 %v710_v11, %v700_v10  ;;  %v4495_v50 = vpack.c.bf16 %v1606_v52, %v1601_v4  ;;  %v1702_v4 = vld [vmem:[%s5501_s1 + $0x4c8] sm:$0xff]  ;;  %v1707_v52 = vld [vmem:[%s5501_s1 + $0x4f0] sm:$0xff] }
 0x170   : > { %4142 = vmatprep.subr.bf16.mxu0 %v4141_v56  ;;  %v4497_v56 = vpack.c.bf16 %v1617_v54, %v1612_v53  ;;  %v4533_v59 = vpack.c.bf16 %v1707_v52, %v1702_v4  ;;  %v1745_v4 = vld [vmem:[%s5501_s1 + $0x620] sm:$0xff]  ;;  %v1742_v52 = vld [vmem:[%s5501_s1 + $0x608] sm:$0xff] }
 0x171   : > { %4216 = vmatpush1.bf16.msra.mxu1 %v4215_v9  ;;  %v1647_v9 = vld [vmem:[%s5501_s1 + $0x310] sm:$0xff] }
 0x172   : > { %4218 = vmatprep.subr.bf16.mxu1 %v4217_v12  ;;  %v4509_v11 = vpack.c.bf16 %v1647_v9, %v1642_v8  ;;  %v1641_v12 = vld [vmem:[%s5501_s1 + $0x2e0] sm:$0xff] }
 0x173   : > { %4144 = vmatpush1.bf16.msra.mxu0 %v4143_v5  ;;  %v4505_v5 = vpack.c.bf16 %v1637_v2, %v1632_v1  ;;  %v730_v2 = vrot.slane %v5678_v37, %v729_v58 }
 0x174   : > { %4146 = vmatprep.subr.bf16.mxu0 %v4145_v6  ;;  %v1631_v6 = vld [vmem:[%s5501_s1 + $0x290] sm:$0xff] }
 0x175   : > { %v4507_v10 = vpack.c.bf16 %v1636_v7, %v1631_v6 }
 0x177   : > { %4148 = vmatpush1.bf16.msra.mxu0 %v4147_v13  ;;  %v1646_v13 = vld [vmem:[%s5501_s1 + $0x308] sm:$0xff] }
 0x178   : > { %4150 = vmatprep.subr.bf16.mxu0 %v4149_v18  ;;  %v1652_v18 = vld [vmem:[%s5501_s1 + $0x338] sm:$0xff]  ;;  %v4511_v15 = vpack.c.bf16 %v1646_v13, %v1641_v12 }
 0x179   : > { %v4513_v16 = vpack.c.bf16 %v1657_v14, %v1652_v18  ;;  %v1709_v14 = vld [vmem:[%s5501_s1 + $0x500] sm:$0xff] }
 0x17b   : > { %4152 = vmatpush1.bf16.msra.mxu0 %v4151_v19  ;;  %v1656_v19 = vld [vmem:[%s5501_s1 + $0x358] sm:$0xff] }
 0x17c   : > { %4474 = vmatprep.subr.bf16.mxu0 %v4473_v20  ;;  %v1662_v20 = vld [vmem:[%s5501_s1 + $0x388] sm:$0xff]  ;;  %v4515_v23 = vpack.c.bf16 %v1656_v19, %v1651_v17  ;;  %v1716_v17 = vld [vmem:[%s5501_s1 + $0x538] sm:$0xff] }
 0x17d   : > { %v4517_v24 = vpack.c.bf16 %v1667_v21, %v1662_v20  ;;  %v1720_v19 = vld [vmem:[%s5501_s1 + $0x558] sm:$0xff]  ;;  %v1725_v21 = vld [vmem:[%s5501_s1 + $0x580] sm:$0xff] }
 0x17e   : > { %3563 = vmatmul.mubr.msk.f32.vlgmr.msra.gmra.mrb[4].mxu0 %vm765_vm0, %v5109_v31  ;;  %v4521_v31 = vpack.c.bf16 %v1677_v28, %v1672_v27  ;;  %v1719_v28 = vld [vmem:[%s5501_s1 + $0x550] sm:$0xff] }
 0x17f   : > { %4476 = vmatpush1.bf16.msra.mxu0 %v4475_v25  ;;  %v1661_v25 = vld [vmem:[%s5501_s1 + $0x380] sm:$0xff] }
 0x180   : > { %4478 = vmatprep.subr.bf16.mxu0 %v4477_v26  ;;  %v1666_v26 = vld [vmem:[%s5501_s1 + $0x3a8] sm:$0xff] }
 0x181   : > { %v4519_v30 = vpack.c.bf16 %v1666_v26, %v1661_v25 }
 0x183   : > { %4480 = vmatpush1.bf16.msra.mxu0 %v4479_v32  ;;  %v1671_v32 = vld [vmem:[%s5501_s1 + $0x3d0] sm:$0xff] }
 0x184   : > { %4482 = vmatprep.subr.bf16.mxu0 %v4481_v33  ;;  %v1676_v33 = vld [vmem:[%s5501_s1 + $0x3f8] sm:$0xff] }
 0x187   : > { %4484 = vmatpush1.bf16.msra.mxu0 %v4483_v55  ;;  %v5681_v55 = vsub.s32 1, %v5669_v29 }
 0x188   : > { %4486 = vmatprep.subr.bf16.mxu0 %v4485_v38  ;;  %v4523_v38 = vpack.c.bf16 %v1676_v33, %v1671_v32  ;;  %v4221_v32 = vpack.c.bf16 %v1725_v21, %v1720_v19  ;;  %v1759_v21 = vld [vmem:[%s5501_s1 + $0x690] sm:$0xff] }
 0x189   : > { %v722_v45 = vrot.slane %v5678_v37, %v5681_v55 }
 0x18b   : > { %4488 = vmatpush1.bf16.msra.mxu0 %v4487_v43  ;;  %v1697_v43 = vld [vmem:[%s5501_s1 + $0x4a0] sm:$0xff] }
 0x18c   : > { %4490 = vmatprep.subr.bf16.mxu0 %v4489_v44  ;;  %v718_v44 = vrot.slane %v5678_v37, %v5676_v36  ;;  %v4529_v47 = vpack.c.bf16 %v1697_v43, %v1692_v42  ;;  %v4543_v43 = vpack.c.bf16 %v1726_v35, %v1721_v34  ;;  %v725_v34 = vsub.s32 2, %v5669_v29 }
 0x18f   : > { %4492 = vmatpush1.bf16.msra.mxu0 %v4491_v49  ;;  %v1696_v49 = vld [vmem:[%s5501_s1 + $0x498] sm:$0xff] }
 0x190   : > { %4494 = vmatprep.subr.bf16.mxu0 %v4493_v51 }
 0x193   : > { %4496 = vmatpush1.bf16.msra.mxu0 %v4495_v50 }
 0x194   : > { %4498 = vmatprep.subr.bf16.mxu0 %v4497_v56  ;;  %v4531_v56 = vpack.c.bf16 %v1696_v49, %v1691_v48  ;;  %v1731_v48 = vld [vmem:[%s5501_s1 + $0x5b0] sm:$0xff]  ;;  %v1736_v49 = vld [vmem:[%s5501_s1 + $0x5d8] sm:$0xff] }
 0x197   : > { %4500 = vmatpush1.bf16.msra.mxu0 %v4499_v61  ;;  %v1706_v61 = vld [vmem:[%s5501_s1 + $0x4e8] sm:$0xff] }
 0x198   : > { %4502 = vmatprep.subr.bf16.mxu0 %v4501_v62  ;;  %v4535_v1 = vpack.c.bf16 %v1706_v61, %v1701_v60 }
 0x19b   : > { %4504 = vmatpush1.bf16.msra.mxu0 %v4503_v3  ;;  %v4537_v3 = vpack.c.bf16 %v1717_v0, %v1712_v63  ;;  %v1741_v63 = vld [vmem:[%s5501_s1 + $0x600] sm:$0xff]  ;;  %v1746_v0 = vld [vmem:[%s5501_s1 + $0x628] sm:$0xff] }
 0x19c   : > { %4506 = vmatprep.subr.bf16.mxu0 %v4505_v5 }
 0x19f   : > { %4508 = vmatpush1.bf16.msra.mxu0 %v4507_v10 }
 0x1a0   : > { %4510 = vmatprep.subr.bf16.mxu0 %v4509_v11 }
 0x1a3   : > { %4512 = vmatpush1.bf16.msra.mxu0 %v4511_v15  ;;  %v1714_v15 = vld [vmem:[%s5501_s1 + $0x528] sm:$0xff] }
 0x1a4   : > { %4514 = vmatprep.subr.bf16.mxu0 %v4513_v16  ;;  %v1711_v16 = vld [vmem:[%s5501_s1 + $0x510] sm:$0xff]  ;;  %v4219_v26 = vpack.c.bf16 %v1714_v15, %v1709_v14  ;;  %v1760_v14 = vld [vmem:[%s5501_s1 + $0x698] sm:$0xff]  ;;  %v1765_v15 = vld [vmem:[%s5501_s1 + $0x6c0] sm:$0xff] }
 0x1a5   : > { %v4539_v27 = vpack.c.bf16 %v1716_v17, %v1711_v16  ;;  %v1762_v16 = vld [vmem:[%s5501_s1 + $0x6a8] sm:$0xff]  ;;  %v1767_v17 = vld [vmem:[%s5501_s1 + $0x6d0] sm:$0xff] }
 0x1a7   : > { %4516 = vmatpush1.bf16.msra.mxu0 %v4515_v23  ;;  %v1727_v23 = vld [vmem:[%s5501_s1 + $0x590] sm:$0xff] }
 0x1a8   : > { %4518 = vmatprep.subr.bf16.mxu0 %v4517_v24  ;;  %v4541_v33 = vpack.c.bf16 %v1727_v23, %v1722_v22  ;;  %v1764_v22 = vld [vmem:[%s5501_s1 + $0x6b8] sm:$0xff]  ;;  %v4237_v23 = vpack.c.bf16 %v1765_v15, %v1760_v14 }
 0x1a9   : > { %v4239_v35 = vpack.c.bf16 %v1764_v22, %v1759_v21  ;;  %v1801_v21 = vld [vmem:[%s5501_s1 + $0x7e0] sm:$0xff]  ;;  %v1806_v22 = vld [vmem:[%s5501_s1 + $0x808] sm:$0xff] }
 0x1ab   : > { %4520 = vmatpush1.bf16.msra.mxu0 %v4519_v30  ;;  %v1724_v30 = vld [vmem:[%s5501_s1 + $0x578] sm:$0xff] }
 0x1ac   : > { %4522 = vmatprep.subr.bf16.mxu0 %v4521_v31  ;;  %v4223_v42 = vpack.c.bf16 %v1724_v30, %v1719_v28  ;;  %v1770_v28 = vld [vmem:[%s5501_s1 + $0x6e8] sm:$0xff]  ;;  %v1775_v30 = vld [vmem:[%s5501_s1 + $0x710] sm:$0xff] }
 0x1af   : > { %4524 = vmatpush1.bf16.msra.mxu0 %v4523_v38  ;;  %v1730_v38 = vld [vmem:[%s5501_s1 + $0x5a8] sm:$0xff] }
 0x1b0   : > { %4526 = vmatprep.subr.bf16.mxu0 %v4525_v39  ;;  %v1735_v39 = vld [vmem:[%s5501_s1 + $0x5d0] sm:$0xff] }
 0x1b1   : > { %v906_v51 = vpop.f32.mrb[0].mxu0 }
 0x1b2   : > { %v4953_v53 = vadd.f32 %v906_v51, %v718_v44  ;;  %v908_v54 = vpop.f32.mrb[1].mxu0  ;;  %v1729_v44 = vld [vmem:[%s5501_s1 + $0x5a0] sm:$0xff]  ;;  %v1740_v51 = vld [vmem:[%s5501_s1 + $0x5f8] sm:$0xff] }
 0x1b3   : > { %v4954_v50 = vadd.f32 %v908_v54, %v722_v45  ;;  %4528 = vmatpush1.bf16.msra.mxu0 %v4527_v46  ;;  %v1734_v45 = vld [vmem:[%s5501_s1 + $0x5c8] sm:$0xff]  ;;  %v4225_v46 = vpack.c.bf16 %v1735_v39, %v1730_v38  ;;  %v4229_v61 = vpack.c.bf16 %v1745_v4, %v1740_v51  ;;  %v1769_v39 = vld [vmem:[%s5501_s1 + $0x6e0] sm:$0xff] }
 0x1b4   : > { %v3564_v57 = vmul.f32 -1.442695, %v4953_v53  ;;  %4530 = vmatprep.subr.bf16.mxu0 %v4529_v47  ;;  %v4545_v47 = vpack.c.bf16 %v1737_v41, %v1732_v40  ;;  %v1774_v40 = vld [vmem:[%s5501_s1 + $0x708] sm:$0xff]  ;;  %v4241_v41 = vpack.c.bf16 %v1775_v30, %v1770_v28  ;;  %v4575_v30 = vpack.c.bf16 %v1806_v22, %v1801_v21 }
 0x1b5   : > { %v3565_v62 = vmul.f32 -1.442695, %v4954_v50  ;;  %v4243_v51 = vpack.c.bf16 %v1774_v40, %v1769_v39  ;;  %v1811_v39 = vld [vmem:[%s5501_s1 + $0x830] sm:$0xff]  ;;  %v1816_v40 = vld [vmem:[%s5501_s1 + $0x858] sm:$0xff]  ;;  %v1850_v21 = vld [vmem:[%s5501_s1 + $0x968] sm:$0xff] }
 0x1b6   : > { %5067 = vpow2.f32 %v3564_v57  ;;  %v1739_v57 = vld [vmem:[%s5501_s1 + $0x5f0] sm:$0xff] }
 0x1b7   : > { %5069 = vpow2.f32 %v3565_v62  ;;  %4532 = vmatpush1.bf16.msra.mxu0 %v4531_v56  ;;  %v5703_v5 = vpop.f32.mrb[0].mxu1  ;;  %v4547_v56 = vpack.c.bf16 %v1736_v49, %v1731_v48  ;;  %v1787_v48 = vld [vmem:[%s5501_s1 + $0x770] sm:$0xff]  ;;  %v726_v49 = vrot.slane %v5678_v37, %v725_v34 }
 0x1b8   : > { %4534 = vmatprep.subr.bf16.mxu0 %v4533_v59  ;;  %v1050_v6 = vpop.f32.mrb[1].mxu1  ;;  %v1744_v59 = vld [vmem:[%s5501_s1 + $0x618] sm:$0xff] }
 0x1b9   : > { %v5705_v7 = vadd.f32 %v1050_v6, %v730_v2  ;;  %v1755_v2 = vld [vmem:[%s5501_s1 + $0x670] sm:$0xff]  ;;  %v1757_v6 = vld [vmem:[%s5501_s1 + $0x680] sm:$0xff] }
 0x1bb   : > { %4536 = vmatpush1.bf16.msra.mxu0 %v4535_v1  ;;  %v3567_v8 = vmul.f32 -1.442695, %v5705_v7  ;;  %v1750_v1 = vld [vmem:[%s5501_s1 + $0x648] sm:$0xff] }
 0x1bc   : > { %4538 = vmatprep.subr.bf16.mxu0 %v4537_v3  ;;  %v1752_v3 = vld [vmem:[%s5501_s1 + $0x658] sm:$0xff] }
 0x1bd   : > { %5071 = vpow2.f32 %v3567_v8  ;;  %v4551_v8 = vpack.c.bf16 %v1746_v0, %v1741_v63  ;;  %v1797_v63 = vld [vmem:[%s5501_s1 + $0x7c0] sm:$0xff]  ;;  %v5790_v0 = vadd.f32 %v5703_v5, %v726_v49 }
 0x1be   : > { %v1805_v5 = vld [vmem:[%s5501_s1 + $0x800] sm:$0xff] }
 0x1c0   : > { %v5068_v9 = vpop.eup %5067 }
 0x1c1   : > { %v5070_v10 = vpop.eup %5069  ;;  %v1509_v11 = vadd.f32 1.0, %v5068_v9  ;;  %v1749_v9 = vld [vmem:[%s5501_s1 + $0x640] sm:$0xff] }
 0x1c2   : > { %v1510_v12 = vadd.f32 1.0, %v5070_v10  ;;  %v1754_v10 = vld [vmem:[%s5501_s1 + $0x668] sm:$0xff] }
 0x1c3   : > { %5073 = vrcp.f32 %v1509_v11  ;;  %v4233_v11 = vpack.c.bf16 %v1755_v2, %v1750_v1  ;;  %v4235_v19 = vpack.c.bf16 %v1754_v10, %v1749_v9  ;;  %v1791_v9 = vld [vmem:[%s5501_s1 + $0x790] sm:$0xff]  ;;  %v1796_v10 = vld [vmem:[%s5501_s1 + $0x7b8] sm:$0xff] }
 0x1c4   : > { %5075 = vrcp.f32 %v1510_v12  ;;  %v4553_v12 = vpack.c.bf16 %v1757_v6, %v1752_v3  ;;  %v1789_v3 = vld [vmem:[%s5501_s1 + $0x780] sm:$0xff]  ;;  %v1794_v6 = vld [vmem:[%s5501_s1 + $0x7a8] sm:$0xff]  ;;  %v4571_v15 = vpack.c.bf16 %v1796_v10, %v1791_v9 }
 0x1c5   : > { %v4251_v14 = vpack.c.bf16 %v1794_v6, %v1789_v3  ;;  %v1831_v6 = vld [vmem:[%s5501_s1 + $0x8d0] sm:$0xff]  ;;  %v1845_v9 = vld [vmem:[%s5501_s1 + $0x940] sm:$0xff]  ;;  %v1842_v10 = vld [vmem:[%s5501_s1 + $0x928] sm:$0xff] }
 0x1c7   : > { %v5072_v13 = vpop.eup %5071 }
 0x1c8   : > { %v1512_v18 = vadd.f32 1.0, %v5072_v13  ;;  %v1751_v13 = vld [vmem:[%s5501_s1 + $0x650] sm:$0xff] }
 0x1ca   : > { %5077 = vrcp.f32 %v1512_v18  ;;  %v1756_v18 = vld [vmem:[%s5501_s1 + $0x678] sm:$0xff] }
 0x1cd   : > { %v5074_v20 = vpop.eup %5073 }
 0x1ce   : > { %v5076_v24 = vpop.eup %5075  ;;  %v5720_v31 = vmul.f32 %v5074_v20, %v4953_v53  ;;  %v1747_v53 = vld [vmem:[%s5501_s1 + $0x630] sm:$0xff]  ;;  %v4555_v20 = vpack.c.bf16 %v1756_v18, %v1751_v13  ;;  %v3566_v18 = vmul.f32 -1.442695, %v5790_v0 }
 0x1cf   : > { %v5716_v25 = vmul.f32 %v5076_v24, %v4954_v50  ;;  %v4227_v50 = vpack.c.bf16 %v1734_v45, %v1729_v44  ;;  %v4549_v62 = vpack.c.bf16 %v1747_v53, %v1742_v52  ;;  %v4557_v24 = vpack.c.bf16 %v1767_v17, %v1762_v16  ;;  %v1776_v44 = vld [vmem:[%s5501_s1 + $0x718] sm:$0xff]  ;;  %v1779_v52 = vld [vmem:[%s5501_s1 + $0x730] sm:$0xff] }
 0x1d0   : > { %v1780_v45 = vld [vmem:[%s5501_s1 + $0x738] sm:$0xff]  ;;  %v1807_v13 = vld [vmem:[%s5501_s1 + $0x810] sm:$0xff]  ;;  %5079 = vpow2.f32 %v3566_v18 }
 0x1d1   : > { %2440 = vmatprep.mubr.f32.mxu1 %v5716_v25  ;;  %2795 = vmatprep.mubr.f32.mxu0 %v5716_v25  ;;  %v1784_v53 = vld [vmem:[%s5501_s1 + $0x758] sm:$0xff]  ;;  %v1799_v16 = vld [vmem:[%s5501_s1 + $0x7d0] sm:$0xff] }
 0x1d2   : > { %2441 = vmatmul.mubr.f32.vlgmr.msra.gmra.mrb[4].mxu1 %v5720_v31  ;;  %2796 = vmatmul.mubr.f32.vlgmr.msra.gmra.mrb[6].mxu0 %v5720_v31  ;;  %v4247_v1 = vpack.c.bf16 %v1784_v53, %v1779_v52  ;;  %v1804_v17 = vld [vmem:[%s5501_s1 + $0x7f8] sm:$0xff]  ;;  %v1826_v52 = vld [vmem:[%s5501_s1 + $0x8a8] sm:$0xff]  ;;  %v1839_v18 = vld [vmem:[%s5501_s1 + $0x910] sm:$0xff] }
 0x1d3   : > { %4220 = vmatpush1.bf16.msra.mxu1 %v4219_v26  ;;  %4540 = vmatpush1.bf16.msra.mxu0 %v4539_v27  ;;  %v1761_v26 = vld [vmem:[%s5501_s1 + $0x6a0] sm:$0xff]  ;;  %v1766_v27 = vld [vmem:[%s5501_s1 + $0x6c8] sm:$0xff]  ;;  %v4255_v28 = vpack.c.bf16 %v1804_v17, %v1799_v16 }
 0x1d4   : > { %4222 = vmatprep.subr.bf16.mxu1 %v4221_v32  ;;  %4542 = vmatprep.subr.bf16.mxu0 %v4541_v33  ;;  %v5078_v54 = vpop.eup %5077  ;;  %v1772_v32 = vld [vmem:[%s5501_s1 + $0x6f8] sm:$0xff]  ;;  %v1777_v33 = vld [vmem:[%s5501_s1 + $0x720] sm:$0xff]  ;;  %v4559_v38 = vpack.c.bf16 %v1766_v27, %v1761_v26  ;;  %v1830_v53 = vld [vmem:[%s5501_s1 + $0x8c8] sm:$0xff] }
 0x1d5   : > { %v5743_v60 = vmul.f32 %v5078_v54, %v5705_v7  ;;  %v4231_v7 = vpack.c.bf16 %v1744_v59, %v1739_v57  ;;  %v1786_v57 = vld [vmem:[%s5501_s1 + $0x768] sm:$0xff]  ;;  %v1812_v26 = vld [vmem:[%s5501_s1 + $0x838] sm:$0xff]  ;;  %v1817_v27 = vld [vmem:[%s5501_s1 + $0x860] sm:$0xff] }
 0x1d6   : > { %v1790_v59 = vld [vmem:[%s5501_s1 + $0x788] sm:$0xff] }
 0x1d7   : > { %4224 = vmatpush1.bf16.msra.mxu1 %v4223_v42  ;;  %4544 = vmatpush1.bf16.msra.mxu0 %v4543_v43  ;;  %v4561_v42 = vpack.c.bf16 %v1777_v33, %v1772_v32  ;;  %v1771_v43 = vld [vmem:[%s5501_s1 + $0x6f0] sm:$0xff]  ;;  %v1809_v32 = vld [vmem:[%s5501_s1 + $0x820] sm:$0xff]  ;;  %v1814_v33 = vld [vmem:[%s5501_s1 + $0x848] sm:$0xff] }
 0x1d8   : > { %4226 = vmatprep.subr.bf16.mxu1 %v4225_v46  ;;  %4546 = vmatprep.subr.bf16.mxu0 %v4545_v47  ;;  %v1785_v46 = vld [vmem:[%s5501_s1 + $0x760] sm:$0xff]  ;;  %v1782_v47 = vld [vmem:[%s5501_s1 + $0x748] sm:$0xff]  ;;  %v4563_v4 = vpack.c.bf16 %v1776_v44, %v1771_v43  ;;  %v1827_v44 = vld [vmem:[%s5501_s1 + $0x8b0] sm:$0xff] }
 0x1d9   : > { %2511 = vmatprep.mubr.f32.mxu1 %v5743_v60  ;;  %2866 = vmatprep.mubr.f32.mxu0 %v5743_v60  ;;  %v4245_v54 = vpack.c.bf16 %v1785_v46, %v1780_v45  ;;  %v1822_v43 = vld [vmem:[%s5501_s1 + $0x888] sm:$0xff]  ;;  %v4259_v45 = vpack.c.bf16 %v1814_v33, %v1809_v32  ;;  %v4579_v46 = vpack.c.bf16 %v1816_v40, %v1811_v39  ;;  %v1849_v33 = vld [vmem:[%s5501_s1 + $0x960] sm:$0xff]  ;;  %v1851_v40 = vld [vmem:[%s5501_s1 + $0x970] sm:$0xff] }
 0x1db   : > { %4228 = vmatpush1.bf16.msra.mxu1 %v4227_v50  ;;  %4548 = vmatpush1.bf16.msra.mxu0 %v4547_v56  ;;  %v4565_v50 = vpack.c.bf16 %v1787_v48, %v1782_v47  ;;  %v1781_v56 = vld [vmem:[%s5501_s1 + $0x740] sm:$0xff]  ;;  %v1819_v47 = vld [vmem:[%s5501_s1 + $0x870] sm:$0xff]  ;;  %v1824_v48 = vld [vmem:[%s5501_s1 + $0x898] sm:$0xff] }
 0x1dc   : > { %4230 = vmatprep.subr.bf16.mxu1 %v4229_v61  ;;  %4550 = vmatprep.subr.bf16.mxu0 %v4549_v62  ;;  %v1795_v61 = vld [vmem:[%s5501_s1 + $0x7b0] sm:$0xff]  ;;  %v1792_v62 = vld [vmem:[%s5501_s1 + $0x798] sm:$0xff]  ;;  %v4567_v2 = vpack.c.bf16 %v1786_v57, %v1781_v56  ;;  %v1837_v56 = vld [vmem:[%s5501_s1 + $0x900] sm:$0xff]  ;;  %v4263_v57 = vpack.c.bf16 %v1824_v48, %v1819_v47 }
 0x1df   : > { %4232 = vmatpush1.bf16.msra.mxu1 %v4231_v7  ;;  %4552 = vmatpush1.bf16.msra.mxu0 %v4551_v8  ;;  %v4249_v7 = vpack.c.bf16 %v1795_v61, %v1790_v59  ;;  %v4569_v8 = vpack.c.bf16 %v1797_v63, %v1792_v62  ;;  %v1829_v61 = vld [vmem:[%s5501_s1 + $0x8c0] sm:$0xff]  ;;  %v1834_v62 = vld [vmem:[%s5501_s1 + $0x8e8] sm:$0xff]  ;;  %v737_v63 = vsub.s32 5, %v5669_v29 }
 0x1e0   : > { %4234 = vmatprep.subr.bf16.mxu1 %v4233_v11  ;;  %4554 = vmatprep.subr.bf16.mxu0 %v4553_v12  ;;  %v1800_v11 = vld [vmem:[%s5501_s1 + $0x7d8] sm:$0xff]  ;;  %v1802_v12 = vld [vmem:[%s5501_s1 + $0x7e8] sm:$0xff] }
 0x1e3   : > { %4236 = vmatpush1.bf16.msra.mxu1 %v4235_v19  ;;  %4556 = vmatpush1.bf16.msra.mxu0 %v4555_v20  ;;  %v4253_v19 = vpack.c.bf16 %v1805_v5, %v1800_v11  ;;  %v4573_v20 = vpack.c.bf16 %v1807_v13, %v1802_v12  ;;  %v1847_v11 = vld [vmem:[%s5501_s1 + $0x950] sm:$0xff]  ;;  %v4267_v12 = vpack.c.bf16 %v1834_v62, %v1829_v61 }
 0x1e4   : > { %4238 = vmatprep.subr.bf16.mxu1 %v4237_v23  ;;  %4558 = vmatprep.subr.bf16.mxu0 %v4557_v24  ;;  %v1810_v23 = vld [vmem:[%s5501_s1 + $0x828] sm:$0xff]  ;;  %v1815_v24 = vld [vmem:[%s5501_s1 + $0x850] sm:$0xff]  ;;  %v4589_v17 = vpack.c.bf16 %v1847_v11, %v1842_v10  ;;  %v1880_v10 = vld [vmem:[%s5501_s1 + $0xa58] sm:$0xff] }
 0x1e7   : > { %4240 = vmatpush1.bf16.msra.mxu1 %v4239_v35  ;;  %4560 = vmatpush1.bf16.msra.mxu0 %v4559_v38  ;;  %v4257_v35 = vpack.c.bf16 %v1815_v24, %v1810_v23  ;;  %v4577_v38 = vpack.c.bf16 %v1817_v27, %v1812_v26  ;;  %v1855_v23 = vld [vmem:[%s5501_s1 + $0x990] sm:$0xff]  ;;  %v1852_v24 = vld [vmem:[%s5501_s1 + $0x978] sm:$0xff]  ;;  %v1857_v26 = vld [vmem:[%s5501_s1 + $0x9a0] sm:$0xff] }
 0x1e8   : > { %4242 = vmatprep.subr.bf16.mxu1 %v4241_v41  ;;  %4562 = vmatprep.subr.bf16.mxu0 %v4561_v42  ;;  %v1820_v41 = vld [vmem:[%s5501_s1 + $0x878] sm:$0xff]  ;;  %v1825_v42 = vld [vmem:[%s5501_s1 + $0x8a0] sm:$0xff]  ;;  %v4593_v39 = vpack.c.bf16 %v1857_v26, %v1852_v24  ;;  %v1890_v24 = vld [vmem:[%s5501_s1 + $0xaa8] sm:$0xff] }
 0x1e9   : > { %v4261_v49 = vpack.c.bf16 %v1825_v42, %v1820_v41  ;;  %v1856_v41 = vld [vmem:[%s5501_s1 + $0x998] sm:$0xff] }
 0x1ea   : > { %v1860_v42 = vld [vmem:[%s5501_s1 + $0x9b8] sm:$0xff]  ;;  %v4595_v48 = vpack.c.bf16 %v1856_v41, %v1851_v40 }
 0x1eb   : > { %4244 = vmatpush1.bf16.msra.mxu1 %v4243_v51  ;;  %4564 = vmatpush1.bf16.msra.mxu0 %v4563_v4  ;;  %v4581_v51 = vpack.c.bf16 %v1827_v44, %v1822_v43  ;;  %v1821_v4 = vld [vmem:[%s5501_s1 + $0x880] sm:$0xff] }
 0x1ec   : > { %4246 = vmatprep.subr.bf16.mxu1 %v4245_v54  ;;  %4566 = vmatprep.subr.bf16.mxu0 %v4565_v50  ;;  %v1835_v54 = vld [vmem:[%s5501_s1 + $0x8f0] sm:$0xff]  ;;  %v1832_v50 = vld [vmem:[%s5501_s1 + $0x8d8] sm:$0xff]  ;;  %v4583_v59 = vpack.c.bf16 %v1826_v52, %v1821_v4  ;;  %v1865_v44 = vld [vmem:[%s5501_s1 + $0x9e0] sm:$0xff] }
 0x1ed   : > { %v4585_v3 = vpack.c.bf16 %v1837_v56, %v1832_v50  ;;  %v4277_v4 = vpack.c.bf16 %v1865_v44, %v1860_v42  ;;  %v1870_v50 = vld [vmem:[%s5501_s1 + $0xa08] sm:$0xff]  ;;  %v1875_v56 = vld [vmem:[%s5501_s1 + $0xa30] sm:$0xff]  ;;  %v1900_v44 = vld [vmem:[%s5501_s1 + $0xaf8] sm:$0xff] }
 0x1ee   : > { %v1891_v42 = vld [vmem:[%s5501_s1 + $0xab0] sm:$0xff] }
 0x1ef   : > { %4248 = vmatpush1.bf16.msra.mxu1 %v4247_v1  ;;  %4568 = vmatpush1.bf16.msra.mxu0 %v4567_v2  ;;  %v5080_v1 = vpop.eup %5079  ;;  %v4265_v2 = vpack.c.bf16 %v1835_v54, %v1830_v53  ;;  %v1861_v53 = vld [vmem:[%s5501_s1 + $0x9c0] sm:$0xff]  ;;  %v1866_v54 = vld [vmem:[%s5501_s1 + $0x9e8] sm:$0xff] }
 0x1f0   : > { %4250 = vmatprep.subr.bf16.mxu1 %v4249_v7  ;;  %4570 = vmatprep.subr.bf16.mxu0 %v4569_v8  ;;  %v1836_v7 = vld [vmem:[%s5501_s1 + $0x8f8] sm:$0xff]  ;;  %v1511_v5 = vadd.f32 1.0, %v5080_v1  ;;  %v1869_v1 = vld [vmem:[%s5501_s1 + $0xa00] sm:$0xff] }
 0x1f1   : > { %v1840_v8 = vld [vmem:[%s5501_s1 + $0x918] sm:$0xff]  ;;  %v4587_v13 = vpack.c.bf16 %v1836_v7, %v1831_v6  ;;  %v4281_v6 = vpack.c.bf16 %v1875_v56, %v1870_v50  ;;  %v1906_v50 = vld [vmem:[%s5501_s1 + $0xb28] sm:$0xff] }
 0x1f2   : > { %v4269_v16 = vpack.c.bf16 %v1845_v9, %v1840_v8  ;;  %5081 = vrcp.f32 %v1511_v5  ;;  %v1871_v8 = vld [vmem:[%s5501_s1 + $0xa10] sm:$0xff]  ;;  %v1876_v9 = vld [vmem:[%s5501_s1 + $0xa38] sm:$0xff]  ;;  %v1885_v5 = vld [vmem:[%s5501_s1 + $0xa80] sm:$0xff] }
 0x1f3   : > { %4252 = vmatpush1.bf16.msra.mxu1 %v4251_v14  ;;  %4572 = vmatpush1.bf16.msra.mxu0 %v4571_v15  ;;  %v1844_v14 = vld [vmem:[%s5501_s1 + $0x938] sm:$0xff]  ;;  %v738_v15 = vrot.slane %v5678_v37, %v737_v63  ;;  %v4599_v63 = vpack.c.bf16 %v1866_v54, %v1861_v53  ;;  %v1901_v54 = vld [vmem:[%s5501_s1 + $0xb00] sm:$0xff]  ;;  %v1910_v56 = vld [vmem:[%s5501_s1 + $0xb48] sm:$0xff] }
 0x1f4   : > { %4254 = vmatprep.subr.bf16.mxu1 %v4253_v19  ;;  %4574 = vmatprep.subr.bf16.mxu0 %v4573_v20  ;;  %v1841_v19 = vld [vmem:[%s5501_s1 + $0x920] sm:$0xff]  ;;  %v1846_v20 = vld [vmem:[%s5501_s1 + $0x948] sm:$0xff] }
 0x1f7   : > { %4256 = vmatpush1.bf16.msra.mxu1 %v4255_v28  ;;  %4576 = vmatpush1.bf16.msra.mxu0 %v4575_v30  ;;  %v4271_v28 = vpack.c.bf16 %v1844_v14, %v1839_v18  ;;  %v4591_v30 = vpack.c.bf16 %v1846_v20, %v1841_v19  ;;  %v4603_v14 = vpack.c.bf16 %v1876_v9, %v1871_v8  ;;  %v1911_v9 = vld [vmem:[%s5501_s1 + $0xb50] sm:$0xff] }
 0x1f8   : > { %4258 = vmatprep.subr.bf16.mxu1 %v4257_v35  ;;  %4578 = vmatprep.subr.bf16.mxu0 %v4577_v38  ;;  %v1854_v35 = vld [vmem:[%s5501_s1 + $0x988] sm:$0xff]  ;;  %v4273_v38 = vpack.c.bf16 %v1855_v23, %v1850_v21  ;;  %v4285_v19 = vpack.c.bf16 %v1885_v5, %v1880_v10  ;;  %v1881_v21 = vld [vmem:[%s5501_s1 + $0xa60] sm:$0xff]  ;;  %v1916_v10 = vld [vmem:[%s5501_s1 + $0xb78] sm:$0xff] }
 0x1f9   : > { %v4275_v47 = vpack.c.bf16 %v1854_v35, %v1849_v33  ;;  %v1886_v23 = vld [vmem:[%s5501_s1 + $0xa88] sm:$0xff]  ;;  %v1925_v5 = vld [vmem:[%s5501_s1 + $0xbc0] sm:$0xff] }
 0x1fa   : > { %v4607_v35 = vpack.c.bf16 %v1886_v23, %v1881_v21 }
 0x1fb   : > { %4260 = vmatpush1.bf16.msra.mxu1 %v4259_v45  ;;  %4580 = vmatpush1.bf16.msra.mxu0 %v4579_v46  ;;  %v1862_v45 = vld [vmem:[%s5501_s1 + $0x9c8] sm:$0xff]  ;;  %v1867_v46 = vld [vmem:[%s5501_s1 + $0x9f0] sm:$0xff] }
 0x1fc   : > { %4262 = vmatprep.subr.bf16.mxu1 %v4261_v49  ;;  %4582 = vmatprep.subr.bf16.mxu0 %v4581_v51  ;;  %v1859_v49 = vld [vmem:[%s5501_s1 + $0x9b0] sm:$0xff]  ;;  %v1864_v51 = vld [vmem:[%s5501_s1 + $0x9d8] sm:$0xff]  ;;  %v4597_v52 = vpack.c.bf16 %v1867_v46, %v1862_v45  ;;  %v5082_v11 = vpop.eup %5081  ;;  %v1905_v45 = vld [vmem:[%s5501_s1 + $0xb20] sm:$0xff] }
 0x1fd   : > { %v4279_v62 = vpack.c.bf16 %v1864_v51, %v1859_v49  ;;  %v1902_v46 = vld [vmem:[%s5501_s1 + $0xb08] sm:$0xff]  ;;  %v1899_v51 = vld [vmem:[%s5501_s1 + $0xaf0] sm:$0xff] }
 0x1ff   : > { %4264 = vmatpush1.bf16.msra.mxu1 %v4263_v57  ;;  %4584 = vmatpush1.bf16.msra.mxu0 %v4583_v59  ;;  %v1872_v57 = vld [vmem:[%s5501_s1 + $0xa18] sm:$0xff]  ;;  %v1877_v59 = vld [vmem:[%s5501_s1 + $0xa40] sm:$0xff] }
 0x200   : > { %4266 = vmatprep.subr.bf16.mxu1 %v4265_v2  ;;  %4586 = vmatprep.subr.bf16.mxu0 %v4585_v3  ;;  %v1874_v2 = vld [vmem:[%s5501_s1 + $0xa28] sm:$0xff]  ;;  %v4601_v7 = vpack.c.bf16 %v1877_v59, %v1872_v57  ;;  %v1915_v57 = vld [vmem:[%s5501_s1 + $0xb70] sm:$0xff]  ;;  %v1912_v59 = vld [vmem:[%s5501_s1 + $0xb58] sm:$0xff] }
 0x201   : > { %v5840_v22 = vpop.f32.mrb[2].mxu0  ;;  %v4283_v18 = vpack.c.bf16 %v1874_v2, %v1869_v1  ;;  %v4615_v1 = vpack.c.bf16 %v1906_v50, %v1901_v54  ;;  %v1909_v2 = vld [vmem:[%s5501_s1 + $0xb40] sm:$0xff] }
 0x202   : > { %v1192_v27 = vpop.f32.mrb[3].mxu0 }
 0x203   : > { %4268 = vmatpush1.bf16.msra.mxu1 %v4267_v12  ;;  %4588 = vmatpush1.bf16.msra.mxu0 %v4587_v13  ;;  %v5845_v32 = vadd.f32 %v1192_v27, %v738_v15  ;;  %v1882_v12 = vld [vmem:[%s5501_s1 + $0xa68] sm:$0xff]  ;;  %v1887_v13 = vld [vmem:[%s5501_s1 + $0xa90] sm:$0xff] }
 0x204   : > { %4270 = vmatprep.subr.bf16.mxu1 %v4269_v16  ;;  %4590 = vmatprep.subr.bf16.mxu0 %v4589_v17  ;;  %v1879_v15 = vld [vmem:[%s5501_s1 + $0xa50] sm:$0xff]  ;;  %v1884_v16 = vld [vmem:[%s5501_s1 + $0xa78] sm:$0xff]  ;;  %v5879_v17 = vmul.f32 %v5082_v11, %v5790_v0  ;;  %v4605_v20 = vpack.c.bf16 %v1887_v13, %v1882_v12  ;;  %v1922_v12 = vld [vmem:[%s5501_s1 + $0xba8] sm:$0xff] }
 0x205   : > { %v3569_v43 = vmul.f32 -1.442695, %v5845_v32  ;;  %v1895_v27 = vld [vmem:[%s5501_s1 + $0xad0] sm:$0xff]  ;;  %v4287_v0 = vpack.c.bf16 %v1884_v16, %v1879_v15  ;;  %v1920_v11 = vld [vmem:[%s5501_s1 + $0xb98] sm:$0xff]  ;;  %v4619_v16 = vpack.c.bf16 %v1916_v10, %v1911_v9  ;;  %v1954_v9 = vld [vmem:[%s5501_s1 + $0xca8] sm:$0xff] }
 0x206   : > { %v4289_v40 = vpack.c.bf16 %v1895_v27, %v1890_v24  ;;  %v1927_v13 = vld [vmem:[%s5501_s1 + $0xbd0] sm:$0xff]  ;;  %v4301_v21 = vpack.c.bf16 %v1925_v5, %v1920_v11  ;;  %v1921_v24 = vld [vmem:[%s5501_s1 + $0xba0] sm:$0xff]  ;;  %v1930_v27 = vld [vmem:[%s5501_s1 + $0xbe8] sm:$0xff] }
 0x207   : > { %4272 = vmatpush1.bf16.msra.mxu1 %v4271_v28  ;;  %4592 = vmatpush1.bf16.msra.mxu0 %v4591_v30  ;;  %5083 = vpow2.f32 %v3569_v43  ;;  %v5864_v61 = vpop.f32.mrb[2].mxu1  ;;  %v1892_v28 = vld [vmem:[%s5501_s1 + $0xab8] sm:$0xff]  ;;  %v1897_v30 = vld [vmem:[%s5501_s1 + $0xae0] sm:$0xff]  ;;  %v4621_v23 = vpack.c.bf16 %v1927_v13, %v1922_v12  ;;  %v1951_v12 = vld [vmem:[%s5501_s1 + $0xc90] sm:$0xff] }
 0x208   : > { %4274 = vmatprep.subr.bf16.mxu1 %v4273_v38  ;;  %4594 = vmatprep.subr.bf16.mxu0 %v4593_v39  ;;  %v5868_v3 = vpop.f32.mrb[3].mxu1  ;;  %v1889_v38 = vld [vmem:[%s5501_s1 + $0xaa0] sm:$0xff]  ;;  %v1894_v39 = vld [vmem:[%s5501_s1 + $0xac8] sm:$0xff]  ;;  %v4609_v41 = vpack.c.bf16 %v1897_v30, %v1892_v28  ;;  %v1896_v43 = vld [vmem:[%s5501_s1 + $0xad8] sm:$0xff] }
 0x209   : > { %v4611_v49 = vpack.c.bf16 %v1896_v43, %v1891_v42  ;;  %v1932_v28 = vld [vmem:[%s5501_s1 + $0xbf8] sm:$0xff]  ;;  %v1937_v30 = vld [vmem:[%s5501_s1 + $0xc20] sm:$0xff]  ;;  %v1931_v43 = vld [vmem:[%s5501_s1 + $0xbf0] sm:$0xff] }
 0x20a   : > { %v4625_v42 = vpack.c.bf16 %v1937_v30, %v1932_v28  ;;  %v1960_v13 = vld [vmem:[%s5501_s1 + $0xcd8] sm:$0xff]  ;;  %v1966_v28 = vld [vmem:[%s5501_s1 + $0xd08] sm:$0xff] }
 0x20b   : > { %4276 = vmatpush1.bf16.msra.mxu1 %v4275_v47  ;;  %4596 = vmatpush1.bf16.msra.mxu0 %v4595_v48  ;;  %v1907_v47 = vld [vmem:[%s5501_s1 + $0xb30] sm:$0xff]  ;;  %v4291_v48 = vpack.c.bf16 %v1894_v39, %v1889_v38  ;;  %v1929_v38 = vld [vmem:[%s5501_s1 + $0xbe0] sm:$0xff]  ;;  %v1934_v39 = vld [vmem:[%s5501_s1 + $0xc08] sm:$0xff] }
 0x20c   : > { %4278 = vmatprep.subr.bf16.mxu1 %v4277_v4  ;;  %4598 = vmatprep.subr.bf16.mxu0 %v4597_v52  ;;  %v1904_v4 = vld [vmem:[%s5501_s1 + $0xb18] sm:$0xff]  ;;  %v4293_v52 = vpack.c.bf16 %v1905_v45, %v1900_v44  ;;  %v4613_v53 = vpack.c.bf16 %v1907_v47, %v1902_v46  ;;  %v1945_v46 = vld [vmem:[%s5501_s1 + $0xc60] sm:$0xff]  ;;  %v1942_v47 = vld [vmem:[%s5501_s1 + $0xc48] sm:$0xff] }
 0x20d   : > { %v1936_v44 = vld [vmem:[%s5501_s1 + $0xc18] sm:$0xff]  ;;  %v1970_v30 = vld [vmem:[%s5501_s1 + $0xd28] sm:$0xff] }
 0x20e   : > { %v1940_v45 = vld [vmem:[%s5501_s1 + $0xc38] sm:$0xff] }
 0x20f   : > { %4280 = vmatpush1.bf16.msra.mxu1 %v4279_v62  ;;  %4600 = vmatpush1.bf16.msra.mxu0 %v4599_v63  ;;  %v1917_v62 = vld [vmem:[%s5501_s1 + $0xb80] sm:$0xff]  ;;  %v4295_v63 = vpack.c.bf16 %v1904_v4, %v1899_v51  ;;  %v4307_v51 = vpack.c.bf16 %v1934_v39, %v1929_v38  ;;  %v4627_v4 = vpack.c.bf16 %v1936_v44, %v1931_v43 }
 0x210   : > { %4282 = vmatprep.subr.bf16.mxu1 %v4281_v6  ;;  %4602 = vmatprep.subr.bf16.mxu0 %v4601_v7  ;;  %v1914_v6 = vld [vmem:[%s5501_s1 + $0xb68] sm:$0xff]  ;;  %v4297_v7 = vpack.c.bf16 %v1915_v57, %v1910_v56  ;;  %v4617_v8 = vpack.c.bf16 %v1917_v62, %v1912_v59  ;;  %v4309_v50 = vpack.c.bf16 %v1945_v46, %v1940_v45  ;;  %v1941_v57 = vld [vmem:[%s5501_s1 + $0xc40] sm:$0xff]  ;;  %v1971_v45 = vld [vmem:[%s5501_s1 + $0xd30] sm:$0xff] }
 0x211   : > { %v5084_v26 = vpop.eup %5083  ;;  %v4299_v15 = vpack.c.bf16 %v1914_v6, %v1909_v2  ;;  %v1946_v59 = vld [vmem:[%s5501_s1 + $0xc68] sm:$0xff]  ;;  %v1957_v2 = vld [vmem:[%s5501_s1 + $0xcc0] sm:$0xff]  ;;  %v1976_v46 = vld [vmem:[%s5501_s1 + $0xd58] sm:$0xff] }
 0x212   : > { %v1514_v33 = vadd.f32 1.0, %v5084_v26  ;;  %2512 = vmatmul.mubr.f32.vlgmr.msra.gmra.mrb[4].mxu1 %v5879_v17  ;;  %2867 = vmatmul.mubr.f32.vlgmr.msra.gmra.mrb[6].mxu0 %v5879_v17  ;;  %v1926_v26 = vld [vmem:[%s5501_s1 + $0xbc8] sm:$0xff]  ;;  %v1977_v38 = vld [vmem:[%s5501_s1 + $0xd60] sm:$0xff] }
 0x213   : > { %4284 = vmatpush1.bf16.msra.mxu1 %v4283_v18  ;;  %4604 = vmatpush1.bf16.msra.mxu0 %v4603_v14  ;;  %v1950_v62 = vld [vmem:[%s5501_s1 + $0xc88] sm:$0xff] }
 0x214   : > { %5085 = vrcp.f32 %v1514_v33  ;;  %4286 = vmatprep.subr.bf16.mxu1 %v4285_v19  ;;  %4606 = vmatprep.subr.bf16.mxu0 %v4605_v20  ;;  %v1919_v19 = vld [vmem:[%s5501_s1 + $0xb90] sm:$0xff]  ;;  %v1924_v20 = vld [vmem:[%s5501_s1 + $0xbb8] sm:$0xff]  ;;  %v733_v33 = vsub.s32 4, %v5669_v29 }
 0x217   : > { %4288 = vmatpush1.bf16.msra.mxu1 %v4287_v0  ;;  %4608 = vmatpush1.bf16.msra.mxu0 %v4607_v35  ;;  %v4303_v0 = vpack.c.bf16 %v1924_v20, %v1919_v19  ;;  %v4623_v35 = vpack.c.bf16 %v1926_v26, %v1921_v24 }
 0x218   : > { %4290 = vmatprep.subr.bf16.mxu1 %v4289_v40  ;;  %4610 = vmatprep.subr.bf16.mxu0 %v4609_v41  ;;  %v745_v40 = vsub.s32 7, %v5669_v29 }
 0x21a   : > { %v746_v54 = vrot.slane %v5678_v37, %v745_v40 }
 0x21b   : > { %4292 = vmatpush1.bf16.msra.mxu1 %v4291_v48  ;;  %4612 = vmatpush1.bf16.msra.mxu0 %v4611_v49  ;;  %v1947_v48 = vld [vmem:[%s5501_s1 + $0xc70] sm:$0xff]  ;;  %v734_v49 = vrot.slane %v5678_v37, %v733_v33 }
 0x21c   : > { %4294 = vmatprep.subr.bf16.mxu1 %v4293_v52  ;;  %4614 = vmatprep.subr.bf16.mxu0 %v4613_v53  ;;  %v1939_v52 = vld [vmem:[%s5501_s1 + $0xc30] sm:$0xff]  ;;  %v1944_v53 = vld [vmem:[%s5501_s1 + $0xc58] sm:$0xff]  ;;  %v4629_v56 = vpack.c.bf16 %v1947_v48, %v1942_v47  ;;  %v5954_v10 = vadd.f32 %v5868_v3, %v746_v54  ;;  %v1985_v48 = vld [vmem:[%s5501_s1 + $0xda0] sm:$0xff] }
 0x21d   : > { %v5949_v6 = vadd.f32 %v5840_v22, %v734_v49  ;;  %v4311_v37 = vpack.c.bf16 %v1944_v53, %v1939_v52  ;;  %v1956_v22 = vld [vmem:[%s5501_s1 + $0xcb8] sm:$0xff]  ;;  %v1982_v49 = vld [vmem:[%s5501_s1 + $0xd88] sm:$0xff]  ;;  %v4643_v52 = vpack.c.bf16 %v1976_v46, %v1971_v45  ;;  %v1979_v53 = vld [vmem:[%s5501_s1 + $0xd70] sm:$0xff] }
 0x21e   : > { %v5086_v18 = vpop.eup %5085  ;;  %v4635_v20 = vpack.c.bf16 %v1956_v22, %v1951_v12  ;;  %v3571_v24 = vmul.f32 -1.442695, %v5954_v10  ;;  %v1980_v47 = vld [vmem:[%s5501_s1 + $0xd78] sm:$0xff]  ;;  %v1991_v22 = vld [vmem:[%s5501_s1 + $0xdd0] sm:$0xff] }
 0x21f   : > { %v5914_v14 = vmul.f32 %v5086_v18, %v5845_v32  ;;  %4296 = vmatpush1.bf16.msra.mxu1 %v4295_v63  ;;  %4616 = vmatpush1.bf16.msra.mxu0 %v4615_v1  ;;  %v1935_v32 = vld [vmem:[%s5501_s1 + $0xc10] sm:$0xff]  ;;  %v1952_v1 = vld [vmem:[%s5501_s1 + $0xc98] sm:$0xff]  ;;  %v1965_v18 = vld [vmem:[%s5501_s1 + $0xd00] sm:$0xff]  ;;  %v3568_v19 = vmul.f32 -1.442695, %v5949_v6 }
 0x220   : > { %4298 = vmatprep.subr.bf16.mxu1 %v4297_v7  ;;  %4618 = vmatprep.subr.bf16.mxu0 %v4617_v8  ;;  %v4305_v41 = vpack.c.bf16 %v1935_v32, %v1930_v27  ;;  %v1955_v63 = vld [vmem:[%s5501_s1 + $0xcb0] sm:$0xff]  ;;  %v4631_v7 = vpack.c.bf16 %v1946_v59, %v1941_v57  ;;  %v1949_v8 = vld [vmem:[%s5501_s1 + $0xc80] sm:$0xff]  ;;  %v4633_v5 = vpack.c.bf16 %v1957_v2, %v1952_v1  ;;  %v1984_v54 = vld [vmem:[%s5501_s1 + $0xd98] sm:$0xff] }
 0x221   : > { %2582 = vmatprep.mubr.f32.mxu1 %v5914_v14  ;;  %2937 = vmatprep.mubr.f32.mxu0 %v5914_v14  ;;  %v4313_v11 = vpack.c.bf16 %v1955_v63, %v1950_v62  ;;  %v4315_v3 = vpack.c.bf16 %v1954_v9, %v1949_v8  ;;  %v4317_v26 = vpack.c.bf16 %v1965_v18, %v1960_v13  ;;  %v1961_v32 = vld [vmem:[%s5501_s1 + $0xce0] sm:$0xff]  ;;  %5087 = vpow2.f32 %v3568_v19  ;;  %v1986_v59 = vld [vmem:[%s5501_s1 + $0xda8] sm:$0xff]  ;;  %v1995_v63 = vld [vmem:[%s5501_s1 + $0xdf0] sm:$0xff] }
 0x222   : > { %v4639_v40 = vpack.c.bf16 %v1966_v28, %v1961_v32  ;;  %5089 = vpow2.f32 %v3571_v24  ;;  %v1981_v57 = vld [vmem:[%s5501_s1 + $0xd80] sm:$0xff]  ;;  %v1990_v62 = vld [vmem:[%s5501_s1 + $0xdc8] sm:$0xff]  ;;  %v1992_v1 = vld [vmem:[%s5501_s1 + $0xdd8] sm:$0xff] }
 0x223   : > { %4300 = vmatpush1.bf16.msra.mxu1 %v4299_v15  ;;  %4620 = vmatpush1.bf16.msra.mxu0 %v4619_v16  ;;  %v1962_v15 = vld [vmem:[%s5501_s1 + $0xce8] sm:$0xff]  ;;  %v1967_v16 = vld [vmem:[%s5501_s1 + $0xd10] sm:$0xff]  ;;  %v1997_v2 = vld [vmem:[%s5501_s1 + $0xe00] sm:$0xff] }
 0x224   : > { %4302 = vmatprep.subr.bf16.mxu1 %v4301_v21  ;;  %4622 = vmatprep.subr.bf16.mxu0 %v4621_v23  ;;  %v1959_v21 = vld [vmem:[%s5501_s1 + $0xcd0] sm:$0xff]  ;;  %v1964_v23 = vld [vmem:[%s5501_s1 + $0xcf8] sm:$0xff]  ;;  %v4637_v27 = vpack.c.bf16 %v1967_v16, %v1962_v15  ;;  %v1989_v8 = vld [vmem:[%s5501_s1 + $0xdc0] sm:$0xff]  ;;  %v4649_v12 = vpack.c.bf16 %v1997_v2, %v1992_v1 }
 0x225   : > { %v4319_v39 = vpack.c.bf16 %v1964_v23, %v1959_v21  ;;  %v1994_v9 = vld [vmem:[%s5501_s1 + $0xde8] sm:$0xff]  ;;  %v1996_v13 = vld [vmem:[%s5501_s1 + $0xdf8] sm:$0xff]  ;;  %v2005_v16 = vld [vmem:[%s5501_s1 + $0xe40] sm:$0xff] }
 0x226   : > { %v2000_v18 = vld [vmem:[%s5501_s1 + $0xe18] sm:$0xff]  ;;  %v2002_v19 = vld [vmem:[%s5501_s1 + $0xe28] sm:$0xff]  ;;  %v4331_v21 = vpack.c.bf16 %v1994_v9, %v1989_v8  ;;  %v4651_v23 = vpack.c.bf16 %v1996_v13, %v1991_v22  ;;  %v1999_v24 = vld [vmem:[%s5501_s1 + $0xe10] sm:$0xff] }
 0x227   : > { %4304 = vmatpush1.bf16.msra.mxu1 %v4303_v0  ;;  %4624 = vmatpush1.bf16.msra.mxu0 %v4623_v35  ;;  %v1975_v0 = vld [vmem:[%s5501_s1 + $0xd50] sm:$0xff]  ;;  %v1972_v35 = vld [vmem:[%s5501_s1 + $0xd38] sm:$0xff]  ;;  %v4333_v32 = vpack.c.bf16 %v2005_v16, %v2000_v18  ;;  %v2030_v1 = vld [vmem:[%s5501_s1 + $0xf08] sm:$0xff] }
 0x228   : > { %4306 = vmatprep.subr.bf16.mxu1 %v4305_v41  ;;  %4626 = vmatprep.subr.bf16.mxu0 %v4625_v42  ;;  %v1969_v41 = vld [vmem:[%s5501_s1 + $0xd20] sm:$0xff]  ;;  %v1974_v42 = vld [vmem:[%s5501_s1 + $0xd48] sm:$0xff]  ;;  %v4321_v43 = vpack.c.bf16 %v1975_v0, %v1970_v30  ;;  %v4641_v44 = vpack.c.bf16 %v1977_v38, %v1972_v35  ;;  %v2015_v38 = vld [vmem:[%s5501_s1 + $0xe90] sm:$0xff] }
 0x229   : > { %v2001_v30 = vld [vmem:[%s5501_s1 + $0xe20] sm:$0xff]  ;;  %v2006_v0 = vld [vmem:[%s5501_s1 + $0xe48] sm:$0xff]  ;;  %v2035_v2 = vld [vmem:[%s5501_s1 + $0xf30] sm:$0xff] }
 0x22a   : > { %v2010_v35 = vld [vmem:[%s5501_s1 + $0xe68] sm:$0xff]  ;;  %v2031_v13 = vld [vmem:[%s5501_s1 + $0xf10] sm:$0xff]  ;;  %v2036_v18 = vld [vmem:[%s5501_s1 + $0xf38] sm:$0xff] }
 0x22b   : > { %4308 = vmatpush1.bf16.msra.mxu1 %v4307_v51  ;;  %4628 = vmatpush1.bf16.msra.mxu0 %v4627_v4  ;;  %v1987_v51 = vld [vmem:[%s5501_s1 + $0xdb0] sm:$0xff]  ;;  %v4323_v4 = vpack.c.bf16 %v1974_v42, %v1969_v41  ;;  %v4655_v42 = vpack.c.bf16 %v2006_v0, %v2001_v30  ;;  %v4337_v45 = vpack.c.bf16 %v2015_v38, %v2010_v35  ;;  %v2041_v0 = vld [vmem:[%s5501_s1 + $0xf60] sm:$0xff]  ;;  %v2046_v35 = vld [vmem:[%s5501_s1 + $0xf88] sm:$0xff] }
 0x22c   : > { %4310 = vmatprep.subr.bf16.mxu1 %v4309_v50  ;;  %4630 = vmatprep.subr.bf16.mxu0 %v4629_v56  ;;  %v4325_v50 = vpack.c.bf16 %v1985_v48, %v1980_v47  ;;  %v4645_v56 = vpack.c.bf16 %v1987_v51, %v1982_v49  ;;  %v2011_v47 = vld [vmem:[%s5501_s1 + $0xe70] sm:$0xff]  ;;  %v2016_v48 = vld [vmem:[%s5501_s1 + $0xe98] sm:$0xff]  ;;  %v2025_v51 = vld [vmem:[%s5501_s1 + $0xee0] sm:$0xff] }
 0x22d   : > { %v2020_v49 = vld [vmem:[%s5501_s1 + $0xeb8] sm:$0xff]  ;;  %v2050_v38 = vld [vmem:[%s5501_s1 + $0xfa8] sm:$0xff] }
 0x22f   : > { %4312 = vmatpush1.bf16.msra.mxu1 %v4311_v37  ;;  %4632 = vmatpush1.bf16.msra.mxu0 %v4631_v7  ;;  %v4327_v37 = vpack.c.bf16 %v1984_v54, %v1979_v53  ;;  %v4647_v7 = vpack.c.bf16 %v1986_v59, %v1981_v57  ;;  %v4659_v54 = vpack.c.bf16 %v2016_v48, %v2011_v47 }
 0x230   : > { %4314 = vmatprep.subr.bf16.mxu1 %v4313_v11  ;;  %4634 = vmatprep.subr.bf16.mxu0 %v4633_v5  ;;  %v5088_v11 = vpop.eup %5087  ;;  %v4329_v5 = vpack.c.bf16 %v1995_v63, %v1990_v62  ;;  %v4341_v57 = vpack.c.bf16 %v2025_v51, %v2020_v49  ;;  %v2021_v62 = vld [vmem:[%s5501_s1 + $0xec0] sm:$0xff]  ;;  %v2026_v63 = vld [vmem:[%s5501_s1 + $0xee8] sm:$0xff]  ;;  %v2051_v49 = vld [vmem:[%s5501_s1 + $0xfb0] sm:$0xff] }
 0x231   : > { %v5090_v15 = vpop.eup %5089  ;;  %v4663_v9 = vpack.c.bf16 %v2026_v63, %v2021_v62  ;;  %v2056_v51 = vld [vmem:[%s5501_s1 + $0xfd8] sm:$0xff] }
 0x233   : > { %4316 = vmatpush1.bf16.msra.mxu1 %v4315_v3  ;;  %4636 = vmatpush1.bf16.msra.mxu0 %v4635_v20  ;;  %v2007_v3 = vld [vmem:[%s5501_s1 + $0xe50] sm:$0xff]  ;;  %v1513_v20 = vadd.f32 1.0, %v5088_v11  ;;  %v2029_v11 = vld [vmem:[%s5501_s1 + $0xf00] sm:$0xff] }
 0x234   : > { %4318 = vmatprep.subr.bf16.mxu1 %v4317_v26  ;;  %4638 = vmatprep.subr.bf16.mxu0 %v4637_v27  ;;  %v2004_v26 = vld [vmem:[%s5501_s1 + $0xe38] sm:$0xff]  ;;  %v1516_v27 = vadd.f32 1.0, %v5090_v15  ;;  %v4653_v28 = vpack.c.bf16 %v2007_v3, %v2002_v19  ;;  %v2045_v19 = vld [vmem:[%s5501_s1 + $0xf80] sm:$0xff]  ;;  %v2042_v3 = vld [vmem:[%s5501_s1 + $0xf68] sm:$0xff] }
 0x235   : > { %5091 = vrcp.f32 %v1513_v20  ;;  %v4335_v41 = vpack.c.bf16 %v2004_v26, %v1999_v24  ;;  %v2040_v15 = vld [vmem:[%s5501_s1 + $0xf58] sm:$0xff]  ;;  %v2047_v20 = vld [vmem:[%s5501_s1 + $0xf90] sm:$0xff]  ;;  %v4667_v24 = vpack.c.bf16 %v2036_v18, %v2031_v13 }
 0x236   : > { %5093 = vrcp.f32 %v1516_v27  ;;  %v2039_v26 = vld [vmem:[%s5501_s1 + $0xf50] sm:$0xff]  ;;  %v2044_v27 = vld [vmem:[%s5501_s1 + $0xf78] sm:$0xff]  ;;  %v4669_v30 = vpack.c.bf16 %v2047_v20, %v2042_v3  ;;  %v2085_v3 = vld [vmem:[%s5501_s1 + $0x10c0] sm:$0xff] }
 0x237   : > { %4320 = vmatpush1.bf16.msra.mxu1 %v4319_v39  ;;  %4640 = vmatpush1.bf16.msra.mxu0 %v4639_v40  ;;  %v2012_v39 = vld [vmem:[%s5501_s1 + $0xe78] sm:$0xff]  ;;  %v2017_v40 = vld [vmem:[%s5501_s1 + $0xea0] sm:$0xff]  ;;  %v2082_v20 = vld [vmem:[%s5501_s1 + $0x10a8] sm:$0xff] }
 0x238   : > { %4322 = vmatprep.subr.bf16.mxu1 %v4321_v43  ;;  %4642 = vmatprep.subr.bf16.mxu0 %v4641_v44  ;;  %v2009_v43 = vld [vmem:[%s5501_s1 + $0xe60] sm:$0xff]  ;;  %v2014_v44 = vld [vmem:[%s5501_s1 + $0xe88] sm:$0xff]  ;;  %v4657_v46 = vpack.c.bf16 %v2017_v40, %v2012_v39  ;;  %v2055_v40 = vld [vmem:[%s5501_s1 + $0xfd0] sm:$0xff] }
 0x239   : > { %v4339_v53 = vpack.c.bf16 %v2014_v44, %v2009_v43  ;;  %v4671_v44 = vpack.c.bf16 %v2046_v35, %v2041_v0  ;;  %v4353_v47 = vpack.c.bf16 %v2055_v40, %v2050_v38  ;;  %v2081_v0 = vld [vmem:[%s5501_s1 + $0x10a0] sm:$0xff]  ;;  %v2086_v35 = vld [vmem:[%s5501_s1 + $0x10c8] sm:$0xff]  ;;  %v2095_v40 = vld [vmem:[%s5501_s1 + $0x1110] sm:$0xff] }
 0x23a   : > { %v2090_v38 = vld [vmem:[%s5501_s1 + $0x10e8] sm:$0xff] }
 0x23b   : > { %4324 = vmatpush1.bf16.msra.mxu1 %v4323_v4  ;;  %4644 = vmatpush1.bf16.msra.mxu0 %v4643_v52  ;;  %v2022_v4 = vld [vmem:[%s5501_s1 + $0xec8] sm:$0xff]  ;;  %v2027_v52 = vld [vmem:[%s5501_s1 + $0xef0] sm:$0xff] }
 0x23c   : > { %4326 = vmatprep.subr.bf16.mxu1 %v4325_v50  ;;  %4646 = vmatprep.subr.bf16.mxu0 %v4645_v56  ;;  %v2019_v50 = vld [vmem:[%s5501_s1 + $0xeb0] sm:$0xff]  ;;  %v2024_v56 = vld [vmem:[%s5501_s1 + $0xed8] sm:$0xff]  ;;  %v4661_v59 = vpack.c.bf16 %v2027_v52, %v2022_v4  ;;  %v2065_v52 = vld [vmem:[%s5501_s1 + $0x1020] sm:$0xff] }
 0x23d   : > { %v4343_v8 = vpack.c.bf16 %v2024_v56, %v2019_v50  ;;  %v2060_v4 = vld [vmem:[%s5501_s1 + $0xff8] sm:$0xff]  ;;  %v4675_v56 = vpack.c.bf16 %v2056_v51, %v2051_v49  ;;  %v4369_v49 = vpack.c.bf16 %v2095_v40, %v2090_v38  ;;  %v2119_v38 = vld [vmem:[%s5501_s1 + $0x11d0] sm:$0xff] }
 0x23e   : > { %v4357_v62 = vpack.c.bf16 %v2065_v52, %v2060_v4  ;;  %v2096_v4 = vld [vmem:[%s5501_s1 + $0x1118] sm:$0xff] }
 0x23f   : > { %4328 = vmatpush1.bf16.msra.mxu1 %v4327_v37  ;;  %4648 = vmatpush1.bf16.msra.mxu0 %v4647_v7  ;;  %v2032_v37 = vld [vmem:[%s5501_s1 + $0xf18] sm:$0xff]  ;;  %v2037_v7 = vld [vmem:[%s5501_s1 + $0xf40] sm:$0xff]  ;;  %v5092_v16 = vpop.eup %5091 }
 0x240   : > { %4330 = vmatprep.subr.bf16.mxu1 %v4329_v5  ;;  %4650 = vmatprep.subr.bf16.mxu0 %v4649_v12  ;;  %v2034_v5 = vld [vmem:[%s5501_s1 + $0xf28] sm:$0xff]  ;;  %v4345_v12 = vpack.c.bf16 %v2035_v2, %v2030_v1  ;;  %v4665_v22 = vpack.c.bf16 %v2037_v7, %v2032_v37  ;;  %v2061_v1 = vld [vmem:[%s5501_s1 + $0x1000] sm:$0xff]  ;;  %v2075_v7 = vld [vmem:[%s5501_s1 + $0x1070] sm:$0xff] }
 0x241   : > { %v2066_v2 = vld [vmem:[%s5501_s1 + $0x1028] sm:$0xff]  ;;  %v2100_v52 = vld [vmem:[%s5501_s1 + $0x1138] sm:$0xff] }
 0x242   : > { %v2070_v37 = vld [vmem:[%s5501_s1 + $0x1048] sm:$0xff]  ;;  %v2124_v40 = vld [vmem:[%s5501_s1 + $0x11f8] sm:$0xff] }
 0x243   : > { %4332 = vmatpush1.bf16.msra.mxu1 %v4331_v21  ;;  %4652 = vmatpush1.bf16.msra.mxu0 %v4651_v23  ;;  %v5094_v21 = vpop.eup %5093  ;;  %v4347_v23 = vpack.c.bf16 %v2034_v5, %v2029_v11  ;;  %v4679_v5 = vpack.c.bf16 %v2066_v2, %v2061_v1  ;;  %v4361_v13 = vpack.c.bf16 %v2075_v7, %v2070_v37  ;;  %v2099_v1 = vld [vmem:[%s5501_s1 + $0x1130] sm:$0xff]  ;;  %v2104_v2 = vld [vmem:[%s5501_s1 + $0x1158] sm:$0xff] }
 0x244   : > { %4334 = vmatprep.subr.bf16.mxu1 %v4333_v32  ;;  %4654 = vmatprep.subr.bf16.mxu0 %v4653_v28  ;;  %v6031_v32 = vmul.f32 %v5092_v16, %v5949_v6  ;;  %v4349_v28 = vpack.c.bf16 %v2045_v19, %v2040_v15  ;;  %v6037_v39 = vmul.f32 %v5094_v21, %v5954_v10  ;;  %v2071_v15 = vld [vmem:[%s5501_s1 + $0x1050] sm:$0xff]  ;;  %v2076_v16 = vld [vmem:[%s5501_s1 + $0x1078] sm:$0xff] }
 0x245   : > { %v4351_v10 = vpack.c.bf16 %v2044_v27, %v2039_v26  ;;  %v2080_v19 = vld [vmem:[%s5501_s1 + $0x1098] sm:$0xff]  ;;  %v2087_v21 = vld [vmem:[%s5501_s1 + $0x10d0] sm:$0xff] }
 0x246   : > { %v2079_v26 = vld [vmem:[%s5501_s1 + $0x1090] sm:$0xff]  ;;  %v2084_v27 = vld [vmem:[%s5501_s1 + $0x10b8] sm:$0xff] }
 0x247   : > { %4336 = vmatpush1.bf16.msra.mxu1 %v4335_v41  ;;  %4656 = vmatpush1.bf16.msra.mxu0 %v4655_v42  ;;  %v2052_v41 = vld [vmem:[%s5501_s1 + $0xfb8] sm:$0xff]  ;;  %v2057_v42 = vld [vmem:[%s5501_s1 + $0xfe0] sm:$0xff] }
 0x248   : > { %4338 = vmatprep.subr.bf16.mxu1 %v4337_v45  ;;  %4658 = vmatprep.subr.bf16.mxu0 %v4657_v46  ;;  %v2049_v45 = vld [vmem:[%s5501_s1 + $0xfa0] sm:$0xff]  ;;  %v2054_v46 = vld [vmem:[%s5501_s1 + $0xfc8] sm:$0xff]  ;;  %v4673_v48 = vpack.c.bf16 %v2057_v42, %v2052_v41  ;;  %v2092_v41 = vld [vmem:[%s5501_s1 + $0x10f8] sm:$0xff] }
 0x249   : > { %v4355_v50 = vpack.c.bf16 %v2054_v46, %v2049_v45  ;;  %v2097_v42 = vld [vmem:[%s5501_s1 + $0x1120] sm:$0xff]  ;;  %v4687_v45 = vpack.c.bf16 %v2086_v35, %v2081_v0 }
 0x24a   : > { %v2089_v46 = vld [vmem:[%s5501_s1 + $0x10e0] sm:$0xff]  ;;  %v4689_v51 = vpack.c.bf16 %v2097_v42, %v2092_v41 }
 0x24b   : > { %4340 = vmatpush1.bf16.msra.mxu1 %v4339_v53  ;;  %4660 = vmatpush1.bf16.msra.mxu0 %v4659_v54  ;;  %v2062_v53 = vld [vmem:[%s5501_s1 + $0x1008] sm:$0xff]  ;;  %v2067_v54 = vld [vmem:[%s5501_s1 + $0x1030] sm:$0xff] }
 0x24c   : > { %4342 = vmatprep.subr.bf16.mxu1 %v4341_v57  ;;  %4662 = vmatprep.subr.bf16.mxu0 %v4661_v59  ;;  %v2059_v57 = vld [vmem:[%s5501_s1 + $0xff0] sm:$0xff]  ;;  %v2064_v59 = vld [vmem:[%s5501_s1 + $0x1018] sm:$0xff]  ;;  %v4677_v63 = vpack.c.bf16 %v2067_v54, %v2062_v53  ;;  %v2105_v54 = vld [vmem:[%s5501_s1 + $0x1160] sm:$0xff] }
 0x24d   : > { %v4359_v11 = vpack.c.bf16 %v2064_v59, %v2059_v57  ;;  %v6088_v53 = vld [vmem:[#allocation4 + $0x8] sm:$0x3]  ;;  %v5110_v57 = vld [vmem:[#allocation4] sm:$0xff]  ;;  %v4373_v7 = vpack.c.bf16 %v2105_v54, %v2100_v52  ;;  %v2129_v52 = vld [vmem:[%s5501_s1 + $0x1220] sm:$0xff] }
 0x24e   : > { %v754_v37 = vrot.slane %v6088_v53, %v5681_v55  ;;  %v2134_v54 = vld [vmem:[%s5501_s1 + $0x1248] sm:$0xff] }
 0x24f   : > { %4344 = vmatpush1.bf16.msra.mxu1 %v4343_v8  ;;  %4664 = vmatpush1.bf16.msra.mxu0 %v4663_v9  ;;  %v2072_v8 = vld [vmem:[%s5501_s1 + $0x1058] sm:$0xff]  ;;  %v2077_v9 = vld [vmem:[%s5501_s1 + $0x1080] sm:$0xff] }
 0x250   : > { %4346 = vmatprep.subr.bf16.mxu1 %v4345_v12  ;;  %4666 = vmatprep.subr.bf16.mxu0 %v4665_v22  ;;  %v2069_v12 = vld [vmem:[%s5501_s1 + $0x1040] sm:$0xff]  ;;  %v2074_v22 = vld [vmem:[%s5501_s1 + $0x1068] sm:$0xff]  ;;  %v4681_v18 = vpack.c.bf16 %v2077_v9, %v2072_v8 }
 0x251   : > { %v6042_v43 = vpop.f32.mrb[4].mxu0  ;;  %v2101_v9 = vld [vmem:[%s5501_s1 + $0x1140] sm:$0xff] }
 0x252   : > { %2583 = vmatmul.mubr.f32.vlgmr.msra.gmra.mrb[4].mxu1 %v6031_v32  ;;  %2938 = vmatmul.mubr.f32.vlgmr.msra.gmra.mrb[6].mxu0 %v6031_v32  ;;  %v6046_v6 = vpop.f32.mrb[5].mxu0 }
 0x253   : > { %4348 = vmatpush1.bf16.msra.mxu1 %v4347_v23  ;;  %4668 = vmatpush1.bf16.msra.mxu0 %v4667_v24  ;;  %v4363_v23 = vpack.c.bf16 %v2074_v22, %v2069_v12  ;;  %v4683_v24 = vpack.c.bf16 %v2076_v16, %v2071_v15  ;;  %v2115_v12 = vld [vmem:[%s5501_s1 + $0x11b0] sm:$0xff]  ;;  %v2112_v22 = vld [vmem:[%s5501_s1 + $0x1198] sm:$0xff]  ;;  %v4375_v15 = vpack.c.bf16 %v2104_v2, %v2099_v1  ;;  %v2142_v1 = vld [vmem:[%s5501_s1 + $0x1288] sm:$0xff] }
 0x254   : > { %4350 = vmatprep.subr.bf16.mxu1 %v4349_v28  ;;  %4670 = vmatprep.subr.bf16.mxu0 %v4669_v30  ;;  %v4365_v28 = vpack.c.bf16 %v2085_v3, %v2080_v19  ;;  %v4685_v30 = vpack.c.bf16 %v2087_v21, %v2082_v20  ;;  %v2109_v19 = vld [vmem:[%s5501_s1 + $0x1180] sm:$0xff]  ;;  %v2114_v3 = vld [vmem:[%s5501_s1 + $0x11a8] sm:$0xff]  ;;  %v6109_v20 = vadd.f32 %v6046_v6, %v754_v37  ;;  %v2147_v2 = vld [vmem:[%s5501_s1 + $0x12b0] sm:$0xff] }
 0x255   : > { %2653 = vmatprep.mubr.f32.mxu1 %v6037_v39  ;;  %3008 = vmatprep.mubr.f32.mxu0 %v6037_v39  ;;  %v4379_v6 = vpack.c.bf16 %v2114_v3, %v2109_v19  ;;  %v4387_v37 = vpack.c.bf16 %v2134_v54, %v2129_v52  ;;  %v2157_v19 = vld [vmem:[%s5501_s1 + $0x1300] sm:$0xff]  ;;  %v2175_v52 = vld [vmem:[%s5501_s1 + $0x1390] sm:$0xff]  ;;  %v2172_v54 = vld [vmem:[%s5501_s1 + $0x1378] sm:$0xff] }
 0x256   : > { %v3573_v41 = vmul.f32 -1.442695, %v6109_v20 }
 0x257   : > { %4352 = vmatpush1.bf16.msra.mxu1 %v4351_v10  ;;  %4672 = vmatpush1.bf16.msra.mxu0 %v4671_v44  ;;  %v741_v10 = vsub.s32 6, %v5669_v29  ;;  %v4367_v44 = vpack.c.bf16 %v2084_v27, %v2079_v26  ;;  %v2120_v26 = vld [vmem:[%s5501_s1 + $0x11d8] sm:$0xff]  ;;  %v2125_v27 = vld [vmem:[%s5501_s1 + $0x1200] sm:$0xff] }
 0x258   : > { %4354 = vmatprep.subr.bf16.mxu1 %v4353_v47  ;;  %4674 = vmatprep.subr.bf16.mxu0 %v4673_v48  ;;  %v2094_v47 = vld [vmem:[%s5501_s1 + $0x1108] sm:$0xff]  ;;  %v2091_v48 = vld [vmem:[%s5501_s1 + $0x10f0] sm:$0xff]  ;;  %v4381_v42 = vpack.c.bf16 %v2125_v27, %v2120_v26 }
 0x259   : > { %v742_v59 = vrot.slane %v5110_v57, %v741_v10  ;;  %v2131_v57 = vld [vmem:[%s5501_s1 + $0x1230] sm:$0xff] }
 0x25b   : > { %4356 = vmatpush1.bf16.msra.mxu1 %v4355_v50  ;;  %4676 = vmatpush1.bf16.msra.mxu0 %v4675_v56  ;;  %v2102_v50 = vld [vmem:[%s5501_s1 + $0x1148] sm:$0xff]  ;;  %v2107_v56 = vld [vmem:[%s5501_s1 + $0x1170] sm:$0xff] }
 0x25c   : > { %4358 = vmatprep.subr.bf16.mxu1 %v4357_v62  ;;  %4678 = vmatprep.subr.bf16.mxu0 %v4677_v63  ;;  %v4371_v62 = vpack.c.bf16 %v2094_v47, %v2089_v46  ;;  %v4691_v63 = vpack.c.bf16 %v2096_v4, %v2091_v48  ;;  %v4693_v8 = vpack.c.bf16 %v2107_v56, %v2102_v50  ;;  %v2130_v46 = vld [vmem:[%s5501_s1 + $0x1228] sm:$0xff]  ;;  %v2135_v47 = vld [vmem:[%s5501_s1 + $0x1250] sm:$0xff]  ;;  %v2132_v48 = vld [vmem:[%s5501_s1 + $0x1238] sm:$0xff] }
 0x25d   : > { %v4385_v50 = vpack.c.bf16 %v2135_v47, %v2130_v46 }
 0x25f   : > { %4360 = vmatpush1.bf16.msra.mxu1 %v4359_v11  ;;  %4680 = vmatpush1.bf16.msra.mxu0 %v4679_v5  ;;  %v2106_v11 = vld [vmem:[%s5501_s1 + $0x1168] sm:$0xff] }
 0x260   : > { %4362 = vmatprep.subr.bf16.mxu1 %v4361_v13  ;;  %4682 = vmatprep.subr.bf16.mxu0 %v4681_v18  ;;  %v2110_v5 = vld [vmem:[%s5501_s1 + $0x1188] sm:$0xff]  ;;  %v2117_v13 = vld [vmem:[%s5501_s1 + $0x11c0] sm:$0xff]  ;;  %v6104_v18 = vadd.f32 %v5864_v61, %v742_v59  ;;  %v4695_v16 = vpack.c.bf16 %v2106_v11, %v2101_v9  ;;  %v2116_v61 = vld [vmem:[%s5501_s1 + $0x11b8] sm:$0xff] }
 0x261   : > { %v4377_v21 = vpack.c.bf16 %v2115_v12, %v2110_v5  ;;  %v2136_v59 = vld [vmem:[%s5501_s1 + $0x1258] sm:$0xff]  ;;  %v4709_v5 = vpack.c.bf16 %v2147_v2, %v2142_v1  ;;  %v2141_v12 = vld [vmem:[%s5501_s1 + $0x1280] sm:$0xff]  ;;  %v2171_v2 = vld [vmem:[%s5501_s1 + $0x1370] sm:$0xff] }
 0x262   : > { %v3570_v0 = vmul.f32 -1.442695, %v6104_v18  ;;  %v2144_v9 = vld [vmem:[%s5501_s1 + $0x1298] sm:$0xff] }
 0x263   : > { %4364 = vmatpush1.bf16.msra.mxu1 %v4363_v23  ;;  %4684 = vmatpush1.bf16.msra.mxu0 %v4683_v24  ;;  %v4697_v23 = vpack.c.bf16 %v2117_v13, %v2112_v22  ;;  %v2111_v24 = vld [vmem:[%s5501_s1 + $0x1190] sm:$0xff]  ;;  %v2146_v22 = vld [vmem:[%s5501_s1 + $0x12a8] sm:$0xff] }
 0x264   : > { %4366 = vmatprep.subr.bf16.mxu1 %v4365_v28  ;;  %4686 = vmatprep.subr.bf16.mxu0 %v4685_v30  ;;  %v2122_v28 = vld [vmem:[%s5501_s1 + $0x11e8] sm:$0xff]  ;;  %v2127_v30 = vld [vmem:[%s5501_s1 + $0x1210] sm:$0xff]  ;;  %v4699_v35 = vpack.c.bf16 %v2116_v61, %v2111_v24  ;;  %5095 = vpow2.f32 %v3570_v0  ;;  %v2160_v0 = vld [vmem:[%s5501_s1 + $0x1318] sm:$0xff] }
 0x265   : > { %v4701_v10 = vpack.c.bf16 %v2127_v30, %v2122_v28  ;;  %5097 = vpow2.f32 %v3573_v41  ;;  %v2150_v13 = vld [vmem:[%s5501_s1 + $0x12c8] sm:$0xff]  ;;  %v2151_v28 = vld [vmem:[%s5501_s1 + $0x12d0] sm:$0xff]  ;;  %v2156_v30 = vld [vmem:[%s5501_s1 + $0x12f8] sm:$0xff] }
 0x266   : > { %v2154_v24 = vld [vmem:[%s5501_s1 + $0x12e8] sm:$0xff] }
 0x267   : > { %4368 = vmatpush1.bf16.msra.mxu1 %v4367_v44  ;;  %4688 = vmatpush1.bf16.msra.mxu0 %v4687_v45  ;;  %v2121_v44 = vld [vmem:[%s5501_s1 + $0x11e0] sm:$0xff]  ;;  %v2126_v45 = vld [vmem:[%s5501_s1 + $0x1208] sm:$0xff] }
 0x268   : > { %4370 = vmatprep.subr.bf16.mxu1 %v4369_v49  ;;  %4690 = vmatprep.subr.bf16.mxu0 %v4689_v51  ;;  %v2137_v49 = vld [vmem:[%s5501_s1 + $0x1260] sm:$0xff]  ;;  %v4383_v51 = vpack.c.bf16 %v2124_v40, %v2119_v38  ;;  %v4703_v4 = vpack.c.bf16 %v2126_v45, %v2121_v44  ;;  %v2162_v38 = vld [vmem:[%s5501_s1 + $0x1328] sm:$0xff]  ;;  %v2167_v40 = vld [vmem:[%s5501_s1 + $0x1350] sm:$0xff] }
 0x269   : > { %v4705_v56 = vpack.c.bf16 %v2137_v49, %v2132_v48  ;;  %v2159_v44 = vld [vmem:[%s5501_s1 + $0x1310] sm:$0xff]  ;;  %v2164_v45 = vld [vmem:[%s5501_s1 + $0x1338] sm:$0xff]  ;;  %v4717_v47 = vpack.c.bf16 %v2167_v40, %v2162_v38  ;;  %v2161_v48 = vld [vmem:[%s5501_s1 + $0x1320] sm:$0xff] }
 0x26a   : > { %v2166_v49 = vld [vmem:[%s5501_s1 + $0x1348] sm:$0xff]  ;;  %v2196_v38 = vld [vmem:[%s5501_s1 + $0x1438] sm:$0xff] }
 0x26b   : > { %4372 = vmatpush1.bf16.msra.mxu1 %v4371_v62  ;;  %4692 = vmatpush1.bf16.msra.mxu0 %v4691_v63  ;;  %v2140_v62 = vld [vmem:[%s5501_s1 + $0x1278] sm:$0xff]  ;;  %v2145_v63 = vld [vmem:[%s5501_s1 + $0x12a0] sm:$0xff] }
 0x26c   : > { %4374 = vmatprep.subr.bf16.mxu1 %v4373_v7  ;;  %4694 = vmatprep.subr.bf16.mxu0 %v4693_v8  ;;  %v4707_v7 = vpack.c.bf16 %v2136_v59, %v2131_v57  ;;  %v2139_v8 = vld [vmem:[%s5501_s1 + $0x1270] sm:$0xff]  ;;  %v4389_v11 = vpack.c.bf16 %v2145_v63, %v2140_v62  ;;  %v4719_v57 = vpack.c.bf16 %v2166_v49, %v2161_v48  ;;  %v2169_v59 = vld [vmem:[%s5501_s1 + $0x1360] sm:$0xff]  ;;  %v2174_v62 = vld [vmem:[%s5501_s1 + $0x1388] sm:$0xff] }
 0x26d   : > { %v4391_v3 = vpack.c.bf16 %v2144_v9, %v2139_v8  ;;  %v2185_v8 = vld [vmem:[%s5501_s1 + $0x13e0] sm:$0xff]  ;;  %v2182_v9 = vld [vmem:[%s5501_s1 + $0x13c8] sm:$0xff]  ;;  %v2200_v40 = vld [vmem:[%s5501_s1 + $0x1458] sm:$0xff] }
 0x26e   : > { %v5096_v61 = vpop.eup %5095  ;;  %v2199_v48 = vld [vmem:[%s5501_s1 + $0x1450] sm:$0xff]  ;;  %v2204_v49 = vld [vmem:[%s5501_s1 + $0x1478] sm:$0xff] }
 0x26f   : > { %4376 = vmatpush1.bf16.msra.mxu1 %v4375_v15  ;;  %4696 = vmatpush1.bf16.msra.mxu0 %v4695_v16  ;;  %v2155_v15 = vld [vmem:[%s5501_s1 + $0x12f0] sm:$0xff]  ;;  %v2152_v16 = vld [vmem:[%s5501_s1 + $0x12d8] sm:$0xff]  ;;  %v1515_v41 = vadd.f32 1.0, %v5096_v61  ;;  %v2197_v61 = vld [vmem:[%s5501_s1 + $0x1440] sm:$0xff] }
 0x270   : > { %4378 = vmatprep.subr.bf16.mxu1 %v4377_v21  ;;  %4698 = vmatprep.subr.bf16.mxu0 %v4697_v23  ;;  %v4711_v21 = vpack.c.bf16 %v2146_v22, %v2141_v12  ;;  %v2149_v23 = vld [vmem:[%s5501_s1 + $0x12c0] sm:$0xff]  ;;  %v4393_v26 = vpack.c.bf16 %v2155_v15, %v2150_v13  ;;  %v4713_v27 = vpack.c.bf16 %v2157_v19, %v2152_v16  ;;  %v2179_v22 = vld [vmem:[%s5501_s1 + $0x13b0] sm:$0xff]  ;;  %v2184_v13 = vld [vmem:[%s5501_s1 + $0x13d8] sm:$0xff] }
 0x271   : > { %5099 = vrcp.f32 %v1515_v41  ;;  %v2181_v19 = vld [vmem:[%s5501_s1 + $0x13c0] sm:$0xff] }
 0x273   : > { %4380 = vmatpush1.bf16.msra.mxu1 %v4379_v6  ;;  %4700 = vmatpush1.bf16.msra.mxu0 %v4699_v35  ;;  %v5098_v6 = vpop.eup %5097  ;;  %v2165_v35 = vld [vmem:[%s5501_s1 + $0x1340] sm:$0xff] }
 0x274   : > { %4382 = vmatprep.subr.bf16.mxu1 %v4381_v42  ;;  %4702 = vmatprep.subr.bf16.mxu0 %v4701_v10  ;;  %v4395_v42 = vpack.c.bf16 %v2154_v24, %v2149_v23  ;;  %v4715_v10 = vpack.c.bf16 %v2156_v30, %v2151_v28  ;;  %v4397_v46 = vpack.c.bf16 %v2165_v35, %v2160_v0  ;;  %v2195_v23 = vld [vmem:[%s5501_s1 + $0x1430] sm:$0xff]  ;;  %v2192_v24 = vld [vmem:[%s5501_s1 + $0x1418] sm:$0xff]  ;;  %v2189_v28 = vld [vmem:[%s5501_s1 + $0x1400] sm:$0xff] }
 0x275   : > { %v2194_v30 = vld [vmem:[%s5501_s1 + $0x1428] sm:$0xff]  ;;  %v2191_v35 = vld [vmem:[%s5501_s1 + $0x1410] sm:$0xff] }
 0x277   : > { %4384 = vmatpush1.bf16.msra.mxu1 %v4383_v51  ;;  %4704 = vmatpush1.bf16.msra.mxu0 %v4703_v4  ;;  %v1518_v51 = vadd.f32 1.0, %v5098_v6  ;;  %v2170_v4 = vld [vmem:[%s5501_s1 + $0x1368] sm:$0xff]  ;;  %v4729_v6 = vpack.c.bf16 %v2197_v61, %v2192_v24 }
 0x278   : > { %4386 = vmatprep.subr.bf16.mxu1 %v4385_v50  ;;  %4706 = vmatprep.subr.bf16.mxu0 %v4705_v56  ;;  %v2177_v50 = vld [vmem:[%s5501_s1 + $0x13a0] sm:$0xff]  ;;  %v4399_v56 = vpack.c.bf16 %v2164_v45, %v2159_v44  ;;  %v4401_v63 = vpack.c.bf16 %v2175_v52, %v2170_v4  ;;  %v2207_v44 = vld [vmem:[%s5501_s1 + $0x1490] sm:$0xff]  ;;  %v2226_v24 = vld [vmem:[%s5501_s1 + $0x1528] sm:$0xff] }
 0x279   : > { %5101 = vrcp.f32 %v1518_v51  ;;  %v4721_v1 = vpack.c.bf16 %v2177_v50, %v2172_v54  ;;  %v2201_v54 = vld [vmem:[%s5501_s1 + $0x1460] sm:$0xff]  ;;  %v2206_v50 = vld [vmem:[%s5501_s1 + $0x1488] sm:$0xff] }
 0x27a   : > { %v2230_v61 = vld [vmem:[%s5501_s1 + $0x1548] sm:$0xff] }
 0x27b   : > { %4388 = vmatpush1.bf16.msra.mxu1 %v4387_v37  ;;  %4708 = vmatpush1.bf16.msra.mxu0 %v4707_v7  ;;  %v2176_v37 = vld [vmem:[%s5501_s1 + $0x1398] sm:$0xff]  ;;  %v5100_v41 = vpop.eup %5099 }
 0x27c   : > { %4390 = vmatprep.subr.bf16.mxu1 %v4389_v11  ;;  %4710 = vmatprep.subr.bf16.mxu0 %v4709_v5  ;;  %v2180_v7 = vld [vmem:[%s5501_s1 + $0x13b8] sm:$0xff]  ;;  %v2187_v11 = vld [vmem:[%s5501_s1 + $0x13f0] sm:$0xff]  ;;  %v4403_v5 = vpack.c.bf16 %v2174_v62, %v2169_v59  ;;  %v4723_v12 = vpack.c.bf16 %v2176_v37, %v2171_v2  ;;  %v6186_v51 = vmul.f32 %v5100_v41, %v6104_v18  ;;  %v2209_v2 = vld [vmem:[%s5501_s1 + $0x14a0] sm:$0xff] }
 0x27d   : > { %v4405_v15 = vpack.c.bf16 %v2185_v8, %v2180_v7  ;;  %v4725_v16 = vpack.c.bf16 %v2187_v11, %v2182_v9  ;;  %v2215_v59 = vld [vmem:[%s5501_s1 + $0x14d0] sm:$0xff]  ;;  %v2212_v62 = vld [vmem:[%s5501_s1 + $0x14b8] sm:$0xff]  ;;  %v4415_v18 = vpack.c.bf16 %v2204_v49, %v2199_v48 }
 0x27e   : > { %v2211_v8 = vld [vmem:[%s5501_s1 + $0x14b0] sm:$0xff]  ;;  %v2216_v9 = vld [vmem:[%s5501_s1 + $0x14d8] sm:$0xff] }
 0x27f   : > { %4392 = vmatpush1.bf16.msra.mxu1 %v4391_v3  ;;  %4712 = vmatpush1.bf16.msra.mxu0 %v4711_v21  ;;  %v2186_v3 = vld [vmem:[%s5501_s1 + $0x13e8] sm:$0xff]  ;;  %v2220_v11 = vld [vmem:[%s5501_s1 + $0x14f8] sm:$0xff]  ;;  %v2231_v41 = vld [vmem:[%s5501_s1 + $0x1550] sm:$0xff] }
 0x280   : > { %4394 = vmatprep.subr.bf16.mxu1 %v4393_v26  ;;  %4714 = vmatprep.subr.bf16.mxu0 %v4713_v27  ;;  %v2190_v21 = vld [vmem:[%s5501_s1 + $0x1408] sm:$0xff]  ;;  %v4407_v26 = vpack.c.bf16 %v2184_v13, %v2179_v22  ;;  %v4727_v27 = vpack.c.bf16 %v2186_v3, %v2181_v19  ;;  %v2227_v22 = vld [vmem:[%s5501_s1 + $0x1530] sm:$0xff]  ;;  %v2224_v19 = vld [vmem:[%s5501_s1 + $0x1518] sm:$0xff] }
 0x281   : > { %v4409_v0 = vpack.c.bf16 %v2195_v23, %v2190_v21  ;;  %v2221_v23 = vld [vmem:[%s5501_s1 + $0x1500] sm:$0xff]  ;;  %v2239_v49 = vld [vmem:[%s5501_s1 + $0x1590] sm:$0xff] }
 0x283   : > { %4396 = vmatpush1.bf16.msra.mxu1 %v4395_v42  ;;  %4716 = vmatpush1.bf16.msra.mxu0 %v4715_v10  ;;  %v2205_v42 = vld [vmem:[%s5501_s1 + $0x1480] sm:$0xff]  ;;  %v2202_v10 = vld [vmem:[%s5501_s1 + $0x1468] sm:$0xff]  ;;  %v5102_v45 = vpop.eup %5101 }
 0x284   : > { %4398 = vmatprep.subr.bf16.mxu1 %v4397_v46  ;;  %4718 = vmatprep.subr.bf16.mxu0 %v4717_v47  ;;  %v4411_v46 = vpack.c.bf16 %v2194_v30, %v2189_v28  ;;  %v4731_v47 = vpack.c.bf16 %v2196_v38, %v2191_v35  ;;  %v4413_v4 = vpack.c.bf16 %v2205_v42, %v2200_v40  ;;  %v2237_v28 = vld [vmem:[%s5501_s1 + $0x1580] sm:$0xff]  ;;  %v2234_v35 = vld [vmem:[%s5501_s1 + $0x1568] sm:$0xff]  ;;  %v2236_v42 = vld [vmem:[%s5501_s1 + $0x1578] sm:$0xff] }
 0x285   : > { %v4733_v52 = vpack.c.bf16 %v2207_v44, %v2202_v10  ;;  %v2240_v10 = vld [vmem:[%s5501_s1 + $0x1598] sm:$0xff]  ;;  %v2245_v44 = vld [vmem:[%s5501_s1 + $0x15c0] sm:$0xff]  ;;  %v4747_v48 = vpack.c.bf16 %v2236_v42, %v2231_v41 }
 0x287   : > { %4400 = vmatpush1.bf16.msra.mxu1 %v4399_v56  ;;  %4720 = vmatpush1.bf16.msra.mxu0 %v4719_v57  ;;  %v2210_v56 = vld [vmem:[%s5501_s1 + $0x14a8] sm:$0xff]  ;;  %v6192_v57 = vmul.f32 %v5102_v45, %v6109_v20 }
 0x288   : > { %4402 = vmatprep.subr.bf16.mxu1 %v4401_v63  ;;  %4722 = vmatprep.subr.bf16.mxu0 %v4721_v1  ;;  %v2217_v63 = vld [vmem:[%s5501_s1 + $0x14e0] sm:$0xff]  ;;  %v4735_v1 = vpack.c.bf16 %v2206_v50, %v2201_v54  ;;  %v2214_v20 = vld [vmem:[%s5501_s1 + $0x14c8] sm:$0xff]  ;;  %v4417_v37 = vpack.c.bf16 %v2215_v59, %v2210_v56 }
 0x289   : > { %v4737_v7 = vpack.c.bf16 %v2217_v63, %v2212_v62  ;;  %v4419_v13 = vpack.c.bf16 %v2214_v20, %v2209_v2  ;;  %v2242_v45 = vld [vmem:[%s5501_s1 + $0x15a8] sm:$0xff]  ;;  %v2241_v50 = vld [vmem:[%s5501_s1 + $0x15a0] sm:$0xff]  ;;  %v2255_v62 = vld [vmem:[%s5501_s1 + $0x1610] sm:$0xff] }
 0x28a   : > { %v2246_v56 = vld [vmem:[%s5501_s1 + $0x15c8] sm:$0xff]  ;;  %v2252_v63 = vld [vmem:[%s5501_s1 + $0x15f8] sm:$0xff]  ;;  %v2249_v20 = vld [vmem:[%s5501_s1 + $0x15e0] sm:$0xff] }
 0x28b   : > { %4404 = vmatpush1.bf16.msra.mxu1 %v4403_v5  ;;  %4724 = vmatpush1.bf16.msra.mxu0 %v4723_v12  ;;  %v2225_v5 = vld [vmem:[%s5501_s1 + $0x1520] sm:$0xff]  ;;  %v2222_v12 = vld [vmem:[%s5501_s1 + $0x1508] sm:$0xff]  ;;  %v4751_v2 = vpack.c.bf16 %v2246_v56, %v2241_v50 }
 0x28c   : > { %4406 = vmatprep.subr.bf16.mxu1 %v4405_v15  ;;  %4726 = vmatprep.subr.bf16.mxu0 %v4725_v16  ;;  %v4739_v15 = vpack.c.bf16 %v2216_v9, %v2211_v8  ;;  %v2219_v16 = vld [vmem:[%s5501_s1 + $0x14f0] sm:$0xff]  ;;  %v4421_v3 = vpack.c.bf16 %v2225_v5, %v2220_v11  ;;  %v4741_v21 = vpack.c.bf16 %v2227_v22, %v2222_v12  ;;  %v2250_v59 = vld [vmem:[%s5501_s1 + $0x15e8] sm:$0xff]  ;;  %v2256_v11 = vld [vmem:[%s5501_s1 + $0x1618] sm:$0xff] }
 0x28d   : > { %v4423_v30 = vpack.c.bf16 %v2224_v19, %v2219_v16  ;;  %v2251_v9 = vld [vmem:[%s5501_s1 + $0x15f0] sm:$0xff]  ;;  %v2260_v5 = vld [vmem:[%s5501_s1 + $0x1638] sm:$0xff]  ;;  %v2265_v12 = vld [vmem:[%s5501_s1 + $0x1660] sm:$0xff] }
 0x28e   : > { %v2262_v22 = vld [vmem:[%s5501_s1 + $0x1648] sm:$0xff]  ;;  %v4755_v19 = vpack.c.bf16 %v2256_v11, %v2251_v9 }
 0x28f   : > { %4408 = vmatpush1.bf16.msra.mxu1 %v4407_v26  ;;  %4728 = vmatpush1.bf16.msra.mxu0 %v4727_v27  ;;  %v2235_v26 = vld [vmem:[%s5501_s1 + $0x1570] sm:$0xff]  ;;  %v2232_v27 = vld [vmem:[%s5501_s1 + $0x1558] sm:$0xff] }
 0x290   : > { %4410 = vmatprep.subr.bf16.mxu1 %v4409_v0  ;;  %4730 = vmatprep.subr.bf16.mxu0 %v4729_v6  ;;  %v4743_v0 = vpack.c.bf16 %v2226_v24, %v2221_v23  ;;  %v2229_v6 = vld [vmem:[%s5501_s1 + $0x1540] sm:$0xff]  ;;  %v4425_v38 = vpack.c.bf16 %v2235_v26, %v2230_v61  ;;  %v4745_v40 = vpack.c.bf16 %v2237_v28, %v2232_v27  ;;  %v2266_v26 = vld [vmem:[%s5501_s1 + $0x1668] sm:$0xff]  ;;  %v2275_v28 = vld [vmem:[%s5501_s1 + $0x16b0] sm:$0xff] }
 0x291   : > { %v4437_v23 = vpack.c.bf16 %v2265_v12, %v2260_v5  ;;  %v2261_v61 = vld [vmem:[%s5501_s1 + $0x1640] sm:$0xff]  ;;  %v2270_v27 = vld [vmem:[%s5501_s1 + $0x1688] sm:$0xff]  ;;  %v2291_v5 = vld [vmem:[%s5501_s1 + $0x1730] sm:$0xff] }
 0x292   : > { %2654 = vmatmul.mubr.f32.vlgmr.msra.gmra.mrb[4].mxu1 %v6186_v51  ;;  %3009 = vmatmul.mubr.f32.vlgmr.msra.gmra.mrb[6].mxu0 %v6186_v51  ;;  %v4441_v41 = vpack.c.bf16 %v2275_v28, %v2270_v27  ;;  %v2296_v12 = vld [vmem:[%s5501_s1 + $0x1758] sm:$0xff]  ;;  %v2306_v27 = vld [vmem:[%s5501_s1 + $0x17a8] sm:$0xff] }
 0x293   : > { %4412 = vmatpush1.bf16.msra.mxu1 %v4411_v46  ;;  %4732 = vmatpush1.bf16.msra.mxu0 %v4731_v47  ;;  %v2247_v46 = vld [vmem:[%s5501_s1 + $0x15d0] sm:$0xff]  ;;  %v4427_v47 = vpack.c.bf16 %v2234_v35, %v2229_v6  ;;  %v4759_v35 = vpack.c.bf16 %v2266_v26, %v2261_v61  ;;  %v2301_v26 = vld [vmem:[%s5501_s1 + $0x1780] sm:$0xff]  ;;  %v2310_v28 = vld [vmem:[%s5501_s1 + $0x17c8] sm:$0xff] }
 0x294   : > { %4414 = vmatprep.subr.bf16.mxu1 %v4413_v4  ;;  %4734 = vmatprep.subr.bf16.mxu0 %v4733_v52  ;;  %v2244_v4 = vld [vmem:[%s5501_s1 + $0x15b8] sm:$0xff]  ;;  %v4429_v52 = vpack.c.bf16 %v2245_v44, %v2240_v10  ;;  %v4749_v54 = vpack.c.bf16 %v2247_v46, %v2242_v45  ;;  %v2271_v10 = vld [vmem:[%s5501_s1 + $0x1690] sm:$0xff]  ;;  %v2282_v46 = vld [vmem:[%s5501_s1 + $0x16e8] sm:$0xff] }
 0x295   : > { %2724 = vmatprep.mubr.f32.mxu1 %v6192_v57  ;;  %3079 = vmatprep.mubr.f32.mxu0 %v6192_v57  ;;  %v2276_v44 = vld [vmem:[%s5501_s1 + $0x16b8] sm:$0xff] }
 0x296   : > { %v2280_v45 = vld [vmem:[%s5501_s1 + $0x16d8] sm:$0xff] }
 0x297   : > { %4416 = vmatpush1.bf16.msra.mxu1 %v4415_v18  ;;  %4736 = vmatpush1.bf16.msra.mxu0 %v4735_v1  ;;  %v2257_v18 = vld [vmem:[%s5501_s1 + $0x1620] sm:$0xff]  ;;  %v4431_v1 = vpack.c.bf16 %v2244_v4, %v2239_v49  ;;  %v4763_v4 = vpack.c.bf16 %v2276_v44, %v2271_v10 }
 0x298   : > { %4418 = vmatprep.subr.bf16.mxu1 %v4417_v37  ;;  %4738 = vmatprep.subr.bf16.mxu0 %v4737_v7  ;;  %v2254_v37 = vld [vmem:[%s5501_s1 + $0x1608] sm:$0xff]  ;;  %v4433_v7 = vpack.c.bf16 %v2255_v62, %v2250_v59  ;;  %v4753_v8 = vpack.c.bf16 %v2257_v18, %v2252_v63  ;;  %v2281_v59 = vld [vmem:[%s5501_s1 + $0x16e0] sm:$0xff]  ;;  %v2295_v18 = vld [vmem:[%s5501_s1 + $0x1750] sm:$0xff] }
 0x299   : > { %v4435_v16 = vpack.c.bf16 %v2254_v37, %v2249_v20  ;;  %v2286_v62 = vld [vmem:[%s5501_s1 + $0x1708] sm:$0xff] }
 0x29a   : > { %v2290_v63 = vld [vmem:[%s5501_s1 + $0x1728] sm:$0xff]  ;;  %v4767_v37 = vpack.c.bf16 %v2286_v62, %v2281_v59 }
 0x29b   : > { %4420 = vmatpush1.bf16.msra.mxu1 %v4419_v13  ;;  %4740 = vmatpush1.bf16.msra.mxu0 %v4739_v15  ;;  %v2267_v13 = vld [vmem:[%s5501_s1 + $0x1670] sm:$0xff]  ;;  %v750_v15 = vrot.slane %v6088_v53, %v5676_v36  ;;  %v2272_v53 = vld [vmem:[%s5501_s1 + $0x1698] sm:$0xff]  ;;  %v4449_v9 = vpack.c.bf16 %v2295_v18, %v2290_v63  ;;  %v2321_v63 = vld [vmem:[%s5501_s1 + $0x1820] sm:$0xff] }
 0x29c   : > { %4422 = vmatprep.subr.bf16.mxu1 %v4421_v3  ;;  %4742 = vmatprep.subr.bf16.mxu0 %v4741_v21  ;;  %v2259_v3 = vld [vmem:[%s5501_s1 + $0x1630] sm:$0xff]  ;;  %v2264_v21 = vld [vmem:[%s5501_s1 + $0x1658] sm:$0xff]  ;;  %v4757_v24 = vpack.c.bf16 %v2267_v13, %v2262_v22  ;;  %v2305_v13 = vld [vmem:[%s5501_s1 + $0x17a0] sm:$0xff] }
 0x29d   : > { %v4439_v6 = vpack.c.bf16 %v2264_v21, %v2259_v3  ;;  %v2300_v22 = vld [vmem:[%s5501_s1 + $0x1778] sm:$0xff]  ;;  %v4771_v3 = vpack.c.bf16 %v2296_v12, %v2291_v5  ;;  %v2299_v21 = vld [vmem:[%s5501_s1 + $0x1770] sm:$0xff]  ;;  %v2326_v18 = vld [vmem:[%s5501_s1 + $0x1848] sm:$0xff] }
 0x29f   : > { %4424 = vmatpush1.bf16.msra.mxu1 %v4423_v30  ;;  %4744 = vmatpush1.bf16.msra.mxu0 %v4743_v0  ;;  %v2277_v30 = vld [vmem:[%s5501_s1 + $0x16c0] sm:$0xff]  ;;  %v6252_v0 = vadd.f32 %v6042_v43, %v750_v15  ;;  %v2302_v15 = vld [vmem:[%s5501_s1 + $0x1788] sm:$0xff] }
 0x2a0   : > { %4426 = vmatprep.subr.bf16.mxu1 %v4425_v38  ;;  %4746 = vmatprep.subr.bf16.mxu0 %v4745_v40  ;;  %v2269_v38 = vld [vmem:[%s5501_s1 + $0x1680] sm:$0xff]  ;;  %v2274_v40 = vld [vmem:[%s5501_s1 + $0x16a8] sm:$0xff]  ;;  %v4761_v42 = vpack.c.bf16 %v2277_v30, %v2272_v53  ;;  %v2315_v53 = vld [vmem:[%s5501_s1 + $0x17f0] sm:$0xff] }
 0x2a1   : > { %v2285_v43 = vld [vmem:[%s5501_s1 + $0x1700] sm:$0xff]  ;;  %v4443_v49 = vpack.c.bf16 %v2274_v40, %v2269_v38  ;;  %v2312_v30 = vld [vmem:[%s5501_s1 + $0x17d8] sm:$0xff]  ;;  %v4775_v38 = vpack.c.bf16 %v2306_v27, %v2301_v26  ;;  %v4457_v10 = vpack.c.bf16 %v2315_v53, %v2310_v28  ;;  %v2346_v53 = vld [vmem:[%s5501_s1 + $0x18e8] sm:$0xff] }
 0x2a2   : > { %v4445_v50 = vpack.c.bf16 %v2285_v43, %v2280_v45  ;;  %v2309_v40 = vld [vmem:[%s5501_s1 + $0x17c0] sm:$0xff]  ;;  %v2311_v45 = vld [vmem:[%s5501_s1 + $0x17d0] sm:$0xff]  ;;  %v2316_v43 = vld [vmem:[%s5501_s1 + $0x17f8] sm:$0xff] }
 0x2a3   : > { %4428 = vmatpush1.bf16.msra.mxu1 %v4427_v47  ;;  %4748 = vmatpush1.bf16.msra.mxu0 %v4747_v48  ;;  %v2287_v47 = vld [vmem:[%s5501_s1 + $0x1710] sm:$0xff]  ;;  %v3572_v48 = vmul.f32 -1.442695, %v6252_v0  ;;  %v2341_v28 = vld [vmem:[%s5501_s1 + $0x18c0] sm:$0xff] }
 0x2a4   : > { %4430 = vmatprep.subr.bf16.mxu1 %v4429_v52  ;;  %4750 = vmatprep.subr.bf16.mxu0 %v4749_v54  ;;  %v2279_v52 = vld [vmem:[%s5501_s1 + $0x16d0] sm:$0xff]  ;;  %v2284_v54 = vld [vmem:[%s5501_s1 + $0x16f8] sm:$0xff]  ;;  %v4765_v56 = vpack.c.bf16 %v2287_v47, %v2282_v46  ;;  %v2325_v47 = vld [vmem:[%s5501_s1 + $0x1840] sm:$0xff] }
 0x2a5   : > { %5103 = vpow2.f32 %v3572_v48  ;;  %v4447_v20 = vpack.c.bf16 %v2284_v54, %v2279_v52  ;;  %v2320_v46 = vld [vmem:[%s5501_s1 + $0x1818] sm:$0xff]  ;;  %v2322_v48 = vld [vmem:[%s5501_s1 + $0x1828] sm:$0xff]  ;;  %v4779_v54 = vpack.c.bf16 %v2316_v43, %v2311_v45 }
 0x2a6   : > { %v4461_v59 = vpack.c.bf16 %v2325_v47, %v2320_v46  ;;  %v1558_v45 = vld [vmem:[%s5501_s1 + $0x48] sm:$0xff]  ;;  %v2033_v46 = vld [vmem:[%s5501_s1 + $0xf20] sm:$0xff] }
 0x2a7   : > { %4432 = vmatpush1.bf16.msra.mxu1 %v4431_v1  ;;  %4752 = vmatpush1.bf16.msra.mxu0 %v4751_v2  ;;  %v2292_v1 = vld [vmem:[%s5501_s1 + $0x1738] sm:$0xff]  ;;  %v2297_v2 = vld [vmem:[%s5501_s1 + $0x1760] sm:$0xff]  ;;  %v2038_v47 = vld [vmem:[%s5501_s1 + $0xf48] sm:$0xff] }
 0x2a8   : > { %4434 = vmatprep.subr.bf16.mxu1 %v4433_v7  ;;  %4754 = vmatprep.subr.bf16.mxu0 %v4753_v8  ;;  %v2289_v7 = vld [vmem:[%s5501_s1 + $0x1720] sm:$0xff]  ;;  %v2294_v8 = vld [vmem:[%s5501_s1 + $0x1748] sm:$0xff]  ;;  %v4769_v11 = vpack.c.bf16 %v2297_v2, %v2292_v1  ;;  %v2335_v2 = vld [vmem:[%s5501_s1 + $0x1890] sm:$0xff] }
 0x2a9   : > { %v2330_v1 = vld [vmem:[%s5501_s1 + $0x1868] sm:$0xff] }
 0x2aa   : > { %v4465_v5 = vpack.c.bf16 %v2335_v2, %v2330_v1  ;;  %v2048_v2 = vld [vmem:[%s5501_s1 + $0xf98] sm:$0xff] }
 0x2ab   : > { %4436 = vmatpush1.bf16.msra.mxu1 %v4435_v16  ;;  %4756 = vmatpush1.bf16.msra.mxu0 %v4755_v19  ;;  %v2307_v16 = vld [vmem:[%s5501_s1 + $0x17b0] sm:$0xff]  ;;  %v4451_v19 = vpack.c.bf16 %v2294_v8, %v2289_v7  ;;  %v4783_v8 = vpack.c.bf16 %v2326_v18, %v2321_v63 }
 0x2ac   : > { %4438 = vmatprep.subr.bf16.mxu1 %v4437_v23  ;;  %4758 = vmatprep.subr.bf16.mxu0 %v4757_v24  ;;  %v2304_v23 = vld [vmem:[%s5501_s1 + $0x1798] sm:$0xff]  ;;  %v4453_v24 = vpack.c.bf16 %v2305_v13, %v2300_v22  ;;  %v4773_v61 = vpack.c.bf16 %v2307_v16, %v2302_v15  ;;  %v2331_v22 = vld [vmem:[%s5501_s1 + $0x1870] sm:$0xff]  ;;  %v2345_v16 = vld [vmem:[%s5501_s1 + $0x18e0] sm:$0xff] }
 0x2ad   : > { %v2336_v13 = vld [vmem:[%s5501_s1 + $0x1898] sm:$0xff]  ;;  %v2043_v63 = vld [vmem:[%s5501_s1 + $0xf70] sm:$0xff] }
 0x2ae   : > { %v2340_v15 = vld [vmem:[%s5501_s1 + $0x18b8] sm:$0xff] }
 0x2af   : > { %4440 = vmatpush1.bf16.msra.mxu1 %v4439_v6  ;;  %4760 = vmatpush1.bf16.msra.mxu0 %v4759_v35  ;;  %v2317_v6 = vld [vmem:[%s5501_s1 + $0x1800] sm:$0xff]  ;;  %v4455_v35 = vpack.c.bf16 %v2304_v23, %v2299_v21  ;;  %v4787_v23 = vpack.c.bf16 %v2336_v13, %v2331_v22  ;;  %v4469_v26 = vpack.c.bf16 %v2345_v16, %v2340_v15  ;;  %v2058_v15 = vld [vmem:[%s5501_s1 + $0xfe8] sm:$0xff]  ;;  %v1663_v16 = vld [vmem:[%s5501_s1 + $0x390] sm:$0xff] }
 0x2b0   : > { %4442 = vmatprep.subr.bf16.mxu1 %v4441_v41  ;;  %4762 = vmatprep.subr.bf16.mxu0 %v4761_v42  ;;  %v2314_v41 = vld [vmem:[%s5501_s1 + $0x17e8] sm:$0xff]  ;;  %v5104_v42 = vpop.eup %5103  ;;  %v4777_v44 = vpack.c.bf16 %v2317_v6, %v2312_v30  ;;  %v1633_v30 = vld [vmem:[%s5501_s1 + $0x2a0] sm:$0xff] }
 0x2b1   : > { %v4459_v52 = vpack.c.bf16 %v2314_v41, %v2309_v40  ;;  %v1638_v6 = vld [vmem:[%s5501_s1 + $0x2c8] sm:$0xff]  ;;  %v4791_v41 = vpack.c.bf16 %v2346_v53, %v2341_v28  ;;  %v2053_v22 = vld [vmem:[%s5501_s1 + $0xfc0] sm:$0xff]  ;;  %v2068_v28 = vld [vmem:[%s5501_s1 + $0x1038] sm:$0xff] }
 0x2b2   : > { %v1673_v53 = vld [vmem:[%s5501_s1 + $0x3e0] sm:$0xff] }
 0x2b3   : > { %4444 = vmatpush1.bf16.msra.mxu1 %v4443_v49  ;;  %4764 = vmatpush1.bf16.msra.mxu0 %v4763_v4  ;;  %v2327_v49 = vld [vmem:[%s5501_s1 + $0x1850] sm:$0xff]  ;;  %v1517_v4 = vadd.f32 1.0, %v5104_v42  ;;  %v4793_v42 = vpack.c.bf16 %v1638_v6, %v1633_v30  ;;  %v1678_v30 = vld [vmem:[%s5501_s1 + $0x408] sm:$0xff]  ;;  %v2153_v6 = vld [vmem:[%s5501_s1 + $0x12e0] sm:$0xff] }
 0x2b4   : > { %4446 = vmatprep.subr.bf16.mxu1 %v4445_v50  ;;  %4766 = vmatprep.subr.bf16.mxu0 %v4765_v56  ;;  %v2319_v50 = vld [vmem:[%s5501_s1 + $0x1810] sm:$0xff]  ;;  %v2324_v56 = vld [vmem:[%s5501_s1 + $0x1838] sm:$0xff]  ;;  %v4781_v62 = vpack.c.bf16 %v2327_v49, %v2322_v48 }
 0x2b5   : > { %5105 = vrcp.f32 %v1517_v4  ;;  %v4463_v7 = vpack.c.bf16 %v2324_v56, %v2319_v50  ;;  %v1643_v48 = vld [vmem:[%s5501_s1 + $0x2f0] sm:$0xff]  ;;  %v1648_v49 = vld [vmem:[%s5501_s1 + $0x318] sm:$0xff]  ;;  %v4891_v56 = vpack.c.bf16 %v2038_v47, %v2033_v46 }
 0x2b6   : > { %v2123_v4 = vld [vmem:[%s5501_s1 + $0x11f0] sm:$0xff]  ;;  %v4797_v18 = vpack.c.bf16 %v1648_v49, %v1643_v48  ;;  %v1688_v47 = vld [vmem:[%s5501_s1 + $0x458] sm:$0xff] }
 0x2b7   : > { %4448 = vmatpush1.bf16.msra.mxu1 %v4447_v20  ;;  %4768 = vmatpush1.bf16.msra.mxu0 %v4767_v37  ;;  %v2332_v20 = vld [vmem:[%s5501_s1 + $0x1878] sm:$0xff]  ;;  %v2337_v37 = vld [vmem:[%s5501_s1 + $0x18a0] sm:$0xff]  ;;  %v1683_v46 = vld [vmem:[%s5501_s1 + $0x430] sm:$0xff] }
 0x2b8   : > { %4450 = vmatprep.subr.bf16.mxu1 %v4449_v9  ;;  %4770 = vmatprep.subr.bf16.mxu0 %v4769_v11  ;;  %v2329_v9 = vld [vmem:[%s5501_s1 + $0x1860] sm:$0xff]  ;;  %v2334_v11 = vld [vmem:[%s5501_s1 + $0x1888] sm:$0xff]  ;;  %v4785_v12 = vpack.c.bf16 %v2337_v37, %v2332_v20  ;;  %v2163_v48 = vld [vmem:[%s5501_s1 + $0x1330] sm:$0xff] }
 0x2b9   : > { %v4467_v21 = vpack.c.bf16 %v2334_v11, %v2329_v9  ;;  %v1653_v20 = vld [vmem:[%s5501_s1 + $0x340] sm:$0xff]  ;;  %v1658_v37 = vld [vmem:[%s5501_s1 + $0x368] sm:$0xff]  ;;  %v4895_v9 = vpack.c.bf16 %v2048_v2, %v2043_v63  ;;  %v2168_v49 = vld [vmem:[%s5501_s1 + $0x1358] sm:$0xff] }
 0x2ba   : > { %v4801_v11 = vpack.c.bf16 %v1658_v37, %v1653_v20  ;;  %v4909_v63 = vpack.c.bf16 %v2168_v49, %v2163_v48  ;;  %v1698_v2 = vld [vmem:[%s5501_s1 + $0x4a8] sm:$0xff]  ;;  %v2173_v20 = vld [vmem:[%s5501_s1 + $0x1380] sm:$0xff] }
 0x2bb   : > { %4452 = vmatpush1.bf16.msra.mxu1 %v4451_v19  ;;  %4772 = vmatpush1.bf16.msra.mxu0 %v4771_v3  ;;  %v2342_v19 = vld [vmem:[%s5501_s1 + $0x18c8] sm:$0xff]  ;;  %v2347_v3 = vld [vmem:[%s5501_s1 + $0x18f0] sm:$0xff]  ;;  %v1733_v49 = vld [vmem:[%s5501_s1 + $0x5c0] sm:$0xff] }
 0x2bc   : > { %4454 = vmatprep.subr.bf16.mxu1 %v4453_v24  ;;  %4774 = vmatprep.subr.bf16.mxu0 %v4773_v61  ;;  %v2339_v24 = vld [vmem:[%s5501_s1 + $0x18b0] sm:$0xff]  ;;  %v2344_v61 = vld [vmem:[%s5501_s1 + $0x18d8] sm:$0xff]  ;;  %v4789_v27 = vpack.c.bf16 %v2347_v3, %v2342_v19  ;;  %v2178_v37 = vld [vmem:[%s5501_s1 + $0x13a8] sm:$0xff] }
 0x2bd   : > { %v4471_v40 = vpack.c.bf16 %v2344_v61, %v2339_v24  ;;  %v2143_v19 = vld [vmem:[%s5501_s1 + $0x1290] sm:$0xff]  ;;  %v1588_v61 = vld [vmem:[%s5501_s1 + $0x138] sm:$0xff] }
 0x2be   : > { %v1583_v24 = vld [vmem:[%s5501_s1 + $0x110] sm:$0xff] }
 0x2bf   : > { %4456 = vmatpush1.bf16.msra.mxu1 %v4455_v35  ;;  %4776 = vmatpush1.bf16.msra.mxu0 %v4775_v38  ;;  %v2113_v35 = vld [vmem:[%s5501_s1 + $0x11a0] sm:$0xff]  ;;  %v2118_v38 = vld [vmem:[%s5501_s1 + $0x11c8] sm:$0xff]  ;;  %v5106_v43 = vpop.eup %5105 }
 0x2c0   : > { %4458 = vmatprep.subr.bf16.mxu1 %v4457_v10  ;;  %4778 = vmatprep.subr.bf16.mxu0 %v4777_v44  ;;  %v4889_v10 = vpack.c.bf16 %v2118_v38, %v2113_v35  ;;  %v1553_v44 = vld [vmem:[%s5501_s1 + $0x20] sm:$0xff]  ;;  %v6328_v50 = vmul.f32 %v5106_v43, %v6252_v0  ;;  %v2158_v35 = vld [vmem:[%s5501_s1 + $0x1308] sm:$0xff]  ;;  %v4807_v38 = vpack.c.bf16 %v1588_v61, %v1583_v24  ;;  %v2103_v24 = vld [vmem:[%s5501_s1 + $0x1150] sm:$0xff] }
 0x2c1   : > { %v2133_v0 = vld [vmem:[%s5501_s1 + $0x1240] sm:$0xff]  ;;  %v2078_v43 = vld [vmem:[%s5501_s1 + $0x1088] sm:$0xff] }
 0x2c3   : > { %4460 = vmatpush1.bf16.msra.mxu1 %v4459_v52  ;;  %4780 = vmatpush1.bf16.msra.mxu0 %v4779_v54  ;;  %v2128_v52 = vld [vmem:[%s5501_s1 + $0x1218] sm:$0xff]  ;;  %v4795_v54 = vpack.c.bf16 %v1558_v45, %v1553_v44  ;;  %v2073_v44 = vld [vmem:[%s5501_s1 + $0x1060] sm:$0xff]  ;;  %v4905_v45 = vpack.c.bf16 %v2158_v35, %v2153_v6 }
 0x2c4   : > { %4462 = vmatprep.subr.bf16.mxu1 %v4461_v59  ;;  %4782 = vmatprep.subr.bf16.mxu0 %v4781_v62  ;;  %v1563_v59 = vld [vmem:[%s5501_s1 + $0x70] sm:$0xff]  ;;  %v1568_v62 = vld [vmem:[%s5501_s1 + $0x98] sm:$0xff]  ;;  %v4893_v1 = vpack.c.bf16 %v2128_v52, %v2123_v4  ;;  %v4907_v52 = vpack.c.bf16 %v2078_v43, %v2073_v44  ;;  %v1713_v35 = vld [vmem:[%s5501_s1 + $0x520] sm:$0xff] }
 0x2c5   : > { %v1723_v44 = vld [vmem:[%s5501_s1 + $0x570] sm:$0xff]  ;;  %v1813_v43 = vld [vmem:[%s5501_s1 + $0x840] sm:$0xff] }
 0x2c7   : > { %4464 = vmatpush1.bf16.msra.mxu1 %v4463_v7  ;;  %4784 = vmatpush1.bf16.msra.mxu0 %v4783_v8  ;;  %v2138_v7 = vld [vmem:[%s5501_s1 + $0x1268] sm:$0xff]  ;;  %v4799_v8 = vpack.c.bf16 %v1568_v62, %v1563_v59  ;;  %v1608_v59 = vld [vmem:[%s5501_s1 + $0x1d8] sm:$0xff]  ;;  %v2083_v62 = vld [vmem:[%s5501_s1 + $0x10b0] sm:$0xff] }
 0x2c8   : > { %4466 = vmatprep.subr.bf16.mxu1 %v4465_v5  ;;  %4786 = vmatprep.subr.bf16.mxu0 %v4785_v12  ;;  %v1573_v5 = vld [vmem:[%s5501_s1 + $0xc0] sm:$0xff]  ;;  %v1578_v12 = vld [vmem:[%s5501_s1 + $0xe8] sm:$0xff]  ;;  %v4897_v13 = vpack.c.bf16 %v2138_v7, %v2133_v0 }
 0x2c9   : > { %v4803_v3 = vpack.c.bf16 %v1578_v12, %v1573_v5  ;;  %v2093_v5 = vld [vmem:[%s5501_s1 + $0x1100] sm:$0xff]  ;;  %v4913_v12 = vpack.c.bf16 %v2178_v37, %v2173_v20  ;;  %v1843_v20 = vld [vmem:[%s5501_s1 + $0x930] sm:$0xff]  ;;  %v1848_v37 = vld [vmem:[%s5501_s1 + $0x958] sm:$0xff] }
 0x2cb   : > { %4468 = vmatpush1.bf16.msra.mxu1 %v4467_v21  ;;  %4788 = vmatpush1.bf16.msra.mxu0 %v4787_v23  ;;  %v4899_v21 = vpack.c.bf16 %v2058_v15, %v2053_v22  ;;  %v2098_v22 = vld [vmem:[%s5501_s1 + $0x1128] sm:$0xff]  ;;  %v1708_v15 = vld [vmem:[%s5501_s1 + $0x4f8] sm:$0xff] }
 0x2cc   : > { %4470 = vmatprep.subr.bf16.mxu1 %v4469_v26  ;;  %4790 = vmatprep.subr.bf16.mxu0 %v4789_v27  ;;  %v2063_v26 = vld [vmem:[%s5501_s1 + $0x1010] sm:$0xff] }
 0x2cf   : > { %4472 = vmatpush1.bf16.msra.mxu1 %v4471_v40  ;;  %4792 = vmatpush1.bf16.msra.mxu0 %v4791_v41  ;;  %v4903_v40 = vpack.c.bf16 %v2068_v28, %v2063_v26  ;;  %v4809_v41 = vpack.c.bf16 %v1678_v30, %v1673_v53  ;;  %v2108_v26 = vld [vmem:[%s5501_s1 + $0x1178] sm:$0xff]  ;;  %v1798_v28 = vld [vmem:[%s5501_s1 + $0x7c8] sm:$0xff] }
 0x2d0   : > { %4794 = vmatprep.subr.bf16.mxu1 %v4793_v42  ;;  %4890 = vmatprep.subr.bf16.mxu0 %v4889_v10  ;;  %v1593_v42 = vld [vmem:[%s5501_s1 + $0x160] sm:$0xff]  ;;  %v1598_v10 = vld [vmem:[%s5501_s1 + $0x188] sm:$0xff]  ;;  %v4919_v30 = vpack.c.bf16 %v2108_v26, %v2103_v24 }
 0x2d1   : > { %v4811_v4 = vpack.c.bf16 %v1598_v10, %v1593_v42  ;;  %v1958_v24 = vld [vmem:[%s5501_s1 + $0xcc8] sm:$0xff] }
 0x2d2   : > { %2725 = vmatmul.mubr.f32.vlgmr.msra.gmra.mrb[4].mxu1 %v6328_v50  ;;  %3080 = vmatmul.mubr.f32.vlgmr.msra.gmra.mrb[6].mxu0 %v6328_v50 }
 0x2d3   : > { %4796 = vmatpush3.bf16.msra.mxu1 %v4795_v54  ;;  %3150 = vmatprep.mubr.f32.mxu1 %v5716_v25  ;;  %v1668_v25 = vld [vmem:[%s5501_s1 + $0x3b8] sm:$0xff]  ;;  %v4813_v54 = vpack.c.bf16 %v1688_v47, %v1683_v46  ;;  %v1818_v46 = vld [vmem:[%s5501_s1 + $0x868] sm:$0xff] }
 0x2d4   : > { %4892 = vmatpush3.bf16.msra.mxu0 %v4891_v56  ;;  %3360 = vmatprep.mubr.f32.mxu0 %v6037_v39  ;;  %v2148_v39 = vld [vmem:[%s5501_s1 + $0x12b8] sm:$0xff]  ;;  %v4805_v23 = vpack.c.bf16 %v1668_v25, %v1663_v16  ;;  %v1603_v56 = vld [vmem:[%s5501_s1 + $0x1b0] sm:$0xff]  ;;  %v4833_v48 = vpack.c.bf16 %v1818_v46, %v1813_v43  ;;  %v1898_v43 = vld [vmem:[%s5501_s1 + $0xae8] sm:$0xff] }
 0x2d5   : > { %4798 = vmatprep.subr.bf16.mxu1 %v4797_v18  ;;  %4894 = vmatprep.subr.bf16.mxu0 %v4893_v1  ;;  %v4901_v27 = vpack.c.bf16 %v2148_v39, %v2143_v19  ;;  %v2088_v18 = vld [vmem:[%s5501_s1 + $0x10d8] sm:$0xff]  ;;  %v1693_v1 = vld [vmem:[%s5501_s1 + $0x480] sm:$0xff]  ;;  %v4815_v0 = vpack.c.bf16 %v1608_v59, %v1603_v56  ;;  %v2183_v16 = vld [vmem:[%s5501_s1 + $0x13d0] sm:$0xff]  ;;  %v4915_v39 = vpack.c.bf16 %v2098_v22, %v2093_v5 }
 0x2d6   : > { %v4911_v7 = vpack.c.bf16 %v2088_v18, %v2083_v62  ;;  %v2188_v25 = vld [vmem:[%s5501_s1 + $0x13f8] sm:$0xff]  ;;  %v1743_v56 = vld [vmem:[%s5501_s1 + $0x610] sm:$0xff]  ;;  %v1833_v62 = vld [vmem:[%s5501_s1 + $0x8e0] sm:$0xff] }
 0x2d7   : > { %4800 = vmatpush3.bf16.msra.mxu1 %v4799_v8  ;;  %v4817_v8 = vpack.c.bf16 %v1698_v2, %v1693_v1  ;;  %v4917_v61 = vpack.c.bf16 %v2188_v25, %v2183_v16  ;;  %v1748_v59 = vld [vmem:[%s5501_s1 + $0x638] sm:$0xff]  ;;  %v1753_v1 = vld [vmem:[%s5501_s1 + $0x660] sm:$0xff]  ;;  %v1758_v2 = vld [vmem:[%s5501_s1 + $0x688] sm:$0xff] }
 0x2d8   : > { %4896 = vmatpush3.bf16.msra.mxu0 %v4895_v9  ;;  %4802 = vmatprep.subr.bf16.mxu1 %v4801_v11  ;;  %v1613_v9 = vld [vmem:[%s5501_s1 + $0x200] sm:$0xff]  ;;  %v1618_v11 = vld [vmem:[%s5501_s1 + $0x228] sm:$0xff]  ;;  %v1863_v16 = vld [vmem:[%s5501_s1 + $0x9d0] sm:$0xff] }
 0x2d9   : > { %4898 = vmatprep.subr.bf16.mxu0 %v4897_v13  ;;  %v1703_v13 = vld [vmem:[%s5501_s1 + $0x4d0] sm:$0xff]  ;;  %v4819_v19 = vpack.c.bf16 %v1618_v11, %v1613_v9  ;;  %v1768_v9 = vld [vmem:[%s5501_s1 + $0x6d8] sm:$0xff]  ;;  %v1853_v11 = vld [vmem:[%s5501_s1 + $0x980] sm:$0xff] }
 0x2da   : > { %v1858_v5 = vld [vmem:[%s5501_s1 + $0x9a8] sm:$0xff]  ;;  %v1868_v25 = vld [vmem:[%s5501_s1 + $0x9f8] sm:$0xff]  ;;  %v1983_v46 = vld [vmem:[%s5501_s1 + $0xd90] sm:$0xff] }
 0x2db   : > { %4804 = vmatpush3.bf16.msra.mxu1 %v4803_v3  ;;  %v4821_v3 = vpack.c.bf16 %v1708_v15, %v1703_v13  ;;  %v4849_v22 = vpack.c.bf16 %v1858_v5, %v1853_v11  ;;  %v1773_v13 = vld [vmem:[%s5501_s1 + $0x700] sm:$0xff]  ;;  %v1778_v15 = vld [vmem:[%s5501_s1 + $0x728] sm:$0xff]  ;;  %v2028_v11 = vld [vmem:[%s5501_s1 + $0xef8] sm:$0xff] }
 0x2dc   : > { %4900 = vmatpush3.bf16.msra.mxu0 %v4899_v21  ;;  %4806 = vmatprep.subr.bf16.mxu1 %v4805_v23  ;;  %v1623_v21 = vld [vmem:[%s5501_s1 + $0x250] sm:$0xff]  ;;  %v1628_v23 = vld [vmem:[%s5501_s1 + $0x278] sm:$0xff] }
 0x2dd   : > { %4902 = vmatprep.subr.bf16.mxu0 %v4901_v27  ;;  %v1793_v27 = vld [vmem:[%s5501_s1 + $0x7a0] sm:$0xff]  ;;  %v4823_v53 = vpack.c.bf16 %v1628_v23, %v1623_v21  ;;  %v1788_v21 = vld [vmem:[%s5501_s1 + $0x778] sm:$0xff] }
 0x2de   : > { %v4825_v6 = vpack.c.bf16 %v1798_v28, %v1793_v27  ;;  %v1953_v23 = vld [vmem:[%s5501_s1 + $0xca0] sm:$0xff]  ;;  %v1878_v28 = vld [vmem:[%s5501_s1 + $0xa48] sm:$0xff] }
 0x2df   : > { %4808 = vmatpush3.bf16.msra.mxu1 %v4807_v38  ;;  %v1718_v38 = vld [vmem:[%s5501_s1 + $0x548] sm:$0xff]  ;;  %v4857_v26 = vpack.c.bf16 %v1958_v24, %v1953_v23  ;;  %v1873_v27 = vld [vmem:[%s5501_s1 + $0xa20] sm:$0xff]  ;;  %v2288_v23 = vld [vmem:[%s5501_s1 + $0x1718] sm:$0xff] }
 0x2e0   : > { %4904 = vmatpush3.bf16.msra.mxu0 %v4903_v40  ;;  %4810 = vmatprep.subr.bf16.mxu1 %v4809_v41  ;;  %v1803_v40 = vld [vmem:[%s5501_s1 + $0x7f0] sm:$0xff]  ;;  %v1808_v41 = vld [vmem:[%s5501_s1 + $0x818] sm:$0xff]  ;;  %v4827_v42 = vpack.c.bf16 %v1718_v38, %v1713_v35 }
 0x2e1   : > { %4906 = vmatprep.subr.bf16.mxu0 %v4905_v45  ;;  %v4829_v10 = vpack.c.bf16 %v1808_v41, %v1803_v40  ;;  %v1728_v45 = vld [vmem:[%s5501_s1 + $0x598] sm:$0xff]  ;;  %v1883_v38 = vld [vmem:[%s5501_s1 + $0xa70] sm:$0xff]  ;;  %v1973_v41 = vld [vmem:[%s5501_s1 + $0xd40] sm:$0xff] }
 0x2e2   : > { %v4831_v47 = vpack.c.bf16 %v1728_v45, %v1723_v44  ;;  %v1888_v40 = vld [vmem:[%s5501_s1 + $0xa98] sm:$0xff]  ;;  %v1893_v45 = vld [vmem:[%s5501_s1 + $0xac0] sm:$0xff] }
 0x2e3   : > { %4812 = vmatpush3.bf16.msra.mxu1 %v4811_v4  ;;  %v1738_v4 = vld [vmem:[%s5501_s1 + $0x5e8] sm:$0xff] }
 0x2e4   : > { %4908 = vmatpush3.bf16.msra.mxu0 %v4907_v52  ;;  %4814 = vmatprep.subr.bf16.mxu1 %v4813_v54  ;;  %v1823_v52 = vld [vmem:[%s5501_s1 + $0x890] sm:$0xff]  ;;  %v1828_v54 = vld [vmem:[%s5501_s1 + $0x8b8] sm:$0xff] }
 0x2e5   : > { %4910 = vmatprep.subr.bf16.mxu0 %v4909_v63  ;;  %v4839_v63 = vpack.c.bf16 %v1748_v59, %v1743_v56  ;;  %v1918_v56 = vld [vmem:[%s5501_s1 + $0xb88] sm:$0xff]  ;;  %v2003_v59 = vld [vmem:[%s5501_s1 + $0xe30] sm:$0xff] }
 0x2e7   : > { %4816 = vmatpush3.bf16.msra.mxu1 %v4815_v0  ;;  %v4843_v0 = vpack.c.bf16 %v1758_v2, %v1753_v1  ;;  %v1928_v1 = vld [vmem:[%s5501_s1 + $0xbd8] sm:$0xff]  ;;  %v2013_v2 = vld [vmem:[%s5501_s1 + $0xe80] sm:$0xff] }
 0x2e8   : > { %4912 = vmatpush3.bf16.msra.mxu0 %v4911_v7  ;;  %4818 = vmatprep.subr.bf16.mxu1 %v4817_v8  ;;  %v4845_v7 = vpack.c.bf16 %v1848_v37, %v1843_v20  ;;  %v1763_v8 = vld [vmem:[%s5501_s1 + $0x6b0] sm:$0xff]  ;;  %v2018_v20 = vld [vmem:[%s5501_s1 + $0xea8] sm:$0xff] }
 0x2e9   : > { %4914 = vmatprep.subr.bf16.mxu0 %v4913_v12  ;;  %v4847_v12 = vpack.c.bf16 %v1768_v9, %v1763_v8  ;;  %v1938_v8 = vld [vmem:[%s5501_s1 + $0xc28] sm:$0xff]  ;;  %v2023_v9 = vld [vmem:[%s5501_s1 + $0xed0] sm:$0xff] }
 0x2eb   : > { %4820 = vmatpush3.bf16.msra.mxu1 %v4819_v19  ;;  %v4851_v19 = vpack.c.bf16 %v1778_v15, %v1773_v13  ;;  %v1948_v13 = vld [vmem:[%s5501_s1 + $0xc78] sm:$0xff]  ;;  %v2273_v15 = vld [vmem:[%s5501_s1 + $0x16a0] sm:$0xff] }
 0x2ec   : > { %4916 = vmatpush3.bf16.msra.mxu0 %v4915_v39  ;;  %4822 = vmatprep.subr.bf16.mxu1 %v4821_v3  ;;  %v4853_v39 = vpack.c.bf16 %v1868_v25, %v1863_v16  ;;  %v1783_v3 = vld [vmem:[%s5501_s1 + $0x750] sm:$0xff]  ;;  %v2278_v16 = vld [vmem:[%s5501_s1 + $0x16c8] sm:$0xff] }
 0x2ed   : > { %4918 = vmatprep.subr.bf16.mxu0 %v4917_v61  ;;  %v4855_v61 = vpack.c.bf16 %v1788_v21, %v1783_v3  ;;  %v2198_v3 = vld [vmem:[%s5501_s1 + $0x1448] sm:$0xff]  ;;  %v2283_v21 = vld [vmem:[%s5501_s1 + $0x16f0] sm:$0xff] }
 0x2ef   : > { %4824 = vmatpush3.bf16.msra.mxu1 %v4823_v53  ;;  %v1963_v53 = vld [vmem:[%s5501_s1 + $0xcf0] sm:$0xff] }
 0x2f0   : > { %4920 = vmatpush3.bf16.msra.mxu0 %v4919_v30  ;;  %4826 = vmatprep.subr.bf16.mxu1 %v4825_v6  ;;  %v1968_v30 = vld [vmem:[%s5501_s1 + $0xd18] sm:$0xff]  ;;  %v4859_v6 = vpack.c.bf16 %v1878_v28, %v1873_v27  ;;  %v2293_v28 = vld [vmem:[%s5501_s1 + $0x1740] sm:$0xff] }
 0x2f1   : > { %v4861_v35 = vpack.c.bf16 %v1968_v30, %v1963_v53  ;;  %v2208_v27 = vld [vmem:[%s5501_s1 + $0x1498] sm:$0xff]  ;;  %v2298_v53 = vld [vmem:[%s5501_s1 + $0x1768] sm:$0xff] }
 0x2f2   : > { %3151 = vmatmul.mubr.f32.vlgmr.msra.gmra.mrb[6].mxu1 %v5720_v31  ;;  %v4835_v31 = vpack.c.bf16 %v1738_v4, %v1733_v49  ;;  %v1903_v49 = vld [vmem:[%s5501_s1 + $0xb10] sm:$0xff]  ;;  %v1908_v4 = vld [vmem:[%s5501_s1 + $0xb38] sm:$0xff] }
 0x2f3   : > { %3361 = vmatmul.mubr.f32.vlgmr.msra.gmra.mrb[8].mxu0 %v6186_v51  ;;  %4828 = vmatpush3.bf16.msra.mxu1 %v4827_v42  ;;  %v4837_v51 = vpack.c.bf16 %v1828_v54, %v1823_v52  ;;  %v1978_v42 = vld [vmem:[%s5501_s1 + $0xd68] sm:$0xff]  ;;  %v4871_v54 = vpack.c.bf16 %v1908_v4, %v1903_v49  ;;  %v2328_v49 = vld [vmem:[%s5501_s1 + $0x1858] sm:$0xff] }
 0x2f4   : > { %3220 = vmatprep.mubr.f32.mxu1 %v5743_v60  ;;  %4830 = vmatprep.subr.bf16.mxu1 %v4829_v10  ;;  %v1838_v60 = vld [vmem:[%s5501_s1 + $0x908] sm:$0xff]  ;;  %v4863_v10 = vpack.c.bf16 %v1888_v40, %v1883_v38  ;;  %v4865_v44 = vpack.c.bf16 %v1978_v42, %v1973_v41  ;;  %v2303_v40 = vld [vmem:[%s5501_s1 + $0x1790] sm:$0xff]  ;;  %v2308_v41 = vld [vmem:[%s5501_s1 + $0x17b8] sm:$0xff] }
 0x2f5   : > { %v4841_v18 = vpack.c.bf16 %v1838_v60, %v1833_v62  ;;  %v1998_v52 = vld [vmem:[%s5501_s1 + $0xe08] sm:$0xff]  ;;  %v2008_v62 = vld [vmem:[%s5501_s1 + $0xe58] sm:$0xff] }
 0x2f6   : > { %v2218_v38 = vld [vmem:[%s5501_s1 + $0x14e8] sm:$0xff] }
 0x2f7   : > { %4832 = vmatpush3.bf16.msra.mxu1 %v4831_v47  ;;  %v1988_v47 = vld [vmem:[%s5501_s1 + $0xdb8] sm:$0xff] }
 0x2f8   : > { %4834 = vmatprep.subr.bf16.mxu1 %v4833_v48  ;;  %v4867_v48 = vpack.c.bf16 %v1898_v43, %v1893_v45  ;;  %v2318_v45 = vld [vmem:[%s5501_s1 + $0x1808] sm:$0xff] }
 0x2fb   : > { %4836 = vmatpush3.bf16.msra.mxu1 %v4835_v31 }
 0x2fc   : > { %4838 = vmatprep.subr.bf16.mxu1 %v4837_v51  ;;  %v1913_v51 = vld [vmem:[%s5501_s1 + $0xb60] sm:$0xff] }
 0x2fd   : > { %v4875_v60 = vpack.c.bf16 %v1918_v56, %v1913_v51  ;;  %v2338_v51 = vld [vmem:[%s5501_s1 + $0x18a8] sm:$0xff] }
 0x2ff   : > { %4840 = vmatpush3.bf16.msra.mxu1 %v4839_v63  ;;  %v4877_v63 = vpack.c.bf16 %v2008_v62, %v2003_v59  ;;  %v2253_v62 = vld [vmem:[%s5501_s1 + $0x1600] sm:$0xff] }
 0x300   : > { %4842 = vmatprep.subr.bf16.mxu1 %v4841_v18  ;;  %v1923_v18 = vld [vmem:[%s5501_s1 + $0xbb0] sm:$0xff] }
 0x301   : > { %v4879_v37 = vpack.c.bf16 %v1928_v1, %v1923_v18  ;;  %v2348_v18 = vld [vmem:[%s5501_s1 + $0x18f8] sm:$0xff] }
 0x303   : > { %4844 = vmatpush3.bf16.msra.mxu1 %v4843_v0  ;;  %v4881_v0 = vpack.c.bf16 %v2018_v20, %v2013_v2  ;;  %v2263_v20 = vld [vmem:[%s5501_s1 + $0x1650] sm:$0xff] }
 0x304   : > { %4846 = vmatprep.subr.bf16.mxu1 %v4845_v7  ;;  %v1933_v7 = vld [vmem:[%s5501_s1 + $0xc00] sm:$0xff] }
 0x305   : > { %v4883_v5 = vpack.c.bf16 %v1938_v8, %v1933_v7  ;;  %v2349_v7 = vld [vmem:[%s268_s24] sm:$0x1f] }
 0x306   : > { %v2354_v8 = vrot.slane %v2349_v7, %v5676_v36 }
 0x307   : > { %4848 = vmatpush3.bf16.msra.mxu1 %v4847_v12  ;;  %v4885_v12 = vpack.c.bf16 %v2028_v11, %v2023_v9  ;;  %v2362_v9 = vrot.slane %v2349_v7, %v725_v34  ;;  %v2358_v11 = vrot.slane %v2349_v7, %v5681_v55 }
 0x308   : > { %4850 = vmatprep.subr.bf16.mxu1 %v4849_v22  ;;  %v1943_v22 = vld [vmem:[%s5501_s1 + $0xc50] sm:$0xff] }
 0x309   : > { %v4887_v25 = vpack.c.bf16 %v1948_v13, %v1943_v22 }
 0x30b   : > { %4852 = vmatpush3.bf16.msra.mxu1 %v4851_v19  ;;  %v4921_v19 = vpack.c.bf16 %v2278_v16, %v2273_v15 }
 0x30c   : > { %4854 = vmatprep.subr.bf16.mxu1 %v4853_v39  ;;  %v2193_v39 = vld [vmem:[%s5501_s1 + $0x1420] sm:$0xff] }
 0x30d   : > { %v4923_v24 = vpack.c.bf16 %v2198_v3, %v2193_v39 }
 0x30f   : > { %4856 = vmatpush3.bf16.msra.mxu1 %v4855_v61  ;;  %v4925_v61 = vpack.c.bf16 %v2288_v23, %v2283_v21  ;;  %v2370_v21 = vrot.slane %v2349_v7, %v733_v33 }
 0x310   : > { %4858 = vmatprep.subr.bf16.mxu1 %v4857_v26  ;;  %v2203_v26 = vld [vmem:[%s5501_s1 + $0x1470] sm:$0xff] }
 0x311   : > { %v4927_v30 = vpack.c.bf16 %v2208_v27, %v2203_v26 }
 0x312   : > { %3221 = vmatmul.mubr.f32.vlgmr.msra.gmra.mrb[8].mxu1 %v5879_v17  ;;  %v4869_v17 = vpack.c.bf16 %v1988_v47, %v1983_v46  ;;  %v2233_v47 = vld [vmem:[%s5501_s1 + $0x1560] sm:$0xff] }
 0x313   : > { %4860 = vmatpush3.bf16.msra.mxu1 %v4859_v6  ;;  %3290 = vmatprep.mubr.f32.mxu1 %v5914_v14  ;;  %v1993_v14 = vld [vmem:[%s5501_s1 + $0xde0] sm:$0xff]  ;;  %v4929_v6 = vpack.c.bf16 %v2298_v53, %v2293_v28 }
 0x314   : > { %4862 = vmatprep.subr.bf16.mxu1 %v4861_v35  ;;  %v4873_v31 = vpack.c.bf16 %v1998_v52, %v1993_v14  ;;  %v2213_v35 = vld [vmem:[%s5501_s1 + $0x14c0] sm:$0xff]  ;;  %v2243_v52 = vld [vmem:[%s5501_s1 + $0x15b0] sm:$0xff] }
 0x315   : > { %v4931_v42 = vpack.c.bf16 %v2218_v38, %v2213_v35 }
 0x317   : > { %4864 = vmatpush3.bf16.msra.mxu1 %v4863_v10  ;;  %v2223_v10 = vld [vmem:[%s5501_s1 + $0x1510] sm:$0xff] }
 0x318   : > { %4866 = vmatprep.subr.bf16.mxu1 %v4865_v44  ;;  %v2228_v44 = vld [vmem:[%s5501_s1 + $0x1538] sm:$0xff] }
 0x319   : > { %v4935_v43 = vpack.c.bf16 %v2228_v44, %v2223_v10 }
 0x31b   : > { %4868 = vmatpush3.bf16.msra.mxu1 %v4867_v48  ;;  %v2238_v48 = vld [vmem:[%s5501_s1 + $0x1588] sm:$0xff] }
 0x31c   : > { %4870 = vmatprep.subr.bf16.mxu1 %v4869_v17  ;;  %v2323_v17 = vld [vmem:[%s5501_s1 + $0x1830] sm:$0xff]  ;;  %v4939_v4 = vpack.c.bf16 %v2238_v48, %v2233_v47 }
 0x31d   : > { %v4941_v14 = vpack.c.bf16 %v2328_v49, %v2323_v17 }
 0x31f   : > { %4872 = vmatpush3.bf16.msra.mxu1 %v4871_v54  ;;  %v2248_v54 = vld [vmem:[%s5501_s1 + $0x15d8] sm:$0xff] }
 0x320   : > { %4874 = vmatprep.subr.bf16.mxu1 %v4873_v31  ;;  %v2333_v31 = vld [vmem:[%s5501_s1 + $0x1880] sm:$0xff]  ;;  %v4943_v56 = vpack.c.bf16 %v2248_v54, %v2243_v52 }
 0x321   : > { %v4945_v59 = vpack.c.bf16 %v2338_v51, %v2333_v31 }
 0x323   : > { %4876 = vmatpush3.bf16.msra.mxu1 %v4875_v60  ;;  %v2258_v60 = vld [vmem:[%s5501_s1 + $0x1628] sm:$0xff] }
 0x324   : > { %4878 = vmatprep.subr.bf16.mxu1 %v4877_v63  ;;  %v2343_v63 = vld [vmem:[%s5501_s1 + $0x18d0] sm:$0xff]  ;;  %v4947_v1 = vpack.c.bf16 %v2258_v60, %v2253_v62 }
 0x325   : > { %v4949_v2 = vpack.c.bf16 %v2348_v18, %v2343_v63 }
 0x327   : > { %4880 = vmatpush3.bf16.msra.mxu1 %v4879_v37  ;;  %v2268_v37 = vld [vmem:[%s5501_s1 + $0x1678] sm:$0xff] }
 0x328   : > { %4882 = vmatprep.subr.bf16.mxu1 %v4881_v0  ;;  %v4951_v0 = vpack.c.bf16 %v2268_v37, %v2263_v20 }
 0x32b   : > { %4884 = vmatpush3.bf16.msra.mxu1 %v4883_v5  ;;  %v2366_v5 = vrot.slane %v2349_v7, %v729_v58 }
 0x32c   : > { %4886 = vmatprep.subr.bf16.mxu1 %v4885_v12 }
 0x32f   : > { %4888 = vmatpush3.bf16.msra.mxu1 %v4887_v25 }
 0x330   : > { %4922 = vmatprep.subr.bf16.mxu1 %v4921_v19 }
 0x332   : > { %3291 = vmatmul.mubr.f32.vlgmr.msra.gmra.mrb[10].mxu1 %v6031_v32  ;;  %v4933_v32 = vpack.c.bf16 %v2308_v41, %v2303_v40 }
 0x333   : > { %4924 = vmatpush3.bf16.msra.mxu1 %v4923_v24  ;;  %3430 = vmatprep.mubr.f32.mxu1 %v6192_v57  ;;  %v2313_v57 = vld [vmem:[%s5501_s1 + $0x17e0] sm:$0xff] }
 0x334   : > { %4926 = vmatprep.subr.bf16.mxu1 %v4925_v61  ;;  %v4937_v46 = vpack.c.bf16 %v2318_v45, %v2313_v57 }
 0x337   : > { %4928 = vmatpush3.bf16.msra.mxu1 %v4927_v30 }
 0x338   : > { %4930 = vmatprep.subr.bf16.mxu1 %v4929_v6 }
 0x33b   : > { %4932 = vmatpush3.bf16.msra.mxu1 %v4931_v42 }
 0x33c   : > { %4934 = vmatprep.subr.bf16.mxu1 %v4933_v32 }
 0x33f   : > { %4936 = vmatpush3.bf16.msra.mxu1 %v4935_v43 }
 0x340   : > { %4938 = vmatprep.subr.bf16.mxu1 %v4937_v46 }
 0x343   : > { %4940 = vmatpush3.bf16.msra.mxu1 %v4939_v4 }
 0x344   : > { %4942 = vmatprep.subr.bf16.mxu1 %v4941_v14 }
 0x347   : > { %4944 = vmatpush3.bf16.msra.mxu1 %v4943_v56 }
 0x348   : > { %4946 = vmatprep.subr.bf16.mxu1 %v4945_v59 }
 0x34b   : > { %4948 = vmatpush3.bf16.msra.mxu1 %v4947_v1 }
 0x34c   : > { %4950 = vmatprep.subr.bf16.mxu1 %v4949_v2 }
 0x34f   : > { %4952 = vmatpush3.bf16.msra.mxu1 %v4951_v0 }
 0x352   : > { %3431 = vmatmul.mubr.f32.vlgmr.msra.gmra.mrb[12].mxu1 %v6328_v50 }
 0x3a5   : > { %v2726_v50 = vpop.f32.mrb[4].mxu1  ;;  %v3081_v12 = vpop.f32.mrb[6].mxu0 }
 0x3a6   : > { %v4963_v36 = vadd.f32 %v2726_v50, %v2354_v8  ;;  %v4965_v22 = vadd.f32 %v3081_v12, %v2362_v9  ;;  %v2728_v13 = vpop.f32.mrb[5].mxu1  ;;  %v3083_v34 = vpop.f32.mrb[7].mxu0 }
 0x3a7   : > { %v4964_v15 = vadd.f32 %v2728_v13, %v2358_v11  ;;  %v4966_v55 = vadd.f32 %v3083_v34, %v2366_v5 }
 0x3a8   : > { %3436 = vst [vmem:[%s6502_s22] sm:$0xff] %v4963_v36  ;;  %3438 = vst [vmem:[%s6502_s22 + $0x10] sm:$0xff] %v4965_v22 }
 0x3a9   : > { %3437 = vst [vmem:[%s6502_s22 + $0x8] sm:$0xff] %v4964_v15  ;;  %3439 = vst [vmem:[%s6502_s22 + $0x18] sm:$0xff] %v4966_v55 }
 0x3c5   : > { %v3610_v58 = vpop.f32.mrb[6].mxu1 }
 0x3c6   : > { %v3715_v16 = vpop.f32.mrb[8].mxu0  ;;  %v3611_v25 = vpop.f32.mrb[7].mxu1 }
 0x3c7   : > { %v3612_v19 = vadd.f32 %v3611_v25, %v3610_v58  ;;  %v3716_v39 = vpop.f32.mrb[9].mxu0 }
 0x3c8   : > { %v3717_v3 = vadd.f32 %v3716_v39, %v3715_v16 }
 0x3c9   : > { %v3153_v61 = vadd.f32 %v3612_v19, %v2370_v21 }
 0x3e5   : > { %v3645_v23 = vpop.f32.mrb[8].mxu1 }
 0x3e6   : > { %v3646_v24 = vpop.f32.mrb[9].mxu1 }
 0x3e7   : > { %v3647_v26 = vadd.f32 %v3646_v24, %v3645_v23 }
 0x3e9   : > { %v3223_v27 = vadd.f32 %v3647_v26, %v3153_v61 }
 0x405   : > { %v3680_v28 = vpop.f32.mrb[10].mxu1 }
 0x406   : > { %v3681_v53 = vpop.f32.mrb[11].mxu1 }
 0x407   : > { %v3682_v30 = vadd.f32 %v3681_v53, %v3680_v28 }
 0x409   : > { %v3293_v6 = vadd.f32 %v3682_v30, %v3223_v27 }
 0x40b   : > { %v3363_v35 = vadd.f32 %v3717_v3, %v3293_v6 }
 0x425   : > { %v3750_v38 = vpop.f32.mrb[12].mxu1 }
 0x426   : > { %v3751_v40 = vpop.f32.mrb[13].mxu1 }
 0x427   : > { %v3752_v41 = vadd.f32 %v3751_v40, %v3750_v38 }
 0x429   : > { %v3433_v42 = vadd.f32 %v3752_v41, %v3363_v35 }
 0x42b   : > { %3440 = vst [vmem:[%s6502_s22 + $0x20] sm:$0xff] %v3433_v42 }
 0x42c PF: > { %p14_p4 = scmp.ge.s32.totalorder %s5332_s23, 4   ;;  %s6557_s18 = smov %s5261_s19 }
 0x42d   : > { %s6558_s19 = smov %s5265_s20  ;;  %s6559_s20 = smov %s5342_s26 }
 0x42e   : > { %s6560_s21 = smov %s5332_s23  ;;  %16 = sbr.rel (!%p14_p4) target bundleno = 5 (0x5), region = 98 }
 0x435   :  { %3463 = vsyncpa [#allocation3], 1 }
 0x436   :  { %3465 = vsyncpa [#allocation3 + $0x1], 1 }
 0x437   :  { %3466 = vsyncpa [#allocation5], 1 }

</bundles_post_ra>
